<compile_context>
chip_gen: v5e
topology: v5e:2x2
jax: 0.10.0
libtpu: 0.0.40
codegen_flags: <defaults>
</compile_context>

<pallas_src>
import functools
import math

import jax
import jax.numpy as jnp
from jax.experimental import pallas as pl
from jax.experimental.pallas import tpu as pltpu


def _round_up(x, m):
    return (x + m - 1) // m * m


def bilstm_kernel(x_ref, lens_ref,
                  w_ih8_ref, b8_ref,
                  w_hh_f_ref, w_hh_b_ref,
                  w_lin_f_ref, w_lin_b_ref, b_lin_ref,
                  out_ref,
                  gxf_ref, gxb_ref, hf_ref, hb_ref,
                  *, T, Bp, Hp):
    """Fused BiLSTM + output Linear (all shapes pre-padded / aligned).

      x_ref      (T, Bp, E)    bf16   time-major embedded inputs
      lens_ref   (Bp, 1)       int32  valid lengths (0 for batch-pad rows)
      w_ih8_ref  (E, 8*Hp)     bf16   [fwd i,f,g,o | bwd i,f,g,o]
      b8_ref     (1, 8*Hp)     f32    combined b_ih + b_hh, both directions
      w_hh_*     (Hp, 4*Hp)    bf16
      w_lin_*    (Hp, Cp)      bf16
      b_lin_ref  (1, Cp)       f32
      out_ref    (T*Bp, Cp)    f32    row t*Bp + b = logits for (batch b, time t)
      gx*_ref    (T*Bp, 4*Hp)  f32    hoisted input-projection gates
      h*_ref     (T*Bp, Hp)    f32    per-timestep hidden outputs
    """
    E = x_ref.shape[2]

    # ---- 1. Hoisted input projection: one big GEMM instead of T tiny ones ----
    x2 = x_ref[...].reshape(T * Bp, E)                               # bf16
    gall = (jnp.dot(x2, w_ih8_ref[...], preferred_element_type=jnp.float32)
            + b8_ref[...])                                           # (T*Bp, 8*Hp) f32
    gxf_ref[...] = gall[:, :4 * Hp]
    gxb_ref[...] = gall[:, 4 * Hp:]

    lens = lens_ref[...]                                             # (Bp, 1) int32
    w_hh_f = w_hh_f_ref[...]
    w_hh_b = w_hh_b_ref[...]

    h0 = jnp.zeros((Bp, Hp), jnp.float32)
    c0 = jnp.zeros((Bp, Hp), jnp.float32)

    def cell(gx, h, c, w_hh, mask):
        # PyTorch gate order (i, f, g, o); each gate slice is 128-lane aligned.
        gates = gx + jnp.dot(h.astype(jnp.bfloat16), w_hh,
                             preferred_element_type=jnp.float32)     # (Bp, 4*Hp)
        i = jax.nn.sigmoid(gates[:, 0 * Hp:1 * Hp])
        f = jax.nn.sigmoid(gates[:, 1 * Hp:2 * Hp])
        g = jnp.tanh(gates[:, 2 * Hp:3 * Hp])
        o = jax.nn.sigmoid(gates[:, 3 * Hp:4 * Hp])
        c_new = f * c + i * g
        h_new = o * jnp.tanh(c_new)
        h_out = jnp.where(mask, h_new, 0.0)   # padded steps emit 0 (pad_packed_sequence)
        h_keep = jnp.where(mask, h_new, h)    # state frozen past sequence end
        c_keep = jnp.where(mask, c_new, c)
        return h_out, h_keep, c_keep

    # ---- 2. Fused fwd/bwd recurrence: two independent MXU dots per step ----
    def body(t, carry):
        h_f, c_f, h_b, c_b = carry
        tb = T - 1 - t
        row_f = pl.multiple_of(t * Bp, Bp)
        row_b = pl.multiple_of(tb * Bp, Bp)

        gx_f = gxf_ref[pl.ds(row_f, Bp), :]
        ho_f, h_f, c_f = cell(gx_f, h_f, c_f, w_hh_f, t < lens)
        hf_ref[pl.ds(row_f, Bp), :] = ho_f

        gx_b = gxb_ref[pl.ds(row_b, Bp), :]
        ho_b, h_b, c_b = cell(gx_b, h_b, c_b, w_hh_b, tb < lens)
        hb_ref[pl.ds(row_b, Bp), :] = ho_b
        return h_f, c_f, h_b, c_b

    jax.lax.fori_loop(0, T, body, (h0, c0, h0, c0), unroll=True)

    # ---- 3. Output Linear as one batched GEMM, lane-dense store ----
    out_ref[...] = (
        jnp.dot(hf_ref[...].astype(jnp.bfloat16), w_lin_f_ref[...],
                preferred_element_type=jnp.float32)
        + jnp.dot(hb_ref[...].astype(jnp.bfloat16), w_lin_b_ref[...],
                  preferred_element_type=jnp.float32)
        + b_lin_ref[...])


def bilstm_crf_forward(inputs, length, params):
    """Equivalent of Model.forward: Embedding -> BiLSTM -> Linear.

    # TODO(synk): dropout_emb / dropout_p (training-mode dropout) intentionally skipped.
    """
    emb_w = params['embedding']                      # (V, E)
    B, T = inputs.shape
    E = emb_w.shape[1]
    H = params['w_hh_f'].shape[0]
    C = params['w_lin'].shape[1]

    Bp = max(_round_up(B, 8), 8)                     # sublane-align the batch
    Hp = _round_up(H, 128)                           # lane-align gate slices
    Cp = _round_up(C, 128)                           # lane-dense output stores

    # Pad token ids / lengths; pad rows get length 0 so they stay fully masked.
    inputs_p = jnp.zeros((Bp, T), inputs.dtype).at[:B].set(inputs)
    lens_p = jnp.zeros((Bp, 1), jnp.int32).at[:B, 0].set(length.astype(jnp.int32))

    # Embedding lookup is glue (XLA gather).  Transpose the tiny (Bp, T) index
    # matrix, not the embedded activations, so x lands already time-major.
    x_tm = jnp.take(emb_w, inputs_p.T, axis=0).astype(jnp.bfloat16)   # (T, Bp, E)

    def pad_gates(w, rows_out):
        # (rows_in, 4*H) -> (rows_out, 4*Hp), zero-padded per gate block so each
        # gate occupies a 128-lane-aligned slice.  Zero pads keep the padded
        # hidden units identically zero throughout the recurrence.
        rows_in = w.shape[0]
        w4 = w.reshape(rows_in, 4, H)
        out = jnp.zeros((rows_out, 4, Hp), jnp.float32).at[:rows_in, :, :H].set(w4)
        return out.reshape(rows_out, 4 * Hp)

    w_ih8 = jnp.concatenate([pad_gates(params['w_ih_f'], E),
                             pad_gates(params['w_ih_b'], E)],
                            axis=1).astype(jnp.bfloat16)              # (E, 8*Hp)
    b8 = jnp.concatenate([pad_gates(params['b_f'], 1),
                          pad_gates(params['b_b'], 1)], axis=1)       # (1, 8*Hp) f32
    w_hh_f = pad_gates(params['w_hh_f'], Hp).astype(jnp.bfloat16)     # (Hp, 4*Hp)
    w_hh_b = pad_gates(params['w_hh_b'], Hp).astype(jnp.bfloat16)

    wl = params['w_lin']                                              # (2H, C)
    w_lin_f = jnp.zeros((Hp, Cp), jnp.float32).at[:H, :C].set(wl[:H]).astype(jnp.bfloat16)
    w_lin_b = jnp.zeros((Hp, Cp), jnp.float32).at[:H, :C].set(wl[H:]).astype(jnp.bfloat16)
    b_lin = jnp.zeros((1, Cp), jnp.float32).at[:, :C].set(params['b_lin'])

    # Everything is VMEM-resident (no grid): size the scoped VMEM limit explicitly.
    def nbytes(*shape_dtype):
        return sum(math.prod(s) * jnp.dtype(d).itemsize for s, d in shape_dtype)

    vmem_est = nbytes(
        ((T, Bp, E), jnp.bfloat16), ((Bp, 128), jnp.int32),
        ((E, 8 * Hp), jnp.bfloat16), ((8, 8 * Hp), jnp.float32),
        ((Hp, 4 * Hp), jnp.bfloat16), ((Hp, 4 * Hp), jnp.bfloat16),
        ((Hp, Cp), jnp.bfloat16), ((Hp, Cp), jnp.bfloat16), ((8, Cp), jnp.float32),
        ((T * Bp, Cp), jnp.float32),
        ((T * Bp, 4 * Hp), jnp.float32), ((T * Bp, 4 * Hp), jnp.float32),
        ((T * Bp, Hp), jnp.float32), ((T * Bp, Hp), jnp.float32),
    )
    vmem_limit = int(min(2 * vmem_est + (4 << 20), 60 << 20))

    kernel = functools.partial(bilstm_kernel, T=T, Bp=Bp, Hp=Hp)
    out_flat = pl.pallas_call(
        kernel,
        out_shape=jax.ShapeDtypeStruct((T * Bp, Cp), jnp.float32),
        scratch_shapes=[pltpu.VMEM((T * Bp, 4 * Hp), jnp.float32),   # fwd input gates
                        pltpu.VMEM((T * Bp, 4 * Hp), jnp.float32),   # bwd input gates
                        pltpu.VMEM((T * Bp, Hp), jnp.float32),       # fwd hidden seq
                        pltpu.VMEM((T * Bp, Hp), jnp.float32)],      # bwd hidden seq
        compiler_params=pltpu.CompilerParams(vmem_limit_bytes=vmem_limit),
    )(x_tm, lens_p, w_ih8, b8, w_hh_f, w_hh_b, w_lin_f, w_lin_b, b_lin)

    out = out_flat.reshape(T, Bp, Cp)[:, :B, :C]                      # (T, B, C)
    return jnp.transpose(out, (1, 0, 2))                              # (B, T, C) batch_first


def reference_forward(inputs, length, params):
    """Pure-JAX f32 reference with the same semantics as the PyTorch forward."""
    x = jnp.take(params['embedding'], inputs, axis=0)                 # (B, T, E)
    B, T, _ = x.shape
    H = params['w_hh_f'].shape[0]

    def run_dir(w_ih, w_hh, b, reverse):
        def step(carry, t):
            h, c = carry
            gates = x[:, t, :] @ w_ih + h @ w_hh + b
            i = jax.nn.sigmoid(gates[:, :H])
            f = jax.nn.sigmoid(gates[:, H:2 * H])
            g = jnp.tanh(gates[:, 2 * H:3 * H])
            o = jax.nn.sigmoid(gates[:, 3 * H:])
            c_new = f * c + i * g
            h_new = o * jnp.tanh(c_new)
            mask = (t < length)[:, None]
            h_out = jnp.where(mask, h_new, 0.0)
            return (jnp.where(mask, h_new, h), jnp.where(mask, c_new, c)), h_out

        ts = jnp.arange(T)[::-1] if reverse else jnp.arange(T)
        _, hs = jax.lax.scan(step, (jnp.zeros((B, H), jnp.float32),
                                    jnp.zeros((B, H), jnp.float32)), ts)
        hs = hs[::-1] if reverse else hs
        return jnp.transpose(hs, (1, 0, 2))                           # (B, T, H)

    hf = run_dir(params['w_ih_f'], params['w_hh_f'], params['b_f'], False)
    hb = run_dir(params['w_ih_b'], params['w_hh_b'], params['b_b'], True)
    h = jnp.concatenate([hf, hb], axis=-1)
    return h @ params['w_lin'] + params['b_lin']


def init_params(key, vocab_size, embedding_dim, hidden_size, num_classes):
    """Deterministic parameter init matching the PyTorch shapes (pre-transposed)."""
    E, H = embedding_dim, hidden_size
    C = num_classes + 2                                    # CRF adds START/STOP tags
    ks = jax.random.split(key, 11)
    s = 1.0 / float(H) ** 0.5

    def u(k, shape):
        return jax.random.uniform(k, shape, jnp.float32, -s, s)

    return dict(
        embedding=jax.random.normal(ks[0], (vocab_size, E), jnp.float32),
        w_ih_f=u(ks[1], (E, 4 * H)),
        w_hh_f=u(ks[2], (H, 4 * H)),
        b_f=u(ks[3], (1, 4 * H)) + u(ks[4], (1, 4 * H)),   # b_ih + b_hh
        w_ih_b=u(ks[5], (E, 4 * H)),
        w_hh_b=u(ks[6], (H, 4 * H)),
        b_b=u(ks[7], (1, 4 * H)) + u(ks[8], (1, 4 * H)),
        w_lin=u(ks[9], (2 * H, C)),
        b_lin=u(ks[10], (1, C)),
    )


if __name__ == "__main__":
    key = jax.random.PRNGKey(0)
    B, T = 2, 8
    vocab_size, embedding_dim, hidden_size, num_classes = 50, 32, 32, 7

    k_params, k_inputs = jax.random.split(key)
    params = init_params(k_params, vocab_size, embedding_dim, hidden_size, num_classes)

    inputs = jax.random.randint(k_inputs, (B, T), 0, vocab_size, dtype=jnp.int32)
    length = jnp.array([T, 5], dtype=jnp.int32)            # second sequence is padded

    out = jax.jit(bilstm_crf_forward)(inputs, length, params)
    jax.block_until_ready(out)
    assert out.shape == (B, T, num_classes + 2), out.shape

    ref = reference_forward(inputs, length, params)
    err = float(jnp.max(jnp.abs(out - ref)))
    assert err < 1e-1, f"max abs err {err}"                 # bf16-matmul tolerance
    print("KERNEL_OK")
</pallas_src>

<mosaic_0001>
module attributes {stable_mosaic.version = 11 : i64} {
  func.func @bilstm_kernel(%arg0: memref<8x8x32xbf16, #tpu.memory_space<vmem>>, %arg1: memref<8x1xi32, #tpu.memory_space<vmem>>, %arg2: memref<32x1024xbf16, #tpu.memory_space<vmem>>, %arg3: memref<1x1024xf32, #tpu.memory_space<vmem>>, %arg4: memref<128x512xbf16, #tpu.memory_space<vmem>>, %arg5: memref<128x512xbf16, #tpu.memory_space<vmem>>, %arg6: memref<128x128xbf16, #tpu.memory_space<vmem>>, %arg7: memref<128x128xbf16, #tpu.memory_space<vmem>>, %arg8: memref<1x128xf32, #tpu.memory_space<vmem>>, %arg9: memref<64x128xf32, #tpu.memory_space<vmem>>, %arg10: memref<64x512xf32, #tpu.memory_space<vmem>>, %arg11: memref<64x512xf32, #tpu.memory_space<vmem>>, %arg12: memref<64x128xf32, #tpu.memory_space<vmem>>, %arg13: memref<64x128xf32, #tpu.memory_space<vmem>>) attributes {dimension_semantics = [], scalar_prefetch = 0 : i64, scratch_operands = 4 : i64, tpu.core_type = #tpu.core_type<tc>} {
    %c0 = arith.constant 0 : index
    %c0_0 = arith.constant 0 : index
    %c0_1 = arith.constant 0 : index
    %0 = vector.load %arg0[%c0, %c0_0, %c0_1] : memref<8x8x32xbf16, #tpu.memory_space<vmem>>, vector<8x8x32xbf16>
    %1 = vector.shape_cast %0 : vector<8x8x32xbf16> to vector<64x32xbf16>
    %c0_2 = arith.constant 0 : index
    %c0_3 = arith.constant 0 : index
    %2 = vector.load %arg2[%c0_2, %c0_3] : memref<32x1024xbf16, #tpu.memory_space<vmem>>, vector<32x1024xbf16>
    %cst = arith.constant dense<0.000000e+00> : vector<64x1024xf32>
    %3 = tpu.matmul %1, %2, %cst {dimension_numbers = #tpu.dot_dimension_numbers<[1], [0], [0], [1], [0, 0, 1, 1], [], []>} : vector<64x32xbf16>, vector<32x1024xbf16>, vector<64x1024xf32> -> vector<64x1024xf32>
    %c0_4 = arith.constant 0 : index
    %c0_5 = arith.constant 0 : index
    %4 = vector.load %arg3[%c0_4, %c0_5] : memref<1x1024xf32, #tpu.memory_space<vmem>>, vector<1x1024xf32>
    %5 = vector.broadcast %4 : vector<1x1024xf32> to vector<64x1024xf32>
    %6 = arith.addf %3, %5 : vector<64x1024xf32>
    %7 = vector.extract_strided_slice %6 {offsets = [0, 0], sizes = [64, 512], strides = [1, 1]} : vector<64x1024xf32> to vector<64x512xf32>
    %c0_6 = arith.constant 0 : index
    %c0_7 = arith.constant 0 : index
    %8 = vector.load %arg10[%c0_6, %c0_7] : memref<64x512xf32, #tpu.memory_space<vmem>>, vector<64x512xf32>
    tpu.vector_store %arg10[%c0_6, %c0_7], %7 {strides = array<i32>} : memref<64x512xf32, #tpu.memory_space<vmem>>, vector<64x512xf32>,
    %9 = vector.extract_strided_slice %6 {offsets = [0, 512], sizes = [64, 512], strides = [1, 1]} : vector<64x1024xf32> to vector<64x512xf32>
    %c0_8 = arith.constant 0 : index
    %c0_9 = arith.constant 0 : index
    %10 = vector.load %arg11[%c0_8, %c0_9] : memref<64x512xf32, #tpu.memory_space<vmem>>, vector<64x512xf32>
    tpu.vector_store %arg11[%c0_8, %c0_9], %9 {strides = array<i32>} : memref<64x512xf32, #tpu.memory_space<vmem>>, vector<64x512xf32>,
    %c0_10 = arith.constant 0 : index
    %c0_11 = arith.constant 0 : index
    %11 = vector.load %arg1[%c0_10, %c0_11] : memref<8x1xi32, #tpu.memory_space<vmem>>, vector<8x1xi32>
    %c0_12 = arith.constant 0 : index
    %c0_13 = arith.constant 0 : index
    %12 = vector.load %arg4[%c0_12, %c0_13] : memref<128x512xbf16, #tpu.memory_space<vmem>>, vector<128x512xbf16>
    %c0_14 = arith.constant 0 : index
    %c0_15 = arith.constant 0 : index
    %13 = vector.load %arg5[%c0_14, %c0_15] : memref<128x512xbf16, #tpu.memory_space<vmem>>, vector<128x512xbf16>
    %cst_16 = arith.constant 0.000000e+00 : f32
    %14 = vector.broadcast %cst_16 : f32 to vector<8x128xf32>
    %cst_17 = arith.constant 0.000000e+00 : f32
    %15 = vector.broadcast %cst_17 : f32 to vector<8x128xf32>
    %c0_i32 = arith.constant 0 : i32
    %c7_i32 = arith.constant 7 : i32
    %16 = arith.subi %c7_i32, %c0_i32 : i32
    %c8_i32 = arith.constant 8 : i32
    %17 = arith.muli %c0_i32, %c8_i32 : i32
    %18 = tpu.assume_multiple %17, 8 : i32
    %c8_i32_18 = arith.constant 8 : i32
    %19 = arith.muli %16, %c8_i32_18 : i32
    %20 = tpu.assume_multiple %19, 8 : i32
    %21 = arith.index_cast %18 : i32 to index
    %c0_19 = arith.constant 0 : index
    %22 = vector.load %arg10[%21, %c0_19] : memref<64x512xf32, #tpu.memory_space<vmem>>, vector<8x512xf32>
    %23 = vector.broadcast %c0_i32 : i32 to vector<8x1xi32>
    %24 = arith.cmpi slt, %23, %11 : vector<8x1xi32>
    %25 = arith.truncf %14 : vector<8x128xf32> to vector<8x128xbf16>
    %cst_20 = arith.constant dense<0.000000e+00> : vector<8x512xf32>
    %26 = tpu.matmul %25, %12, %cst_20 {dimension_numbers = #tpu.dot_dimension_numbers<[1], [0], [0], [1], [0, 0, 1, 1], [], []>} : vector<8x128xbf16>, vector<128x512xbf16>, vector<8x512xf32> -> vector<8x512xf32>
    %27 = arith.addf %22, %26 : vector<8x512xf32>
    %28 = vector.extract_strided_slice %27 {offsets = [0, 0], sizes = [8, 128], strides = [1, 1]} : vector<8x512xf32> to vector<8x128xf32>
    %29 = arith.negf %28 : vector<8x128xf32>
    %30 = math.exp %29 : vector<8x128xf32>
    %cst_21 = arith.constant 1.000000e+00 : f32
    %31 = vector.broadcast %cst_21 : f32 to vector<8x128xf32>
    %32 = arith.addf %31, %30 : vector<8x128xf32>
    %33 = arith.divf %31, %32 : vector<8x128xf32>
    %34 = vector.extract_strided_slice %27 {offsets = [0, 128], sizes = [8, 128], strides = [1, 1]} : vector<8x512xf32> to vector<8x128xf32>
    %35 = arith.negf %34 : vector<8x128xf32>
    %36 = math.exp %35 : vector<8x128xf32>
    %cst_22 = arith.constant 1.000000e+00 : f32
    %37 = vector.broadcast %cst_22 : f32 to vector<8x128xf32>
    %38 = arith.addf %37, %36 : vector<8x128xf32>
    %39 = arith.divf %37, %38 : vector<8x128xf32>
    %40 = vector.extract_strided_slice %27 {offsets = [0, 256], sizes = [8, 128], strides = [1, 1]} : vector<8x512xf32> to vector<8x128xf32>
    %41 = math.tanh %40 : vector<8x128xf32>
    %42 = vector.extract_strided_slice %27 {offsets = [0, 384], sizes = [8, 128], strides = [1, 1]} : vector<8x512xf32> to vector<8x128xf32>
    %43 = arith.negf %42 : vector<8x128xf32>
    %44 = math.exp %43 : vector<8x128xf32>
    %cst_23 = arith.constant 1.000000e+00 : f32
    %45 = vector.broadcast %cst_23 : f32 to vector<8x128xf32>
    %46 = arith.addf %45, %44 : vector<8x128xf32>
    %47 = arith.divf %45, %46 : vector<8x128xf32>
    %48 = arith.mulf %39, %15 : vector<8x128xf32>
    %49 = arith.mulf %33, %41 : vector<8x128xf32>
    %50 = arith.addf %48, %49 : vector<8x128xf32>
    %51 = math.tanh %50 : vector<8x128xf32>
    %52 = arith.mulf %47, %51 : vector<8x128xf32>
    %cst_24 = arith.constant 0.000000e+00 : f32
    %53 = vector.shape_cast %24 : vector<8x1xi1> to vector<8x1xi1>
    %54 = vector.broadcast %53 : vector<8x1xi1> to vector<8x128xi1>
    %55 = vector.broadcast %cst_24 : f32 to vector<8x128xf32>
    %56 = arith.select %54, %52, %55 : vector<8x128xi1>, vector<8x128xf32>
    %57 = vector.shape_cast %24 : vector<8x1xi1> to vector<8x1xi1>
    %58 = vector.broadcast %57 : vector<8x1xi1> to vector<8x128xi1>
    %59 = arith.select %58, %52, %14 : vector<8x128xi1>, vector<8x128xf32>
    %60 = vector.shape_cast %24 : vector<8x1xi1> to vector<8x1xi1>
    %61 = vector.broadcast %60 : vector<8x1xi1> to vector<8x128xi1>
    %62 = arith.select %61, %50, %15 : vector<8x128xi1>, vector<8x128xf32>
    %63 = arith.index_cast %18 : i32 to index
    %c0_25 = arith.constant 0 : index
    %64 = vector.load %arg12[%63, %c0_25] : memref<64x128xf32, #tpu.memory_space<vmem>>, vector<8x128xf32>
    tpu.vector_store %arg12[%63, %c0_25], %56 {strides = array<i32>} : memref<64x128xf32, #tpu.memory_space<vmem>>, vector<8x128xf32>,
    %65 = arith.index_cast %20 : i32 to index
    %c0_26 = arith.constant 0 : index
    %66 = vector.load %arg11[%65, %c0_26] : memref<64x512xf32, #tpu.memory_space<vmem>>, vector<8x512xf32>
    %67 = vector.broadcast %16 : i32 to vector<8x1xi32>
    %68 = arith.cmpi slt, %67, %11 : vector<8x1xi32>
    %69 = arith.truncf %14 : vector<8x128xf32> to vector<8x128xbf16>
    %cst_27 = arith.constant dense<0.000000e+00> : vector<8x512xf32>
    %70 = tpu.matmul %69, %13, %cst_27 {dimension_numbers = #tpu.dot_dimension_numbers<[1], [0], [0], [1], [0, 0, 1, 1], [], []>} : vector<8x128xbf16>, vector<128x512xbf16>, vector<8x512xf32> -> vector<8x512xf32>
    %71 = arith.addf %66, %70 : vector<8x512xf32>
    %72 = vector.extract_strided_slice %71 {offsets = [0, 0], sizes = [8, 128], strides = [1, 1]} : vector<8x512xf32> to vector<8x128xf32>
    %73 = arith.negf %72 : vector<8x128xf32>
    %74 = math.exp %73 : vector<8x128xf32>
    %cst_28 = arith.constant 1.000000e+00 : f32
    %75 = vector.broadcast %cst_28 : f32 to vector<8x128xf32>
    %76 = arith.addf %75, %74 : vector<8x128xf32>
    %77 = arith.divf %75, %76 : vector<8x128xf32>
    %78 = vector.extract_strided_slice %71 {offsets = [0, 128], sizes = [8, 128], strides = [1, 1]} : vector<8x512xf32> to vector<8x128xf32>
    %79 = arith.negf %78 : vector<8x128xf32>
    %80 = math.exp %79 : vector<8x128xf32>
    %cst_29 = arith.constant 1.000000e+00 : f32
    %81 = vector.broadcast %cst_29 : f32 to vector<8x128xf32>
    %82 = arith.addf %81, %80 : vector<8x128xf32>
    %83 = arith.divf %81, %82 : vector<8x128xf32>
    %84 = vector.extract_strided_slice %71 {offsets = [0, 256], sizes = [8, 128], strides = [1, 1]} : vector<8x512xf32> to vector<8x128xf32>
    %85 = math.tanh %84 : vector<8x128xf32>
    %86 = vector.extract_strided_slice %71 {offsets = [0, 384], sizes = [8, 128], strides = [1, 1]} : vector<8x512xf32> to vector<8x128xf32>
    %87 = arith.negf %86 : vector<8x128xf32>
    %88 = math.exp %87 : vector<8x128xf32>
    %cst_30 = arith.constant 1.000000e+00 : f32
    %89 = vector.broadcast %cst_30 : f32 to vector<8x128xf32>
    %90 = arith.addf %89, %88 : vector<8x128xf32>
    %91 = arith.divf %89, %90 : vector<8x128xf32>
    %92 = arith.mulf %83, %15 : vector<8x128xf32>
    %93 = arith.mulf %77, %85 : vector<8x128xf32>
    %94 = arith.addf %92, %93 : vector<8x128xf32>
    %95 = math.tanh %94 : vector<8x128xf32>
    %96 = arith.mulf %91, %95 : vector<8x128xf32>
    %cst_31 = arith.constant 0.000000e+00 : f32
    %97 = vector.shape_cast %68 : vector<8x1xi1> to vector<8x1xi1>
    %98 = vector.broadcast %97 : vector<8x1xi1> to vector<8x128xi1>
    %99 = vector.broadcast %cst_31 : f32 to vector<8x128xf32>
    %100 = arith.select %98, %96, %99 : vector<8x128xi1>, vector<8x128xf32>
    %101 = vector.shape_cast %68 : vector<8x1xi1> to vector<8x1xi1>
    %102 = vector.broadcast %101 : vector<8x1xi1> to vector<8x128xi1>
    %103 = arith.select %102, %96, %14 : vector<8x128xi1>, vector<8x128xf32>
    %104 = vector.shape_cast %68 : vector<8x1xi1> to vector<8x1xi1>
    %105 = vector.broadcast %104 : vector<8x1xi1> to vector<8x128xi1>
    %106 = arith.select %105, %94, %15 : vector<8x128xi1>, vector<8x128xf32>
    %107 = arith.index_cast %20 : i32 to index
    %c0_32 = arith.constant 0 : index
    %108 = vector.load %arg13[%107, %c0_32] : memref<64x128xf32, #tpu.memory_space<vmem>>, vector<8x128xf32>
    tpu.vector_store %arg13[%107, %c0_32], %100 {strides = array<i32>} : memref<64x128xf32, #tpu.memory_space<vmem>>, vector<8x128xf32>,
    %c1_i32 = arith.constant 1 : i32
    %c7_i32_33 = arith.constant 7 : i32
    %109 = arith.subi %c7_i32_33, %c1_i32 : i32
    %c8_i32_34 = arith.constant 8 : i32
    %110 = arith.muli %c1_i32, %c8_i32_34 : i32
    %111 = tpu.assume_multiple %110, 8 : i32
    %c8_i32_35 = arith.constant 8 : i32
    %112 = arith.muli %109, %c8_i32_35 : i32
    %113 = tpu.assume_multiple %112, 8 : i32
    %114 = arith.index_cast %111 : i32 to index
    %c0_36 = arith.constant 0 : index
    %115 = vector.load %arg10[%114, %c0_36] : memref<64x512xf32, #tpu.memory_space<vmem>>, vector<8x512xf32>
    %116 = vector.broadcast %c1_i32 : i32 to vector<8x1xi32>
    %117 = arith.cmpi slt, %116, %11 : vector<8x1xi32>
    %118 = arith.truncf %59 : vector<8x128xf32> to vector<8x128xbf16>
    %cst_37 = arith.constant dense<0.000000e+00> : vector<8x512xf32>
    %119 = tpu.matmul %118, %12, %cst_37 {dimension_numbers = #tpu.dot_dimension_numbers<[1], [0], [0], [1], [0, 0, 1, 1], [], []>} : vector<8x128xbf16>, vector<128x512xbf16>, vector<8x512xf32> -> vector<8x512xf32>
    %120 = arith.addf %115, %119 : vector<8x512xf32>
    %121 = vector.extract_strided_slice %120 {offsets = [0, 0], sizes = [8, 128], strides = [1, 1]} : vector<8x512xf32> to vector<8x128xf32>
    %122 = arith.negf %121 : vector<8x128xf32>
    %123 = math.exp %122 : vector<8x128xf32>
    %cst_38 = arith.constant 1.000000e+00 : f32
    %124 = vector.broadcast %cst_38 : f32 to vector<8x128xf32>
    %125 = arith.addf %124, %123 : vector<8x128xf32>
    %126 = arith.divf %124, %125 : vector<8x128xf32>
    %127 = vector.extract_strided_slice %120 {offsets = [0, 128], sizes = [8, 128], strides = [1, 1]} : vector<8x512xf32> to vector<8x128xf32>
    %128 = arith.negf %127 : vector<8x128xf32>
    %129 = math.exp %128 : vector<8x128xf32>
    %cst_39 = arith.constant 1.000000e+00 : f32
    %130 = vector.broadcast %cst_39 : f32 to vector<8x128xf32>
    %131 = arith.addf %130, %129 : vector<8x128xf32>
    %132 = arith.divf %130, %131 : vector<8x128xf32>
    %133 = vector.extract_strided_slice %120 {offsets = [0, 256], sizes = [8, 128], strides = [1, 1]} : vector<8x512xf32> to vector<8x128xf32>
    %134 = math.tanh %133 : vector<8x128xf32>
    %135 = vector.extract_strided_slice %120 {offsets = [0, 384], sizes = [8, 128], strides = [1, 1]} : vector<8x512xf32> to vector<8x128xf32>
    %136 = arith.negf %135 : vector<8x128xf32>
    %137 = math.exp %136 : vector<8x128xf32>
    %cst_40 = arith.constant 1.000000e+00 : f32
    %138 = vector.broadcast %cst_40 : f32 to vector<8x128xf32>
    %139 = arith.addf %138, %137 : vector<8x128xf32>
    %140 = arith.divf %138, %139 : vector<8x128xf32>
    %141 = arith.mulf %132, %62 : vector<8x128xf32>
    %142 = arith.mulf %126, %134 : vector<8x128xf32>
    %143 = arith.addf %141, %142 : vector<8x128xf32>
    %144 = math.tanh %143 : vector<8x128xf32>
    %145 = arith.mulf %140, %144 : vector<8x128xf32>
    %cst_41 = arith.constant 0.000000e+00 : f32
    %146 = vector.shape_cast %117 : vector<8x1xi1> to vector<8x1xi1>
    %147 = vector.broadcast %146 : vector<8x1xi1> to vector<8x128xi1>
    %148 = vector.broadcast %cst_41 : f32 to vector<8x128xf32>
    %149 = arith.select %147, %145, %148 : vector<8x128xi1>, vector<8x128xf32>
    %150 = vector.shape_cast %117 : vector<8x1xi1> to vector<8x1xi1>
    %151 = vector.broadcast %150 : vector<8x1xi1> to vector<8x128xi1>
    %152 = arith.select %151, %145, %59 : vector<8x128xi1>, vector<8x128xf32>
    %153 = vector.shape_cast %117 : vector<8x1xi1> to vector<8x1xi1>
    %154 = vector.broadcast %153 : vector<8x1xi1> to vector<8x128xi1>
    %155 = arith.select %154, %143, %62 : vector<8x128xi1>, vector<8x128xf32>
    %156 = arith.index_cast %111 : i32 to index
    %c0_42 = arith.constant 0 : index
    %157 = vector.load %arg12[%156, %c0_42] : memref<64x128xf32, #tpu.memory_space<vmem>>, vector<8x128xf32>
    tpu.vector_store %arg12[%156, %c0_42], %149 {strides = array<i32>} : memref<64x128xf32, #tpu.memory_space<vmem>>, vector<8x128xf32>,
    %158 = arith.index_cast %113 : i32 to index
    %c0_43 = arith.constant 0 : index
    %159 = vector.load %arg11[%158, %c0_43] : memref<64x512xf32, #tpu.memory_space<vmem>>, vector<8x512xf32>
    %160 = vector.broadcast %109 : i32 to vector<8x1xi32>
    %161 = arith.cmpi slt, %160, %11 : vector<8x1xi32>
    %162 = arith.truncf %103 : vector<8x128xf32> to vector<8x128xbf16>
    %cst_44 = arith.constant dense<0.000000e+00> : vector<8x512xf32>
    %163 = tpu.matmul %162, %13, %cst_44 {dimension_numbers = #tpu.dot_dimension_numbers<[1], [0], [0], [1], [0, 0, 1, 1], [], []>} : vector<8x128xbf16>, vector<128x512xbf16>, vector<8x512xf32> -> vector<8x512xf32>
    %164 = arith.addf %159, %163 : vector<8x512xf32>
    %165 = vector.extract_strided_slice %164 {offsets = [0, 0], sizes = [8, 128], strides = [1, 1]} : vector<8x512xf32> to vector<8x128xf32>
    %166 = arith.negf %165 : vector<8x128xf32>
    %167 = math.exp %166 : vector<8x128xf32>
    %cst_45 = arith.constant 1.000000e+00 : f32
    %168 = vector.broadcast %cst_45 : f32 to vector<8x128xf32>
    %169 = arith.addf %168, %167 : vector<8x128xf32>
    %170 = arith.divf %168, %169 : vector<8x128xf32>
    %171 = vector.extract_strided_slice %164 {offsets = [0, 128], sizes = [8, 128], strides = [1, 1]} : vector<8x512xf32> to vector<8x128xf32>
    %172 = arith.negf %171 : vector<8x128xf32>
    %173 = math.exp %172 : vector<8x128xf32>
    %cst_46 = arith.constant 1.000000e+00 : f32
    %174 = vector.broadcast %cst_46 : f32 to vector<8x128xf32>
    %175 = arith.addf %174, %173 : vector<8x128xf32>
    %176 = arith.divf %174, %175 : vector<8x128xf32>
    %177 = vector.extract_strided_slice %164 {offsets = [0, 256], sizes = [8, 128], strides = [1, 1]} : vector<8x512xf32> to vector<8x128xf32>
    %178 = math.tanh %177 : vector<8x128xf32>
    %179 = vector.extract_strided_slice %164 {offsets = [0, 384], sizes = [8, 128], strides = [1, 1]} : vector<8x512xf32> to vector<8x128xf32>
    %180 = arith.negf %179 : vector<8x128xf32>
    %181 = math.exp %180 : vector<8x128xf32>
    %cst_47 = arith.constant 1.000000e+00 : f32
    %182 = vector.broadcast %cst_47 : f32 to vector<8x128xf32>
    %183 = arith.addf %182, %181 : vector<8x128xf32>
    %184 = arith.divf %182, %183 : vector<8x128xf32>
    %185 = arith.mulf %176, %106 : vector<8x128xf32>
    %186 = arith.mulf %170, %178 : vector<8x128xf32>
    %187 = arith.addf %185, %186 : vector<8x128xf32>
    %188 = math.tanh %187 : vector<8x128xf32>
    %189 = arith.mulf %184, %188 : vector<8x128xf32>
    %cst_48 = arith.constant 0.000000e+00 : f32
    %190 = vector.shape_cast %161 : vector<8x1xi1> to vector<8x1xi1>
    %191 = vector.broadcast %190 : vector<8x1xi1> to vector<8x128xi1>
    %192 = vector.broadcast %cst_48 : f32 to vector<8x128xf32>
    %193 = arith.select %191, %189, %192 : vector<8x128xi1>, vector<8x128xf32>
    %194 = vector.shape_cast %161 : vector<8x1xi1> to vector<8x1xi1>
    %195 = vector.broadcast %194 : vector<8x1xi1> to vector<8x128xi1>
    %196 = arith.select %195, %189, %103 : vector<8x128xi1>, vector<8x128xf32>
    %197 = vector.shape_cast %161 : vector<8x1xi1> to vector<8x1xi1>
    %198 = vector.broadcast %197 : vector<8x1xi1> to vector<8x128xi1>
    %199 = arith.select %198, %187, %106 : vector<8x128xi1>, vector<8x128xf32>
    %200 = arith.index_cast %113 : i32 to index
    %c0_49 = arith.constant 0 : index
    %201 = vector.load %arg13[%200, %c0_49] : memref<64x128xf32, #tpu.memory_space<vmem>>, vector<8x128xf32>
    tpu.vector_store %arg13[%200, %c0_49], %193 {strides = array<i32>} : memref<64x128xf32, #tpu.memory_space<vmem>>, vector<8x128xf32>,
    %c2_i32 = arith.constant 2 : i32
    %c7_i32_50 = arith.constant 7 : i32
    %202 = arith.subi %c7_i32_50, %c2_i32 : i32
    %c8_i32_51 = arith.constant 8 : i32
    %203 = arith.muli %c2_i32, %c8_i32_51 : i32
    %204 = tpu.assume_multiple %203, 8 : i32
    %c8_i32_52 = arith.constant 8 : i32
    %205 = arith.muli %202, %c8_i32_52 : i32
    %206 = tpu.assume_multiple %205, 8 : i32
    %207 = arith.index_cast %204 : i32 to index
    %c0_53 = arith.constant 0 : index
    %208 = vector.load %arg10[%207, %c0_53] : memref<64x512xf32, #tpu.memory_space<vmem>>, vector<8x512xf32>
    %209 = vector.broadcast %c2_i32 : i32 to vector<8x1xi32>
    %210 = arith.cmpi slt, %209, %11 : vector<8x1xi32>
    %211 = arith.truncf %152 : vector<8x128xf32> to vector<8x128xbf16>
    %cst_54 = arith.constant dense<0.000000e+00> : vector<8x512xf32>
    %212 = tpu.matmul %211, %12, %cst_54 {dimension_numbers = #tpu.dot_dimension_numbers<[1], [0], [0], [1], [0, 0, 1, 1], [], []>} : vector<8x128xbf16>, vector<128x512xbf16>, vector<8x512xf32> -> vector<8x512xf32>
    %213 = arith.addf %208, %212 : vector<8x512xf32>
    %214 = vector.extract_strided_slice %213 {offsets = [0, 0], sizes = [8, 128], strides = [1, 1]} : vector<8x512xf32> to vector<8x128xf32>
    %215 = arith.negf %214 : vector<8x128xf32>
    %216 = math.exp %215 : vector<8x128xf32>
    %cst_55 = arith.constant 1.000000e+00 : f32
    %217 = vector.broadcast %cst_55 : f32 to vector<8x128xf32>
    %218 = arith.addf %217, %216 : vector<8x128xf32>
    %219 = arith.divf %217, %218 : vector<8x128xf32>
    %220 = vector.extract_strided_slice %213 {offsets = [0, 128], sizes = [8, 128], strides = [1, 1]} : vector<8x512xf32> to vector<8x128xf32>
    %221 = arith.negf %220 : vector<8x128xf32>
    %222 = math.exp %221 : vector<8x128xf32>
    %cst_56 = arith.constant 1.000000e+00 : f32
    %223 = vector.broadcast %cst_56 : f32 to vector<8x128xf32>
    %224 = arith.addf %223, %222 : vector<8x128xf32>
    %225 = arith.divf %223, %224 : vector<8x128xf32>
    %226 = vector.extract_strided_slice %213 {offsets = [0, 256], sizes = [8, 128], strides = [1, 1]} : vector<8x512xf32> to vector<8x128xf32>
    %227 = math.tanh %226 : vector<8x128xf32>
    %228 = vector.extract_strided_slice %213 {offsets = [0, 384], sizes = [8, 128], strides = [1, 1]} : vector<8x512xf32> to vector<8x128xf32>
    %229 = arith.negf %228 : vector<8x128xf32>
    %230 = math.exp %229 : vector<8x128xf32>
    %cst_57 = arith.constant 1.000000e+00 : f32
    %231 = vector.broadcast %cst_57 : f32 to vector<8x128xf32>
    %232 = arith.addf %231, %230 : vector<8x128xf32>
    %233 = arith.divf %231, %232 : vector<8x128xf32>
    %234 = arith.mulf %225, %155 : vector<8x128xf32>
    %235 = arith.mulf %219, %227 : vector<8x128xf32>
    %236 = arith.addf %234, %235 : vector<8x128xf32>
    %237 = math.tanh %236 : vector<8x128xf32>
    %238 = arith.mulf %233, %237 : vector<8x128xf32>
    %cst_58 = arith.constant 0.000000e+00 : f32
    %239 = vector.shape_cast %210 : vector<8x1xi1> to vector<8x1xi1>
    %240 = vector.broadcast %239 : vector<8x1xi1> to vector<8x128xi1>
    %241 = vector.broadcast %cst_58 : f32 to vector<8x128xf32>
    %242 = arith.select %240, %238, %241 : vector<8x128xi1>, vector<8x128xf32>
    %243 = vector.shape_cast %210 : vector<8x1xi1> to vector<8x1xi1>
    %244 = vector.broadcast %243 : vector<8x1xi1> to vector<8x128xi1>
    %245 = arith.select %244, %238, %152 : vector<8x128xi1>, vector<8x128xf32>
    %246 = vector.shape_cast %210 : vector<8x1xi1> to vector<8x1xi1>
    %247 = vector.broadcast %246 : vector<8x1xi1> to vector<8x128xi1>
    %248 = arith.select %247, %236, %155 : vector<8x128xi1>, vector<8x128xf32>
    %249 = arith.index_cast %204 : i32 to index
    %c0_59 = arith.constant 0 : index
    %250 = vector.load %arg12[%249, %c0_59] : memref<64x128xf32, #tpu.memory_space<vmem>>, vector<8x128xf32>
    tpu.vector_store %arg12[%249, %c0_59], %242 {strides = array<i32>} : memref<64x128xf32, #tpu.memory_space<vmem>>, vector<8x128xf32>,
    %251 = arith.index_cast %206 : i32 to index
    %c0_60 = arith.constant 0 : index
    %252 = vector.load %arg11[%251, %c0_60] : memref<64x512xf32, #tpu.memory_space<vmem>>, vector<8x512xf32>
    %253 = vector.broadcast %202 : i32 to vector<8x1xi32>
    %254 = arith.cmpi slt, %253, %11 : vector<8x1xi32>
    %255 = arith.truncf %196 : vector<8x128xf32> to vector<8x128xbf16>
    %cst_61 = arith.constant dense<0.000000e+00> : vector<8x512xf32>
    %256 = tpu.matmul %255, %13, %cst_61 {dimension_numbers = #tpu.dot_dimension_numbers<[1], [0], [0], [1], [0, 0, 1, 1], [], []>} : vector<8x128xbf16>, vector<128x512xbf16>, vector<8x512xf32> -> vector<8x512xf32>
    %257 = arith.addf %252, %256 : vector<8x512xf32>
    %258 = vector.extract_strided_slice %257 {offsets = [0, 0], sizes = [8, 128], strides = [1, 1]} : vector<8x512xf32> to vector<8x128xf32>
    %259 = arith.negf %258 : vector<8x128xf32>
    %260 = math.exp %259 : vector<8x128xf32>
    %cst_62 = arith.constant 1.000000e+00 : f32
    %261 = vector.broadcast %cst_62 : f32 to vector<8x128xf32>
    %262 = arith.addf %261, %260 : vector<8x128xf32>
    %263 = arith.divf %261, %262 : vector<8x128xf32>
    %264 = vector.extract_strided_slice %257 {offsets = [0, 128], sizes = [8, 128], strides = [1, 1]} : vector<8x512xf32> to vector<8x128xf32>
    %265 = arith.negf %264 : vector<8x128xf32>
    %266 = math.exp %265 : vector<8x128xf32>
    %cst_63 = arith.constant 1.000000e+00 : f32
    %267 = vector.broadcast %cst_63 : f32 to vector<8x128xf32>
    %268 = arith.addf %267, %266 : vector<8x128xf32>
    %269 = arith.divf %267, %268 : vector<8x128xf32>
    %270 = vector.extract_strided_slice %257 {offsets = [0, 256], sizes = [8, 128], strides = [1, 1]} : vector<8x512xf32> to vector<8x128xf32>
    %271 = math.tanh %270 : vector<8x128xf32>
    %272 = vector.extract_strided_slice %257 {offsets = [0, 384], sizes = [8, 128], strides = [1, 1]} : vector<8x512xf32> to vector<8x128xf32>
    %273 = arith.negf %272 : vector<8x128xf32>
    %274 = math.exp %273 : vector<8x128xf32>
    %cst_64 = arith.constant 1.000000e+00 : f32
    %275 = vector.broadcast %cst_64 : f32 to vector<8x128xf32>
    %276 = arith.addf %275, %274 : vector<8x128xf32>
    %277 = arith.divf %275, %276 : vector<8x128xf32>
    %278 = arith.mulf %269, %199 : vector<8x128xf32>
    %279 = arith.mulf %263, %271 : vector<8x128xf32>
    %280 = arith.addf %278, %279 : vector<8x128xf32>
    %281 = math.tanh %280 : vector<8x128xf32>
    %282 = arith.mulf %277, %281 : vector<8x128xf32>
    %cst_65 = arith.constant 0.000000e+00 : f32
    %283 = vector.shape_cast %254 : vector<8x1xi1> to vector<8x1xi1>
    %284 = vector.broadcast %283 : vector<8x1xi1> to vector<8x128xi1>
    %285 = vector.broadcast %cst_65 : f32 to vector<8x128xf32>
    %286 = arith.select %284, %282, %285 : vector<8x128xi1>, vector<8x128xf32>
    %287 = vector.shape_cast %254 : vector<8x1xi1> to vector<8x1xi1>
    %288 = vector.broadcast %287 : vector<8x1xi1> to vector<8x128xi1>
    %289 = arith.select %288, %282, %196 : vector<8x128xi1>, vector<8x128xf32>
    %290 = vector.shape_cast %254 : vector<8x1xi1> to vector<8x1xi1>
    %291 = vector.broadcast %290 : vector<8x1xi1> to vector<8x128xi1>
    %292 = arith.select %291, %280, %199 : vector<8x128xi1>, vector<8x128xf32>
    %293 = arith.index_cast %206 : i32 to index
    %c0_66 = arith.constant 0 : index
    %294 = vector.load %arg13[%293, %c0_66] : memref<64x128xf32, #tpu.memory_space<vmem>>, vector<8x128xf32>
    tpu.vector_store %arg13[%293, %c0_66], %286 {strides = array<i32>} : memref<64x128xf32, #tpu.memory_space<vmem>>, vector<8x128xf32>,
    %c3_i32 = arith.constant 3 : i32
    %c7_i32_67 = arith.constant 7 : i32
    %295 = arith.subi %c7_i32_67, %c3_i32 : i32
    %c8_i32_68 = arith.constant 8 : i32
    %296 = arith.muli %c3_i32, %c8_i32_68 : i32
    %297 = tpu.assume_multiple %296, 8 : i32
    %c8_i32_69 = arith.constant 8 : i32
    %298 = arith.muli %295, %c8_i32_69 : i32
    %299 = tpu.assume_multiple %298, 8 : i32
    %300 = arith.index_cast %297 : i32 to index
    %c0_70 = arith.constant 0 : index
    %301 = vector.load %arg10[%300, %c0_70] : memref<64x512xf32, #tpu.memory_space<vmem>>, vector<8x512xf32>
    %302 = vector.broadcast %c3_i32 : i32 to vector<8x1xi32>
    %303 = arith.cmpi slt, %302, %11 : vector<8x1xi32>
    %304 = arith.truncf %245 : vector<8x128xf32> to vector<8x128xbf16>
    %cst_71 = arith.constant dense<0.000000e+00> : vector<8x512xf32>
    %305 = tpu.matmul %304, %12, %cst_71 {dimension_numbers = #tpu.dot_dimension_numbers<[1], [0], [0], [1], [0, 0, 1, 1], [], []>} : vector<8x128xbf16>, vector<128x512xbf16>, vector<8x512xf32> -> vector<8x512xf32>
    %306 = arith.addf %301, %305 : vector<8x512xf32>
    %307 = vector.extract_strided_slice %306 {offsets = [0, 0], sizes = [8, 128], strides = [1, 1]} : vector<8x512xf32> to vector<8x128xf32>
    %308 = arith.negf %307 : vector<8x128xf32>
    %309 = math.exp %308 : vector<8x128xf32>
    %cst_72 = arith.constant 1.000000e+00 : f32
    %310 = vector.broadcast %cst_72 : f32 to vector<8x128xf32>
    %311 = arith.addf %310, %309 : vector<8x128xf32>
    %312 = arith.divf %310, %311 : vector<8x128xf32>
    %313 = vector.extract_strided_slice %306 {offsets = [0, 128], sizes = [8, 128], strides = [1, 1]} : vector<8x512xf32> to vector<8x128xf32>
    %314 = arith.negf %313 : vector<8x128xf32>
    %315 = math.exp %314 : vector<8x128xf32>
    %cst_73 = arith.constant 1.000000e+00 : f32
    %316 = vector.broadcast %cst_73 : f32 to vector<8x128xf32>
    %317 = arith.addf %316, %315 : vector<8x128xf32>
    %318 = arith.divf %316, %317 : vector<8x128xf32>
    %319 = vector.extract_strided_slice %306 {offsets = [0, 256], sizes = [8, 128], strides = [1, 1]} : vector<8x512xf32> to vector<8x128xf32>
    %320 = math.tanh %319 : vector<8x128xf32>
    %321 = vector.extract_strided_slice %306 {offsets = [0, 384], sizes = [8, 128], strides = [1, 1]} : vector<8x512xf32> to vector<8x128xf32>
    %322 = arith.negf %321 : vector<8x128xf32>
    %323 = math.exp %322 : vector<8x128xf32>
    %cst_74 = arith.constant 1.000000e+00 : f32
    %324 = vector.broadcast %cst_74 : f32 to vector<8x128xf32>
    %325 = arith.addf %324, %323 : vector<8x128xf32>
    %326 = arith.divf %324, %325 : vector<8x128xf32>
    %327 = arith.mulf %318, %248 : vector<8x128xf32>
    %328 = arith.mulf %312, %320 : vector<8x128xf32>
    %329 = arith.addf %327, %328 : vector<8x128xf32>
    %330 = math.tanh %329 : vector<8x128xf32>
    %331 = arith.mulf %326, %330 : vector<8x128xf32>
    %cst_75 = arith.constant 0.000000e+00 : f32
    %332 = vector.shape_cast %303 : vector<8x1xi1> to vector<8x1xi1>
    %333 = vector.broadcast %332 : vector<8x1xi1> to vector<8x128xi1>
    %334 = vector.broadcast %cst_75 : f32 to vector<8x128xf32>
    %335 = arith.select %333, %331, %334 : vector<8x128xi1>, vector<8x128xf32>
    %336 = vector.shape_cast %303 : vector<8x1xi1> to vector<8x1xi1>
    %337 = vector.broadcast %336 : vector<8x1xi1> to vector<8x128xi1>
    %338 = arith.select %337, %331, %245 : vector<8x128xi1>, vector<8x128xf32>
    %339 = vector.shape_cast %303 : vector<8x1xi1> to vector<8x1xi1>
    %340 = vector.broadcast %339 : vector<8x1xi1> to vector<8x128xi1>
    %341 = arith.select %340, %329, %248 : vector<8x128xi1>, vector<8x128xf32>
    %342 = arith.index_cast %297 : i32 to index
    %c0_76 = arith.constant 0 : index
    %343 = vector.load %arg12[%342, %c0_76] : memref<64x128xf32, #tpu.memory_space<vmem>>, vector<8x128xf32>
    tpu.vector_store %arg12[%342, %c0_76], %335 {strides = array<i32>} : memref<64x128xf32, #tpu.memory_space<vmem>>, vector<8x128xf32>,
    %344 = arith.index_cast %299 : i32 to index
    %c0_77 = arith.constant 0 : index
    %345 = vector.load %arg11[%344, %c0_77] : memref<64x512xf32, #tpu.memory_space<vmem>>, vector<8x512xf32>
    %346 = vector.broadcast %295 : i32 to vector<8x1xi32>
    %347 = arith.cmpi slt, %346, %11 : vector<8x1xi32>
    %348 = arith.truncf %289 : vector<8x128xf32> to vector<8x128xbf16>
    %cst_78 = arith.constant dense<0.000000e+00> : vector<8x512xf32>
    %349 = tpu.matmul %348, %13, %cst_78 {dimension_numbers = #tpu.dot_dimension_numbers<[1], [0], [0], [1], [0, 0, 1, 1], [], []>} : vector<8x128xbf16>, vector<128x512xbf16>, vector<8x512xf32> -> vector<8x512xf32>
    %350 = arith.addf %345, %349 : vector<8x512xf32>
    %351 = vector.extract_strided_slice %350 {offsets = [0, 0], sizes = [8, 128], strides = [1, 1]} : vector<8x512xf32> to vector<8x128xf32>
    %352 = arith.negf %351 : vector<8x128xf32>
    %353 = math.exp %352 : vector<8x128xf32>
    %cst_79 = arith.constant 1.000000e+00 : f32
    %354 = vector.broadcast %cst_79 : f32 to vector<8x128xf32>
    %355 = arith.addf %354, %353 : vector<8x128xf32>
    %356 = arith.divf %354, %355 : vector<8x128xf32>
    %357 = vector.extract_strided_slice %350 {offsets = [0, 128], sizes = [8, 128], strides = [1, 1]} : vector<8x512xf32> to vector<8x128xf32>
    %358 = arith.negf %357 : vector<8x128xf32>
    %359 = math.exp %358 : vector<8x128xf32>
    %cst_80 = arith.constant 1.000000e+00 : f32
    %360 = vector.broadcast %cst_80 : f32 to vector<8x128xf32>
    %361 = arith.addf %360, %359 : vector<8x128xf32>
    %362 = arith.divf %360, %361 : vector<8x128xf32>
    %363 = vector.extract_strided_slice %350 {offsets = [0, 256], sizes = [8, 128], strides = [1, 1]} : vector<8x512xf32> to vector<8x128xf32>
    %364 = math.tanh %363 : vector<8x128xf32>
    %365 = vector.extract_strided_slice %350 {offsets = [0, 384], sizes = [8, 128], strides = [1, 1]} : vector<8x512xf32> to vector<8x128xf32>
    %366 = arith.negf %365 : vector<8x128xf32>
    %367 = math.exp %366 : vector<8x128xf32>
    %cst_81 = arith.constant 1.000000e+00 : f32
    %368 = vector.broadcast %cst_81 : f32 to vector<8x128xf32>
    %369 = arith.addf %368, %367 : vector<8x128xf32>
    %370 = arith.divf %368, %369 : vector<8x128xf32>
    %371 = arith.mulf %362, %292 : vector<8x128xf32>
    %372 = arith.mulf %356, %364 : vector<8x128xf32>
    %373 = arith.addf %371, %372 : vector<8x128xf32>
    %374 = math.tanh %373 : vector<8x128xf32>
    %375 = arith.mulf %370, %374 : vector<8x128xf32>
    %cst_82 = arith.constant 0.000000e+00 : f32
    %376 = vector.shape_cast %347 : vector<8x1xi1> to vector<8x1xi1>
    %377 = vector.broadcast %376 : vector<8x1xi1> to vector<8x128xi1>
    %378 = vector.broadcast %cst_82 : f32 to vector<8x128xf32>
    %379 = arith.select %377, %375, %378 : vector<8x128xi1>, vector<8x128xf32>
    %380 = vector.shape_cast %347 : vector<8x1xi1> to vector<8x1xi1>
    %381 = vector.broadcast %380 : vector<8x1xi1> to vector<8x128xi1>
    %382 = arith.select %381, %375, %289 : vector<8x128xi1>, vector<8x128xf32>
    %383 = vector.shape_cast %347 : vector<8x1xi1> to vector<8x1xi1>
    %384 = vector.broadcast %383 : vector<8x1xi1> to vector<8x128xi1>
    %385 = arith.select %384, %373, %292 : vector<8x128xi1>, vector<8x128xf32>
    %386 = arith.index_cast %299 : i32 to index
    %c0_83 = arith.constant 0 : index
    %387 = vector.load %arg13[%386, %c0_83] : memref<64x128xf32, #tpu.memory_space<vmem>>, vector<8x128xf32>
    tpu.vector_store %arg13[%386, %c0_83], %379 {strides = array<i32>} : memref<64x128xf32, #tpu.memory_space<vmem>>, vector<8x128xf32>,
    %c4_i32 = arith.constant 4 : i32
    %c7_i32_84 = arith.constant 7 : i32
    %388 = arith.subi %c7_i32_84, %c4_i32 : i32
    %c8_i32_85 = arith.constant 8 : i32
    %389 = arith.muli %c4_i32, %c8_i32_85 : i32
    %390 = tpu.assume_multiple %389, 8 : i32
    %c8_i32_86 = arith.constant 8 : i32
    %391 = arith.muli %388, %c8_i32_86 : i32
    %392 = tpu.assume_multiple %391, 8 : i32
    %393 = arith.index_cast %390 : i32 to index
    %c0_87 = arith.constant 0 : index
    %394 = vector.load %arg10[%393, %c0_87] : memref<64x512xf32, #tpu.memory_space<vmem>>, vector<8x512xf32>
    %395 = vector.broadcast %c4_i32 : i32 to vector<8x1xi32>
    %396 = arith.cmpi slt, %395, %11 : vector<8x1xi32>
    %397 = arith.truncf %338 : vector<8x128xf32> to vector<8x128xbf16>
    %cst_88 = arith.constant dense<0.000000e+00> : vector<8x512xf32>
    %398 = tpu.matmul %397, %12, %cst_88 {dimension_numbers = #tpu.dot_dimension_numbers<[1], [0], [0], [1], [0, 0, 1, 1], [], []>} : vector<8x128xbf16>, vector<128x512xbf16>, vector<8x512xf32> -> vector<8x512xf32>
    %399 = arith.addf %394, %398 : vector<8x512xf32>
    %400 = vector.extract_strided_slice %399 {offsets = [0, 0], sizes = [8, 128], strides = [1, 1]} : vector<8x512xf32> to vector<8x128xf32>
    %401 = arith.negf %400 : vector<8x128xf32>
    %402 = math.exp %401 : vector<8x128xf32>
    %cst_89 = arith.constant 1.000000e+00 : f32
    %403 = vector.broadcast %cst_89 : f32 to vector<8x128xf32>
    %404 = arith.addf %403, %402 : vector<8x128xf32>
    %405 = arith.divf %403, %404 : vector<8x128xf32>
    %406 = vector.extract_strided_slice %399 {offsets = [0, 128], sizes = [8, 128], strides = [1, 1]} : vector<8x512xf32> to vector<8x128xf32>
    %407 = arith.negf %406 : vector<8x128xf32>
    %408 = math.exp %407 : vector<8x128xf32>
    %cst_90 = arith.constant 1.000000e+00 : f32
    %409 = vector.broadcast %cst_90 : f32 to vector<8x128xf32>
    %410 = arith.addf %409, %408 : vector<8x128xf32>
    %411 = arith.divf %409, %410 : vector<8x128xf32>
    %412 = vector.extract_strided_slice %399 {offsets = [0, 256], sizes = [8, 128], strides = [1, 1]} : vector<8x512xf32> to vector<8x128xf32>
    %413 = math.tanh %412 : vector<8x128xf32>
    %414 = vector.extract_strided_slice %399 {offsets = [0, 384], sizes = [8, 128], strides = [1, 1]} : vector<8x512xf32> to vector<8x128xf32>
    %415 = arith.negf %414 : vector<8x128xf32>
    %416 = math.exp %415 : vector<8x128xf32>
    %cst_91 = arith.constant 1.000000e+00 : f32
    %417 = vector.broadcast %cst_91 : f32 to vector<8x128xf32>
    %418 = arith.addf %417, %416 : vector<8x128xf32>
    %419 = arith.divf %417, %418 : vector<8x128xf32>
    %420 = arith.mulf %411, %341 : vector<8x128xf32>
    %421 = arith.mulf %405, %413 : vector<8x128xf32>
    %422 = arith.addf %420, %421 : vector<8x128xf32>
    %423 = math.tanh %422 : vector<8x128xf32>
    %424 = arith.mulf %419, %423 : vector<8x128xf32>
    %cst_92 = arith.constant 0.000000e+00 : f32
    %425 = vector.shape_cast %396 : vector<8x1xi1> to vector<8x1xi1>
    %426 = vector.broadcast %425 : vector<8x1xi1> to vector<8x128xi1>
    %427 = vector.broadcast %cst_92 : f32 to vector<8x128xf32>
    %428 = arith.select %426, %424, %427 : vector<8x128xi1>, vector<8x128xf32>
    %429 = vector.shape_cast %396 : vector<8x1xi1> to vector<8x1xi1>
    %430 = vector.broadcast %429 : vector<8x1xi1> to vector<8x128xi1>
    %431 = arith.select %430, %424, %338 : vector<8x128xi1>, vector<8x128xf32>
    %432 = vector.shape_cast %396 : vector<8x1xi1> to vector<8x1xi1>
    %433 = vector.broadcast %432 : vector<8x1xi1> to vector<8x128xi1>
    %434 = arith.select %433, %422, %341 : vector<8x128xi1>, vector<8x128xf32>
    %435 = arith.index_cast %390 : i32 to index
    %c0_93 = arith.constant 0 : index
    %436 = vector.load %arg12[%435, %c0_93] : memref<64x128xf32, #tpu.memory_space<vmem>>, vector<8x128xf32>
    tpu.vector_store %arg12[%435, %c0_93], %428 {strides = array<i32>} : memref<64x128xf32, #tpu.memory_space<vmem>>, vector<8x128xf32>,
    %437 = arith.index_cast %392 : i32 to index
    %c0_94 = arith.constant 0 : index
    %438 = vector.load %arg11[%437, %c0_94] : memref<64x512xf32, #tpu.memory_space<vmem>>, vector<8x512xf32>
    %439 = vector.broadcast %388 : i32 to vector<8x1xi32>
    %440 = arith.cmpi slt, %439, %11 : vector<8x1xi32>
    %441 = arith.truncf %382 : vector<8x128xf32> to vector<8x128xbf16>
    %cst_95 = arith.constant dense<0.000000e+00> : vector<8x512xf32>
    %442 = tpu.matmul %441, %13, %cst_95 {dimension_numbers = #tpu.dot_dimension_numbers<[1], [0], [0], [1], [0, 0, 1, 1], [], []>} : vector<8x128xbf16>, vector<128x512xbf16>, vector<8x512xf32> -> vector<8x512xf32>
    %443 = arith.addf %438, %442 : vector<8x512xf32>
    %444 = vector.extract_strided_slice %443 {offsets = [0, 0], sizes = [8, 128], strides = [1, 1]} : vector<8x512xf32> to vector<8x128xf32>
    %445 = arith.negf %444 : vector<8x128xf32>
    %446 = math.exp %445 : vector<8x128xf32>
    %cst_96 = arith.constant 1.000000e+00 : f32
    %447 = vector.broadcast %cst_96 : f32 to vector<8x128xf32>
    %448 = arith.addf %447, %446 : vector<8x128xf32>
    %449 = arith.divf %447, %448 : vector<8x128xf32>
    %450 = vector.extract_strided_slice %443 {offsets = [0, 128], sizes = [8, 128], strides = [1, 1]} : vector<8x512xf32> to vector<8x128xf32>
    %451 = arith.negf %450 : vector<8x128xf32>
    %452 = math.exp %451 : vector<8x128xf32>
    %cst_97 = arith.constant 1.000000e+00 : f32
    %453 = vector.broadcast %cst_97 : f32 to vector<8x128xf32>
    %454 = arith.addf %453, %452 : vector<8x128xf32>
    %455 = arith.divf %453, %454 : vector<8x128xf32>
    %456 = vector.extract_strided_slice %443 {offsets = [0, 256], sizes = [8, 128], strides = [1, 1]} : vector<8x512xf32> to vector<8x128xf32>
    %457 = math.tanh %456 : vector<8x128xf32>
    %458 = vector.extract_strided_slice %443 {offsets = [0, 384], sizes = [8, 128], strides = [1, 1]} : vector<8x512xf32> to vector<8x128xf32>
    %459 = arith.negf %458 : vector<8x128xf32>
    %460 = math.exp %459 : vector<8x128xf32>
    %cst_98 = arith.constant 1.000000e+00 : f32
    %461 = vector.broadcast %cst_98 : f32 to vector<8x128xf32>
    %462 = arith.addf %461, %460 : vector<8x128xf32>
    %463 = arith.divf %461, %462 : vector<8x128xf32>
    %464 = arith.mulf %455, %385 : vector<8x128xf32>
    %465 = arith.mulf %449, %457 : vector<8x128xf32>
    %466 = arith.addf %464, %465 : vector<8x128xf32>
    %467 = math.tanh %466 : vector<8x128xf32>
    %468 = arith.mulf %463, %467 : vector<8x128xf32>
    %cst_99 = arith.constant 0.000000e+00 : f32
    %469 = vector.shape_cast %440 : vector<8x1xi1> to vector<8x1xi1>
    %470 = vector.broadcast %469 : vector<8x1xi1> to vector<8x128xi1>
    %471 = vector.broadcast %cst_99 : f32 to vector<8x128xf32>
    %472 = arith.select %470, %468, %471 : vector<8x128xi1>, vector<8x128xf32>
    %473 = vector.shape_cast %440 : vector<8x1xi1> to vector<8x1xi1>
    %474 = vector.broadcast %473 : vector<8x1xi1> to vector<8x128xi1>
    %475 = arith.select %474, %468, %382 : vector<8x128xi1>, vector<8x128xf32>
    %476 = vector.shape_cast %440 : vector<8x1xi1> to vector<8x1xi1>
    %477 = vector.broadcast %476 : vector<8x1xi1> to vector<8x128xi1>
    %478 = arith.select %477, %466, %385 : vector<8x128xi1>, vector<8x128xf32>
    %479 = arith.index_cast %392 : i32 to index
    %c0_100 = arith.constant 0 : index
    %480 = vector.load %arg13[%479, %c0_100] : memref<64x128xf32, #tpu.memory_space<vmem>>, vector<8x128xf32>
    tpu.vector_store %arg13[%479, %c0_100], %472 {strides = array<i32>} : memref<64x128xf32, #tpu.memory_space<vmem>>, vector<8x128xf32>,
    %c5_i32 = arith.constant 5 : i32
    %c7_i32_101 = arith.constant 7 : i32
    %481 = arith.subi %c7_i32_101, %c5_i32 : i32
    %c8_i32_102 = arith.constant 8 : i32
    %482 = arith.muli %c5_i32, %c8_i32_102 : i32
    %483 = tpu.assume_multiple %482, 8 : i32
    %c8_i32_103 = arith.constant 8 : i32
    %484 = arith.muli %481, %c8_i32_103 : i32
    %485 = tpu.assume_multiple %484, 8 : i32
    %486 = arith.index_cast %483 : i32 to index
    %c0_104 = arith.constant 0 : index
    %487 = vector.load %arg10[%486, %c0_104] : memref<64x512xf32, #tpu.memory_space<vmem>>, vector<8x512xf32>
    %488 = vector.broadcast %c5_i32 : i32 to vector<8x1xi32>
    %489 = arith.cmpi slt, %488, %11 : vector<8x1xi32>
    %490 = arith.truncf %431 : vector<8x128xf32> to vector<8x128xbf16>
    %cst_105 = arith.constant dense<0.000000e+00> : vector<8x512xf32>
    %491 = tpu.matmul %490, %12, %cst_105 {dimension_numbers = #tpu.dot_dimension_numbers<[1], [0], [0], [1], [0, 0, 1, 1], [], []>} : vector<8x128xbf16>, vector<128x512xbf16>, vector<8x512xf32> -> vector<8x512xf32>
    %492 = arith.addf %487, %491 : vector<8x512xf32>
    %493 = vector.extract_strided_slice %492 {offsets = [0, 0], sizes = [8, 128], strides = [1, 1]} : vector<8x512xf32> to vector<8x128xf32>
    %494 = arith.negf %493 : vector<8x128xf32>
    %495 = math.exp %494 : vector<8x128xf32>
    %cst_106 = arith.constant 1.000000e+00 : f32
    %496 = vector.broadcast %cst_106 : f32 to vector<8x128xf32>
    %497 = arith.addf %496, %495 : vector<8x128xf32>
    %498 = arith.divf %496, %497 : vector<8x128xf32>
    %499 = vector.extract_strided_slice %492 {offsets = [0, 128], sizes = [8, 128], strides = [1, 1]} : vector<8x512xf32> to vector<8x128xf32>
    %500 = arith.negf %499 : vector<8x128xf32>
    %501 = math.exp %500 : vector<8x128xf32>
    %cst_107 = arith.constant 1.000000e+00 : f32
    %502 = vector.broadcast %cst_107 : f32 to vector<8x128xf32>
    %503 = arith.addf %502, %501 : vector<8x128xf32>
    %504 = arith.divf %502, %503 : vector<8x128xf32>
    %505 = vector.extract_strided_slice %492 {offsets = [0, 256], sizes = [8, 128], strides = [1, 1]} : vector<8x512xf32> to vector<8x128xf32>
    %506 = math.tanh %505 : vector<8x128xf32>
    %507 = vector.extract_strided_slice %492 {offsets = [0, 384], sizes = [8, 128], strides = [1, 1]} : vector<8x512xf32> to vector<8x128xf32>
    %508 = arith.negf %507 : vector<8x128xf32>
    %509 = math.exp %508 : vector<8x128xf32>
    %cst_108 = arith.constant 1.000000e+00 : f32
    %510 = vector.broadcast %cst_108 : f32 to vector<8x128xf32>
    %511 = arith.addf %510, %509 : vector<8x128xf32>
    %512 = arith.divf %510, %511 : vector<8x128xf32>
    %513 = arith.mulf %504, %434 : vector<8x128xf32>
    %514 = arith.mulf %498, %506 : vector<8x128xf32>
    %515 = arith.addf %513, %514 : vector<8x128xf32>
    %516 = math.tanh %515 : vector<8x128xf32>
    %517 = arith.mulf %512, %516 : vector<8x128xf32>
    %cst_109 = arith.constant 0.000000e+00 : f32
    %518 = vector.shape_cast %489 : vector<8x1xi1> to vector<8x1xi1>
    %519 = vector.broadcast %518 : vector<8x1xi1> to vector<8x128xi1>
    %520 = vector.broadcast %cst_109 : f32 to vector<8x128xf32>
    %521 = arith.select %519, %517, %520 : vector<8x128xi1>, vector<8x128xf32>
    %522 = vector.shape_cast %489 : vector<8x1xi1> to vector<8x1xi1>
    %523 = vector.broadcast %522 : vector<8x1xi1> to vector<8x128xi1>
    %524 = arith.select %523, %517, %431 : vector<8x128xi1>, vector<8x128xf32>
    %525 = vector.shape_cast %489 : vector<8x1xi1> to vector<8x1xi1>
    %526 = vector.broadcast %525 : vector<8x1xi1> to vector<8x128xi1>
    %527 = arith.select %526, %515, %434 : vector<8x128xi1>, vector<8x128xf32>
    %528 = arith.index_cast %483 : i32 to index
    %c0_110 = arith.constant 0 : index
    %529 = vector.load %arg12[%528, %c0_110] : memref<64x128xf32, #tpu.memory_space<vmem>>, vector<8x128xf32>
    tpu.vector_store %arg12[%528, %c0_110], %521 {strides = array<i32>} : memref<64x128xf32, #tpu.memory_space<vmem>>, vector<8x128xf32>,
    %530 = arith.index_cast %485 : i32 to index
    %c0_111 = arith.constant 0 : index
    %531 = vector.load %arg11[%530, %c0_111] : memref<64x512xf32, #tpu.memory_space<vmem>>, vector<8x512xf32>
    %532 = vector.broadcast %481 : i32 to vector<8x1xi32>
    %533 = arith.cmpi slt, %532, %11 : vector<8x1xi32>
    %534 = arith.truncf %475 : vector<8x128xf32> to vector<8x128xbf16>
    %cst_112 = arith.constant dense<0.000000e+00> : vector<8x512xf32>
    %535 = tpu.matmul %534, %13, %cst_112 {dimension_numbers = #tpu.dot_dimension_numbers<[1], [0], [0], [1], [0, 0, 1, 1], [], []>} : vector<8x128xbf16>, vector<128x512xbf16>, vector<8x512xf32> -> vector<8x512xf32>
    %536 = arith.addf %531, %535 : vector<8x512xf32>
    %537 = vector.extract_strided_slice %536 {offsets = [0, 0], sizes = [8, 128], strides = [1, 1]} : vector<8x512xf32> to vector<8x128xf32>
    %538 = arith.negf %537 : vector<8x128xf32>
    %539 = math.exp %538 : vector<8x128xf32>
    %cst_113 = arith.constant 1.000000e+00 : f32
    %540 = vector.broadcast %cst_113 : f32 to vector<8x128xf32>
    %541 = arith.addf %540, %539 : vector<8x128xf32>
    %542 = arith.divf %540, %541 : vector<8x128xf32>
    %543 = vector.extract_strided_slice %536 {offsets = [0, 128], sizes = [8, 128], strides = [1, 1]} : vector<8x512xf32> to vector<8x128xf32>
    %544 = arith.negf %543 : vector<8x128xf32>
    %545 = math.exp %544 : vector<8x128xf32>
    %cst_114 = arith.constant 1.000000e+00 : f32
    %546 = vector.broadcast %cst_114 : f32 to vector<8x128xf32>
    %547 = arith.addf %546, %545 : vector<8x128xf32>
    %548 = arith.divf %546, %547 : vector<8x128xf32>
    %549 = vector.extract_strided_slice %536 {offsets = [0, 256], sizes = [8, 128], strides = [1, 1]} : vector<8x512xf32> to vector<8x128xf32>
    %550 = math.tanh %549 : vector<8x128xf32>
    %551 = vector.extract_strided_slice %536 {offsets = [0, 384], sizes = [8, 128], strides = [1, 1]} : vector<8x512xf32> to vector<8x128xf32>
    %552 = arith.negf %551 : vector<8x128xf32>
    %553 = math.exp %552 : vector<8x128xf32>
    %cst_115 = arith.constant 1.000000e+00 : f32
    %554 = vector.broadcast %cst_115 : f32 to vector<8x128xf32>
    %555 = arith.addf %554, %553 : vector<8x128xf32>
    %556 = arith.divf %554, %555 : vector<8x128xf32>
    %557 = arith.mulf %548, %478 : vector<8x128xf32>
    %558 = arith.mulf %542, %550 : vector<8x128xf32>
    %559 = arith.addf %557, %558 : vector<8x128xf32>
    %560 = math.tanh %559 : vector<8x128xf32>
    %561 = arith.mulf %556, %560 : vector<8x128xf32>
    %cst_116 = arith.constant 0.000000e+00 : f32
    %562 = vector.shape_cast %533 : vector<8x1xi1> to vector<8x1xi1>
    %563 = vector.broadcast %562 : vector<8x1xi1> to vector<8x128xi1>
    %564 = vector.broadcast %cst_116 : f32 to vector<8x128xf32>
    %565 = arith.select %563, %561, %564 : vector<8x128xi1>, vector<8x128xf32>
    %566 = vector.shape_cast %533 : vector<8x1xi1> to vector<8x1xi1>
    %567 = vector.broadcast %566 : vector<8x1xi1> to vector<8x128xi1>
    %568 = arith.select %567, %561, %475 : vector<8x128xi1>, vector<8x128xf32>
    %569 = vector.shape_cast %533 : vector<8x1xi1> to vector<8x1xi1>
    %570 = vector.broadcast %569 : vector<8x1xi1> to vector<8x128xi1>
    %571 = arith.select %570, %559, %478 : vector<8x128xi1>, vector<8x128xf32>
    %572 = arith.index_cast %485 : i32 to index
    %c0_117 = arith.constant 0 : index
    %573 = vector.load %arg13[%572, %c0_117] : memref<64x128xf32, #tpu.memory_space<vmem>>, vector<8x128xf32>
    tpu.vector_store %arg13[%572, %c0_117], %565 {strides = array<i32>} : memref<64x128xf32, #tpu.memory_space<vmem>>, vector<8x128xf32>,
    %c6_i32 = arith.constant 6 : i32
    %c7_i32_118 = arith.constant 7 : i32
    %574 = arith.subi %c7_i32_118, %c6_i32 : i32
    %c8_i32_119 = arith.constant 8 : i32
    %575 = arith.muli %c6_i32, %c8_i32_119 : i32
    %576 = tpu.assume_multiple %575, 8 : i32
    %c8_i32_120 = arith.constant 8 : i32
    %577 = arith.muli %574, %c8_i32_120 : i32
    %578 = tpu.assume_multiple %577, 8 : i32
    %579 = arith.index_cast %576 : i32 to index
    %c0_121 = arith.constant 0 : index
    %580 = vector.load %arg10[%579, %c0_121] : memref<64x512xf32, #tpu.memory_space<vmem>>, vector<8x512xf32>
    %581 = vector.broadcast %c6_i32 : i32 to vector<8x1xi32>
    %582 = arith.cmpi slt, %581, %11 : vector<8x1xi32>
    %583 = arith.truncf %524 : vector<8x128xf32> to vector<8x128xbf16>
    %cst_122 = arith.constant dense<0.000000e+00> : vector<8x512xf32>
    %584 = tpu.matmul %583, %12, %cst_122 {dimension_numbers = #tpu.dot_dimension_numbers<[1], [0], [0], [1], [0, 0, 1, 1], [], []>} : vector<8x128xbf16>, vector<128x512xbf16>, vector<8x512xf32> -> vector<8x512xf32>
    %585 = arith.addf %580, %584 : vector<8x512xf32>
    %586 = vector.extract_strided_slice %585 {offsets = [0, 0], sizes = [8, 128], strides = [1, 1]} : vector<8x512xf32> to vector<8x128xf32>
    %587 = arith.negf %586 : vector<8x128xf32>
    %588 = math.exp %587 : vector<8x128xf32>
    %cst_123 = arith.constant 1.000000e+00 : f32
    %589 = vector.broadcast %cst_123 : f32 to vector<8x128xf32>
    %590 = arith.addf %589, %588 : vector<8x128xf32>
    %591 = arith.divf %589, %590 : vector<8x128xf32>
    %592 = vector.extract_strided_slice %585 {offsets = [0, 128], sizes = [8, 128], strides = [1, 1]} : vector<8x512xf32> to vector<8x128xf32>
    %593 = arith.negf %592 : vector<8x128xf32>
    %594 = math.exp %593 : vector<8x128xf32>
    %cst_124 = arith.constant 1.000000e+00 : f32
    %595 = vector.broadcast %cst_124 : f32 to vector<8x128xf32>
    %596 = arith.addf %595, %594 : vector<8x128xf32>
    %597 = arith.divf %595, %596 : vector<8x128xf32>
    %598 = vector.extract_strided_slice %585 {offsets = [0, 256], sizes = [8, 128], strides = [1, 1]} : vector<8x512xf32> to vector<8x128xf32>
    %599 = math.tanh %598 : vector<8x128xf32>
    %600 = vector.extract_strided_slice %585 {offsets = [0, 384], sizes = [8, 128], strides = [1, 1]} : vector<8x512xf32> to vector<8x128xf32>
    %601 = arith.negf %600 : vector<8x128xf32>
    %602 = math.exp %601 : vector<8x128xf32>
    %cst_125 = arith.constant 1.000000e+00 : f32
    %603 = vector.broadcast %cst_125 : f32 to vector<8x128xf32>
    %604 = arith.addf %603, %602 : vector<8x128xf32>
    %605 = arith.divf %603, %604 : vector<8x128xf32>
    %606 = arith.mulf %597, %527 : vector<8x128xf32>
    %607 = arith.mulf %591, %599 : vector<8x128xf32>
    %608 = arith.addf %606, %607 : vector<8x128xf32>
    %609 = math.tanh %608 : vector<8x128xf32>
    %610 = arith.mulf %605, %609 : vector<8x128xf32>
    %cst_126 = arith.constant 0.000000e+00 : f32
    %611 = vector.shape_cast %582 : vector<8x1xi1> to vector<8x1xi1>
    %612 = vector.broadcast %611 : vector<8x1xi1> to vector<8x128xi1>
    %613 = vector.broadcast %cst_126 : f32 to vector<8x128xf32>
    %614 = arith.select %612, %610, %613 : vector<8x128xi1>, vector<8x128xf32>
    %615 = vector.shape_cast %582 : vector<8x1xi1> to vector<8x1xi1>
    %616 = vector.broadcast %615 : vector<8x1xi1> to vector<8x128xi1>
    %617 = arith.select %616, %610, %524 : vector<8x128xi1>, vector<8x128xf32>
    %618 = vector.shape_cast %582 : vector<8x1xi1> to vector<8x1xi1>
    %619 = vector.broadcast %618 : vector<8x1xi1> to vector<8x128xi1>
    %620 = arith.select %619, %608, %527 : vector<8x128xi1>, vector<8x128xf32>
    %621 = arith.index_cast %576 : i32 to index
    %c0_127 = arith.constant 0 : index
    %622 = vector.load %arg12[%621, %c0_127] : memref<64x128xf32, #tpu.memory_space<vmem>>, vector<8x128xf32>
    tpu.vector_store %arg12[%621, %c0_127], %614 {strides = array<i32>} : memref<64x128xf32, #tpu.memory_space<vmem>>, vector<8x128xf32>,
    %623 = arith.index_cast %578 : i32 to index
    %c0_128 = arith.constant 0 : index
    %624 = vector.load %arg11[%623, %c0_128] : memref<64x512xf32, #tpu.memory_space<vmem>>, vector<8x512xf32>
    %625 = vector.broadcast %574 : i32 to vector<8x1xi32>
    %626 = arith.cmpi slt, %625, %11 : vector<8x1xi32>
    %627 = arith.truncf %568 : vector<8x128xf32> to vector<8x128xbf16>
    %cst_129 = arith.constant dense<0.000000e+00> : vector<8x512xf32>
    %628 = tpu.matmul %627, %13, %cst_129 {dimension_numbers = #tpu.dot_dimension_numbers<[1], [0], [0], [1], [0, 0, 1, 1], [], []>} : vector<8x128xbf16>, vector<128x512xbf16>, vector<8x512xf32> -> vector<8x512xf32>
    %629 = arith.addf %624, %628 : vector<8x512xf32>
    %630 = vector.extract_strided_slice %629 {offsets = [0, 0], sizes = [8, 128], strides = [1, 1]} : vector<8x512xf32> to vector<8x128xf32>
    %631 = arith.negf %630 : vector<8x128xf32>
    %632 = math.exp %631 : vector<8x128xf32>
    %cst_130 = arith.constant 1.000000e+00 : f32
    %633 = vector.broadcast %cst_130 : f32 to vector<8x128xf32>
    %634 = arith.addf %633, %632 : vector<8x128xf32>
    %635 = arith.divf %633, %634 : vector<8x128xf32>
    %636 = vector.extract_strided_slice %629 {offsets = [0, 128], sizes = [8, 128], strides = [1, 1]} : vector<8x512xf32> to vector<8x128xf32>
    %637 = arith.negf %636 : vector<8x128xf32>
    %638 = math.exp %637 : vector<8x128xf32>
    %cst_131 = arith.constant 1.000000e+00 : f32
    %639 = vector.broadcast %cst_131 : f32 to vector<8x128xf32>
    %640 = arith.addf %639, %638 : vector<8x128xf32>
    %641 = arith.divf %639, %640 : vector<8x128xf32>
    %642 = vector.extract_strided_slice %629 {offsets = [0, 256], sizes = [8, 128], strides = [1, 1]} : vector<8x512xf32> to vector<8x128xf32>
    %643 = math.tanh %642 : vector<8x128xf32>
    %644 = vector.extract_strided_slice %629 {offsets = [0, 384], sizes = [8, 128], strides = [1, 1]} : vector<8x512xf32> to vector<8x128xf32>
    %645 = arith.negf %644 : vector<8x128xf32>
    %646 = math.exp %645 : vector<8x128xf32>
    %cst_132 = arith.constant 1.000000e+00 : f32
    %647 = vector.broadcast %cst_132 : f32 to vector<8x128xf32>
    %648 = arith.addf %647, %646 : vector<8x128xf32>
    %649 = arith.divf %647, %648 : vector<8x128xf32>
    %650 = arith.mulf %641, %571 : vector<8x128xf32>
    %651 = arith.mulf %635, %643 : vector<8x128xf32>
    %652 = arith.addf %650, %651 : vector<8x128xf32>
    %653 = math.tanh %652 : vector<8x128xf32>
    %654 = arith.mulf %649, %653 : vector<8x128xf32>
    %cst_133 = arith.constant 0.000000e+00 : f32
    %655 = vector.shape_cast %626 : vector<8x1xi1> to vector<8x1xi1>
    %656 = vector.broadcast %655 : vector<8x1xi1> to vector<8x128xi1>
    %657 = vector.broadcast %cst_133 : f32 to vector<8x128xf32>
    %658 = arith.select %656, %654, %657 : vector<8x128xi1>, vector<8x128xf32>
    %659 = vector.shape_cast %626 : vector<8x1xi1> to vector<8x1xi1>
    %660 = vector.broadcast %659 : vector<8x1xi1> to vector<8x128xi1>
    %661 = arith.select %660, %654, %568 : vector<8x128xi1>, vector<8x128xf32>
    %662 = vector.shape_cast %626 : vector<8x1xi1> to vector<8x1xi1>
    %663 = vector.broadcast %662 : vector<8x1xi1> to vector<8x128xi1>
    %664 = arith.select %663, %652, %571 : vector<8x128xi1>, vector<8x128xf32>
    %665 = arith.index_cast %578 : i32 to index
    %c0_134 = arith.constant 0 : index
    %666 = vector.load %arg13[%665, %c0_134] : memref<64x128xf32, #tpu.memory_space<vmem>>, vector<8x128xf32>
    tpu.vector_store %arg13[%665, %c0_134], %658 {strides = array<i32>} : memref<64x128xf32, #tpu.memory_space<vmem>>, vector<8x128xf32>,
    %c7_i32_135 = arith.constant 7 : i32
    %c7_i32_136 = arith.constant 7 : i32
    %667 = arith.subi %c7_i32_136, %c7_i32_135 : i32
    %c8_i32_137 = arith.constant 8 : i32
    %668 = arith.muli %c7_i32_135, %c8_i32_137 : i32
    %669 = tpu.assume_multiple %668, 8 : i32
    %c8_i32_138 = arith.constant 8 : i32
    %670 = arith.muli %667, %c8_i32_138 : i32
    %671 = tpu.assume_multiple %670, 8 : i32
    %672 = arith.index_cast %669 : i32 to index
    %c0_139 = arith.constant 0 : index
    %673 = vector.load %arg10[%672, %c0_139] : memref<64x512xf32, #tpu.memory_space<vmem>>, vector<8x512xf32>
    %674 = vector.broadcast %c7_i32_135 : i32 to vector<8x1xi32>
    %675 = arith.cmpi slt, %674, %11 : vector<8x1xi32>
    %676 = arith.truncf %617 : vector<8x128xf32> to vector<8x128xbf16>
    %cst_140 = arith.constant dense<0.000000e+00> : vector<8x512xf32>
    %677 = tpu.matmul %676, %12, %cst_140 {dimension_numbers = #tpu.dot_dimension_numbers<[1], [0], [0], [1], [0, 0, 1, 1], [], []>} : vector<8x128xbf16>, vector<128x512xbf16>, vector<8x512xf32> -> vector<8x512xf32>
    %678 = arith.addf %673, %677 : vector<8x512xf32>
    %679 = vector.extract_strided_slice %678 {offsets = [0, 0], sizes = [8, 128], strides = [1, 1]} : vector<8x512xf32> to vector<8x128xf32>
    %680 = arith.negf %679 : vector<8x128xf32>
    %681 = math.exp %680 : vector<8x128xf32>
    %cst_141 = arith.constant 1.000000e+00 : f32
    %682 = vector.broadcast %cst_141 : f32 to vector<8x128xf32>
    %683 = arith.addf %682, %681 : vector<8x128xf32>
    %684 = arith.divf %682, %683 : vector<8x128xf32>
    %685 = vector.extract_strided_slice %678 {offsets = [0, 128], sizes = [8, 128], strides = [1, 1]} : vector<8x512xf32> to vector<8x128xf32>
    %686 = arith.negf %685 : vector<8x128xf32>
    %687 = math.exp %686 : vector<8x128xf32>
    %cst_142 = arith.constant 1.000000e+00 : f32
    %688 = vector.broadcast %cst_142 : f32 to vector<8x128xf32>
    %689 = arith.addf %688, %687 : vector<8x128xf32>
    %690 = arith.divf %688, %689 : vector<8x128xf32>
    %691 = vector.extract_strided_slice %678 {offsets = [0, 256], sizes = [8, 128], strides = [1, 1]} : vector<8x512xf32> to vector<8x128xf32>
    %692 = math.tanh %691 : vector<8x128xf32>
    %693 = vector.extract_strided_slice %678 {offsets = [0, 384], sizes = [8, 128], strides = [1, 1]} : vector<8x512xf32> to vector<8x128xf32>
    %694 = arith.negf %693 : vector<8x128xf32>
    %695 = math.exp %694 : vector<8x128xf32>
    %cst_143 = arith.constant 1.000000e+00 : f32
    %696 = vector.broadcast %cst_143 : f32 to vector<8x128xf32>
    %697 = arith.addf %696, %695 : vector<8x128xf32>
    %698 = arith.divf %696, %697 : vector<8x128xf32>
    %699 = arith.mulf %690, %620 : vector<8x128xf32>
    %700 = arith.mulf %684, %692 : vector<8x128xf32>
    %701 = arith.addf %699, %700 : vector<8x128xf32>
    %702 = math.tanh %701 : vector<8x128xf32>
    %703 = arith.mulf %698, %702 : vector<8x128xf32>
    %cst_144 = arith.constant 0.000000e+00 : f32
    %704 = vector.shape_cast %675 : vector<8x1xi1> to vector<8x1xi1>
    %705 = vector.broadcast %704 : vector<8x1xi1> to vector<8x128xi1>
    %706 = vector.broadcast %cst_144 : f32 to vector<8x128xf32>
    %707 = arith.select %705, %703, %706 : vector<8x128xi1>, vector<8x128xf32>
    %708 = vector.shape_cast %675 : vector<8x1xi1> to vector<8x1xi1>
    %709 = vector.broadcast %708 : vector<8x1xi1> to vector<8x128xi1>
    %710 = arith.select %709, %703, %617 : vector<8x128xi1>, vector<8x128xf32>
    %711 = vector.shape_cast %675 : vector<8x1xi1> to vector<8x1xi1>
    %712 = vector.broadcast %711 : vector<8x1xi1> to vector<8x128xi1>
    %713 = arith.select %712, %701, %620 : vector<8x128xi1>, vector<8x128xf32>
    %714 = arith.index_cast %669 : i32 to index
    %c0_145 = arith.constant 0 : index
    %715 = vector.load %arg12[%714, %c0_145] : memref<64x128xf32, #tpu.memory_space<vmem>>, vector<8x128xf32>
    tpu.vector_store %arg12[%714, %c0_145], %707 {strides = array<i32>} : memref<64x128xf32, #tpu.memory_space<vmem>>, vector<8x128xf32>,
    %716 = arith.index_cast %671 : i32 to index
    %c0_146 = arith.constant 0 : index
    %717 = vector.load %arg11[%716, %c0_146] : memref<64x512xf32, #tpu.memory_space<vmem>>, vector<8x512xf32>
    %718 = vector.broadcast %667 : i32 to vector<8x1xi32>
    %719 = arith.cmpi slt, %718, %11 : vector<8x1xi32>
    %720 = arith.truncf %661 : vector<8x128xf32> to vector<8x128xbf16>
    %cst_147 = arith.constant dense<0.000000e+00> : vector<8x512xf32>
    %721 = tpu.matmul %720, %13, %cst_147 {dimension_numbers = #tpu.dot_dimension_numbers<[1], [0], [0], [1], [0, 0, 1, 1], [], []>} : vector<8x128xbf16>, vector<128x512xbf16>, vector<8x512xf32> -> vector<8x512xf32>
    %722 = arith.addf %717, %721 : vector<8x512xf32>
    %723 = vector.extract_strided_slice %722 {offsets = [0, 0], sizes = [8, 128], strides = [1, 1]} : vector<8x512xf32> to vector<8x128xf32>
    %724 = arith.negf %723 : vector<8x128xf32>
    %725 = math.exp %724 : vector<8x128xf32>
    %cst_148 = arith.constant 1.000000e+00 : f32
    %726 = vector.broadcast %cst_148 : f32 to vector<8x128xf32>
    %727 = arith.addf %726, %725 : vector<8x128xf32>
    %728 = arith.divf %726, %727 : vector<8x128xf32>
    %729 = vector.extract_strided_slice %722 {offsets = [0, 128], sizes = [8, 128], strides = [1, 1]} : vector<8x512xf32> to vector<8x128xf32>
    %730 = arith.negf %729 : vector<8x128xf32>
    %731 = math.exp %730 : vector<8x128xf32>
    %cst_149 = arith.constant 1.000000e+00 : f32
    %732 = vector.broadcast %cst_149 : f32 to vector<8x128xf32>
    %733 = arith.addf %732, %731 : vector<8x128xf32>
    %734 = arith.divf %732, %733 : vector<8x128xf32>
    %735 = vector.extract_strided_slice %722 {offsets = [0, 256], sizes = [8, 128], strides = [1, 1]} : vector<8x512xf32> to vector<8x128xf32>
    %736 = math.tanh %735 : vector<8x128xf32>
    %737 = vector.extract_strided_slice %722 {offsets = [0, 384], sizes = [8, 128], strides = [1, 1]} : vector<8x512xf32> to vector<8x128xf32>
    %738 = arith.negf %737 : vector<8x128xf32>
    %739 = math.exp %738 : vector<8x128xf32>
    %cst_150 = arith.constant 1.000000e+00 : f32
    %740 = vector.broadcast %cst_150 : f32 to vector<8x128xf32>
    %741 = arith.addf %740, %739 : vector<8x128xf32>
    %742 = arith.divf %740, %741 : vector<8x128xf32>
    %743 = arith.mulf %734, %664 : vector<8x128xf32>
    %744 = arith.mulf %728, %736 : vector<8x128xf32>
    %745 = arith.addf %743, %744 : vector<8x128xf32>
    %746 = math.tanh %745 : vector<8x128xf32>
    %747 = arith.mulf %742, %746 : vector<8x128xf32>
    %cst_151 = arith.constant 0.000000e+00 : f32
    %748 = vector.shape_cast %719 : vector<8x1xi1> to vector<8x1xi1>
    %749 = vector.broadcast %748 : vector<8x1xi1> to vector<8x128xi1>
    %750 = vector.broadcast %cst_151 : f32 to vector<8x128xf32>
    %751 = arith.select %749, %747, %750 : vector<8x128xi1>, vector<8x128xf32>
    %752 = vector.shape_cast %719 : vector<8x1xi1> to vector<8x1xi1>
    %753 = vector.broadcast %752 : vector<8x1xi1> to vector<8x128xi1>
    %754 = arith.select %753, %747, %661 : vector<8x128xi1>, vector<8x128xf32>
    %755 = vector.shape_cast %719 : vector<8x1xi1> to vector<8x1xi1>
    %756 = vector.broadcast %755 : vector<8x1xi1> to vector<8x128xi1>
    %757 = arith.select %756, %745, %664 : vector<8x128xi1>, vector<8x128xf32>
    %758 = arith.index_cast %671 : i32 to index
    %c0_152 = arith.constant 0 : index
    %759 = vector.load %arg13[%758, %c0_152] : memref<64x128xf32, #tpu.memory_space<vmem>>, vector<8x128xf32>
    tpu.vector_store %arg13[%758, %c0_152], %751 {strides = array<i32>} : memref<64x128xf32, #tpu.memory_space<vmem>>, vector<8x128xf32>,
    %c8_i32_153 = arith.constant 8 : i32
    %c0_154 = arith.constant 0 : index
    %c0_155 = arith.constant 0 : index
    %760 = vector.load %arg12[%c0_154, %c0_155] : memref<64x128xf32, #tpu.memory_space<vmem>>, vector<64x128xf32>
    %761 = arith.truncf %760 : vector<64x128xf32> to vector<64x128xbf16>
    %c0_156 = arith.constant 0 : index
    %c0_157 = arith.constant 0 : index
    %762 = vector.load %arg6[%c0_156, %c0_157] : memref<128x128xbf16, #tpu.memory_space<vmem>>, vector<128x128xbf16>
    %cst_158 = arith.constant dense<0.000000e+00> : vector<64x128xf32>
    %763 = tpu.matmul %761, %762, %cst_158 {dimension_numbers = #tpu.dot_dimension_numbers<[1], [0], [0], [1], [0, 0, 1, 1], [], []>} : vector<64x128xbf16>, vector<128x128xbf16>, vector<64x128xf32> -> vector<64x128xf32>
    %c0_159 = arith.constant 0 : index
    %c0_160 = arith.constant 0 : index
    %764 = vector.load %arg13[%c0_159, %c0_160] : memref<64x128xf32, #tpu.memory_space<vmem>>, vector<64x128xf32>
    %765 = arith.truncf %764 : vector<64x128xf32> to vector<64x128xbf16>
    %c0_161 = arith.constant 0 : index
    %c0_162 = arith.constant 0 : index
    %766 = vector.load %arg7[%c0_161, %c0_162] : memref<128x128xbf16, #tpu.memory_space<vmem>>, vector<128x128xbf16>
    %cst_163 = arith.constant dense<0.000000e+00> : vector<64x128xf32>
    %767 = tpu.matmul %765, %766, %cst_163 {dimension_numbers = #tpu.dot_dimension_numbers<[1], [0], [0], [1], [0, 0, 1, 1], [], []>} : vector<64x128xbf16>, vector<128x128xbf16>, vector<64x128xf32> -> vector<64x128xf32>
    %768 = arith.addf %763, %767 : vector<64x128xf32>
    %c0_164 = arith.constant 0 : index
    %c0_165 = arith.constant 0 : index
    %769 = vector.load %arg8[%c0_164, %c0_165] : memref<1x128xf32, #tpu.memory_space<vmem>>, vector<1x128xf32>
    %770 = vector.broadcast %769 : vector<1x128xf32> to vector<64x128xf32>
    %771 = arith.addf %768, %770 : vector<64x128xf32>
    %c0_166 = arith.constant 0 : index
    %c0_167 = arith.constant 0 : index
    %772 = vector.load %arg9[%c0_166, %c0_167] : memref<64x128xf32, #tpu.memory_space<vmem>>, vector<64x128xf32>
    tpu.vector_store %arg9[%c0_166, %c0_167], %771 {strides = array<i32>} : memref<64x128xf32, #tpu.memory_space<vmem>>, vector<64x128xf32>,
    return
  }
}

</mosaic_0001>

<bundles_post_ra>
// kernel: bilstm_crf_forward.1
= control target key start
LH: loop header
LB: loop body
LE: loop exit
PB: predicated region body
PF: predicated region fallthrough
CT: control target
= control target key end

     0   :  { %vm175_vm0 = vcmask 261120   ;;  %s6310_s2 = inlined_call_operand.vmem [shape: bf16[32,1024], index: 2, kind: input, shape index: {}]   ;;  %s6311_s0 = inlined_call_operand.vmem [shape: bf16[8,8,32], index: 0, kind: input, shape index: {}]   ;;  %s6312_s4 = inlined_call_operand.vmem [shape: bf16[128,512], index: 4, kind: input, shape index: {}]   ;;  %s6313_s5 = inlined_call_operand.vmem [shape: bf16[128,512], index: 5, kind: input, shape index: {}]   ;;  %s6314_s3 = inlined_call_operand.vmem [shape: f32[1,1024], index: 3, kind: input, shape index: {}]   ;;  %s6315_s1 = inlined_call_operand.vmem [shape: s32[8,1], index: 1, kind: input, shape index: {}]   ;;  %s6316_s6 = inlined_call_operand.vmem [shape: bf16[128,128], index: 6, kind: input, shape index: {}]   ;;  %s6317_s7 = inlined_call_operand.vmem [shape: bf16[128,128], index: 7, kind: input, shape index: {}]   ;;  %s6318_s8 = inlined_call_operand.vmem [shape: f32[1,128], index: 8, kind: input, shape index: {}]   ;;  %s6319_s9 = inlined_call_operand.vmem [shape: f32[64,128], index: 9, kind: output, shape index: {}]  }
   0x1   :  { %v3309_v0 = vld [vmem:[%s6310_s2 + $0x40] sm:$0xf]  ;;  %v3775_v2 = vld [vmem:[%s6310_s2 + $0x44] sm:$0xf]  ;;  %v3776_v11 = vld [vmem:[%s6310_s2 + $0x4c] sm:$0xf] }
   0x2   :  { %v3779_v1 = vld [vmem:[%s6310_s2 + $0x5c] sm:$0xf0]  ;;  %v3311_v4 = vld [vmem:[%s6310_s2 + $0x60] sm:$0xf0]  ;;  %v3319_v12 = vld [vmem:[%s6310_s2 + $0x68] sm:$0xf0] }
   0x3   :  { %v3310_v3 = vor.u32 %v3779_v1, %v3309_v0  ;;  %v3277_v5 = vld [vmem:[%s6310_s2] sm:$0xf]  ;;  %v3314_v7 = vor.u32 %v3775_v2, %v3311_v4  ;;  %v3767_v8 = vld [vmem:[%s6310_s2 + $0x4] sm:$0xf]  ;;  %v3325_v15 = vld [vmem:[%s6310_s2 + $0x50] sm:$0xf]  ;;  %v3322_v18 = vor.u32 %v3776_v11, %v3319_v12 }
   0x4   :  { %v3771_v6 = vld [vmem:[%s6310_s2 + $0x1c] sm:$0xf0]  ;;  %v3279_v9 = vld [vmem:[%s6310_s2 + $0x20] sm:$0xf0]  ;;  %v3781_v16 = vld [vmem:[%s6310_s2 + $0x6c] sm:$0xf0] }
   0x5   :  { %194 = vmatpush.bf16.msra.mxu0 %v3310_v3  ;;  %3887 = vmatpush.bf16.msra.mxu2 %v3310_v3  ;;  %v3278_v10 = vor.u32 %v3771_v6, %v3277_v5  ;;  %v3282_v13 = vor.u32 %v3767_v8, %v3279_v9  ;;  %v4236_v14 = vld [vmem:[%s6311_s0] sm:$0xff]  ;;  %v3777_v17 = vld [vmem:[%s6310_s2 + $0x54] sm:$0xf]  ;;  %v3326_v19 = vor.u32 %v3781_v16, %v3325_v15  ;;  %v3317_v21 = vld [vmem:[%s6310_s2 + $0x48] sm:$0xf] }
   0x6   :  { %223 = vmatpush.bf16.msra.mxu1 %v3314_v7  ;;  %3889 = vmatpush.bf16.msra.mxu3 %v3314_v7  ;;  %v3327_v20 = vld [vmem:[%s6310_s2 + $0x70] sm:$0xf0]  ;;  %v3780_v22 = vld [vmem:[%s6310_s2 + $0x64] sm:$0xf0]  ;;  %v3293_v24 = vld [vmem:[%s6310_s2 + $0x10] sm:$0xf] }
   0x7   :  { %v4259_v23 = vld [vmem:[%s6311_s0 + $0x8] sm:$0xff]  ;;  %v3773_v25 = vld [vmem:[%s6310_s2 + $0x2c] sm:$0xf0]  ;;  %v3330_v27 = vor.u32 %v3777_v17, %v3327_v20  ;;  %v3318_v28 = vor.u32 %v3780_v22, %v3317_v21  ;;  %v3769_v31 = vld [vmem:[%s6310_s2 + $0x14] sm:$0xf] }
   0x8   :  { %v3768_v26 = vld [vmem:[%s6310_s2 + $0xc] sm:$0xf]  ;;  %v3294_v30 = vor.u32 %v3773_v25, %v3293_v24  ;;  %v3295_v32 = vld [vmem:[%s6310_s2 + $0x30] sm:$0xf0]  ;;  %v3285_v34 = vld [vmem:[%s6310_s2 + $0x8] sm:$0xf] }
   0x9   :  { %195 = vmatpush.bf16.msra.mxu0 %v3278_v10  ;;  %3888 = vmatpush.bf16.msra.mxu2 %v3278_v10  ;;  %v3287_v29 = vld [vmem:[%s6310_s2 + $0x28] sm:$0xf0]  ;;  %v3772_v35 = vld [vmem:[%s6310_s2 + $0x24] sm:$0xf0]  ;;  %v3298_v36 = vor.u32 %v3769_v31, %v3295_v32  ;;  %v4296_v38 = vld [vmem:[%s6311_s0 + $0x10] sm:$0xff] }
   0xa   :  { %224 = vmatpush.bf16.msra.mxu1 %v3282_v13  ;;  %3890 = vmatpush.bf16.msra.mxu3 %v3282_v13  ;;  %v3290_v33 = vor.u32 %v3768_v26, %v3287_v29  ;;  %v3286_v37 = vor.u32 %v3772_v35, %v3285_v34  ;;  %v3485_v39 = vld [vmem:[%s6312_s4 + $0xe0] sm:$0xf]  ;;  %v3813_v40 = vld [vmem:[%s6312_s4 + $0xec] sm:$0xf0]  ;;  %v3811_v41 = vld [vmem:[%s6312_s4 + $0xe4] sm:$0xf] }
   0xb   :  { %v4311_v42 = vor.u32 %v3813_v40, %v3485_v39  ;;  %v3487_v43 = vld [vmem:[%s6312_s4 + $0xf0] sm:$0xf0]  ;;  %v3778_v44 = vld [vmem:[%s6310_s2 + $0x5c] sm:$0xf]  ;;  %v3469_v47 = vld [vmem:[%s6312_s4 + $0xc0] sm:$0xf] }
   0xc   :  { %3339 = vmatmul.msk.bf16.vlgmr.msra.gmra.mxu0 %vm175_vm0, %v4236_v14  ;;  %3340 = vmatmul.msk.bf16.vlgmr.msra.gmra.mxu2 %vm175_vm0, %v4259_v23  ;;  %v3335_v45 = vld [vmem:[%s6310_s2 + $0x78] sm:$0xf0]  ;;  %v4326_v46 = vor.u32 %v3811_v41, %v3487_v43  ;;  %v3809_v49 = vld [vmem:[%s6312_s4 + $0xcc] sm:$0xf0]  ;;  %v3807_v50 = vld [vmem:[%s6312_s4 + $0xc4] sm:$0xf] }
   0xd   :  { %310 = vmatpush.bf16.msrb.mxu0 %v3326_v19  ;;  %3343 = vmatmul.msk.bf16.vlgmr.msra.gmra.mxu1 %vm175_vm0, %v4236_v14  ;;  %v3338_v48 = vor.u32 %v3778_v44, %v3335_v45  ;;  %v3471_v51 = vld [vmem:[%s6312_s4 + $0xd0] sm:$0xf0]  ;;  %v4342_v52 = vor.u32 %v3809_v49, %v3469_v47  ;;  %v3453_v54 = vld [vmem:[%s6312_s4 + $0xa0] sm:$0xf]  ;;  %v3805_v55 = vld [vmem:[%s6312_s4 + $0xac] sm:$0xf0] }
   0xe   :  { %281 = vmatpush.bf16.msrb.mxu3 %v3322_v18  ;;  %339 = vmatpush.bf16.msrb.mxu1 %v3330_v27  ;;  %v4344_v53 = vor.u32 %v3807_v50, %v3471_v51  ;;  %v3803_v56 = vld [vmem:[%s6312_s4 + $0xa4] sm:$0xf]  ;;  %v3455_v57 = vld [vmem:[%s6312_s4 + $0xb0] sm:$0xf0]  ;;  %v3333_v58 = vld [vmem:[%s6310_s2 + $0x58] sm:$0xf]  ;;  %v4365_v61 = vor.u32 %v3805_v55, %v3453_v54 }
   0xf   :  { %3344 = vmatmul.msk.bf16.vlgmr.msra.gmra.mxu3 %vm175_vm0, %v4259_v23  ;;  %252 = vmatpush.bf16.msrb.mxu2 %v3318_v28  ;;  %v3782_v59 = vld [vmem:[%s6310_s2 + $0x74] sm:$0xf0]  ;;  %v4368_v62 = vor.u32 %v3803_v56, %v3455_v57  ;;  %v3437_v63 = vld [vmem:[%s6312_s4 + $0x80] sm:$0xf]  ;;  %v3801_v0 = vld [vmem:[%s6312_s4 + $0x8c] sm:$0xf0] }
  0x10   :  { %6454 = vst [vmem:[#allocation6_spill] sm:$0xff] %v4344_v53  ;;  %v3334_v60 = vor.u32 %v3782_v59, %v3333_v58  ;;  %v3799_v1 = vld [vmem:[%s6312_s4 + $0x84] sm:$0xf]  ;;  %v3439_v2 = vld [vmem:[%s6312_s4 + $0x90] sm:$0xf0]  ;;  %v4383_v3 = vor.u32 %v3801_v0, %v3437_v63  ;;  %v4391_v5 = vld [vmem:[%s6311_s0 + $0x18] sm:$0xff] }
  0x11   :  { %311 = vmatpush.bf16.msrb.mxu0 %v3294_v30  ;;  %6455 = vst [vmem:[#allocation7_spill] sm:$0xff] %v4365_v61  ;;  %v4386_v4 = vor.u32 %v3799_v1, %v3439_v2  ;;  %v3421_v6 = vld [vmem:[%s6312_s4 + $0x60] sm:$0xf]  ;;  %v3797_v7 = vld [vmem:[%s6312_s4 + $0x6c] sm:$0xf0] }
  0x12   :  { %282 = vmatpush.bf16.msrb.mxu3 %v3290_v33  ;;  %340 = vmatpush.bf16.msrb.mxu1 %v3298_v36  ;;  %6456 = vst [vmem:[#allocation8_spill] sm:$0xff] %v4368_v62  ;;  %v3795_v8 = vld [vmem:[%s6312_s4 + $0x64] sm:$0xf]  ;;  %v4408_v9 = vor.u32 %v3797_v7, %v3421_v6  ;;  %v3423_v10 = vld [vmem:[%s6312_s4 + $0x70] sm:$0xf0] }
  0x13   :  { %253 = vmatpush.bf16.msrb.mxu2 %v3286_v37  ;;  %6457 = vst [vmem:[#allocation9_spill] sm:$0xff] %v4383_v3  ;;  %v4417_v11 = vor.u32 %v3795_v8, %v3423_v10  ;;  %v3405_v12 = vld [vmem:[%s6312_s4 + $0x40] sm:$0xf]  ;;  %v3793_v13 = vld [vmem:[%s6312_s4 + $0x4c] sm:$0xf0]  ;;  %v6320_v37 = vmov 0  }
  0x14   :  { %6458 = vst [vmem:[#allocation10_spill] sm:$0xff] %v4386_v4  ;;  %v3791_v15 = vld [vmem:[%s6312_s4 + $0x44] sm:$0xf]  ;;  %v4429_v16 = vor.u32 %v3793_v13, %v3405_v12  ;;  %v3407_v17 = vld [vmem:[%s6312_s4 + $0x50] sm:$0xf0]  ;;  %3892 = vset.pattern.permute.xlu0 %v6320_v37  ;;  %3893 = vset.pattern.permute.xlu1 %v6320_v37 }
  0x15   :  { %717 = vmatpush.bf16.msra.mxu0 %v4311_v42  ;;  %6459 = vst [vmem:[#allocation11_spill] sm:$0xff] %v4408_v9  ;;  %v4435_v18 = vor.u32 %v3791_v15, %v3407_v17  ;;  %v3389_v19 = vld [vmem:[%s6312_s4 + $0x20] sm:$0xf]  ;;  %v3789_v20 = vld [vmem:[%s6312_s4 + $0x2c] sm:$0xf0]  ;;  %3894 = vset.pattern.permute.xlu2 %v6320_v37 }
  0x16   :  { %730 = vmatpush.bf16.msra.mxu1 %v4326_v46  ;;  %397 = vmatpush.bf16.msra.mxu3 %v3338_v48  ;;  %6460 = vst [vmem:[#allocation12_spill] sm:$0xff] %v4417_v11  ;;  %v3787_v21 = vld [vmem:[%s6312_s4 + $0x24] sm:$0xf]  ;;  %v3391_v22 = vld [vmem:[%s6312_s4 + $0x30] sm:$0xf0]  ;;  %v4450_v24 = vor.u32 %v3789_v20, %v3389_v19 }
  0x17   :  { %368 = vmatpush.bf16.msra.mxu2 %v3334_v60  ;;  %6461 = vst [vmem:[#allocation13_spill] sm:$0xff] %v4429_v16  ;;  %v4453_v25 = vor.u32 %v3787_v21, %v3391_v22  ;;  %v3373_v26 = vld [vmem:[%s6312_s4] sm:$0xf]  ;;  %v3785_v27 = vld [vmem:[%s6312_s4 + $0xc] sm:$0xf0] }
  0x18   :  { %6462 = vst [vmem:[#allocation14_spill] sm:$0xff] %v4435_v18  ;;  %v3783_v28 = vld [vmem:[%s6312_s4 + $0x4] sm:$0xf]  ;;  %v3375_v29 = vld [vmem:[%s6312_s4 + $0x10] sm:$0xf0]  ;;  %v4468_v30 = vor.u32 %v3785_v27, %v3373_v26 }
  0x19   :  { %718 = vmatpush.bf16.msra.mxu0 %v4342_v52  ;;  %6463 = vst [vmem:[#allocation15_spill] sm:$0xff] %v4450_v24  ;;  %v4471_v31 = vor.u32 %v3783_v28, %v3375_v29  ;;  %v3770_v32 = vld [vmem:[%s6310_s2 + $0x1c] sm:$0xf]  ;;  %v3301_v34 = vld [vmem:[%s6310_s2 + $0x18] sm:$0xf] }
  0x1a   :  { %731 = vmatpush.bf16.msra.mxu1 %v4344_v53  ;;  %6464 = vst [vmem:[#allocation16_spill] sm:$0xff] %v4468_v30  ;;  %v3303_v33 = vld [vmem:[%s6310_s2 + $0x38] sm:$0xf0]  ;;  %v3774_v36 = vld [vmem:[%s6310_s2 + $0x34] sm:$0xf0] }
  0x1b   :  { %6465 = vst [vmem:[#allocation17_spill] sm:$0xff] %v4471_v31  ;;  %v3306_v35 = vor.u32 %v3770_v32, %v3303_v33  ;;  %v3302_v39 = vor.u32 %v3774_v36, %v3301_v34  ;;  %v3616_v40 = vld [vmem:[%s6313_s5 + $0xe0] sm:$0xf]  ;;  %v3845_v41 = vld [vmem:[%s6313_s5 + $0xec] sm:$0xf0] }
  0x1c   :  { %3341 = vmatmul.msk.bf16.gmra.mxu2 %vm175_vm0, %v4296_v38  ;;  %3355 = vmatmul.msk.bf16.vlgmr.msrb.gmra.mxu0 %vm175_vm0, %v4236_v14  ;;  %v3843_v43 = vld [vmem:[%s6313_s5 + $0xe4] sm:$0xf]  ;;  %v4518_v44 = vor.u32 %v3845_v41, %v3616_v40  ;;  %v3618_v45 = vld [vmem:[%s6313_s5 + $0xf0] sm:$0xf0]  ;;  %v3812_v47 = vld [vmem:[%s6312_s4 + $0xec] sm:$0xf] }
  0x1d   :  { %3359 = vmatmul.msk.bf16.vlgmr.msrb.gmra.mxu1 %vm175_vm0, %v4236_v14  ;;  %719 = vmatpush.bf16.msra.mxu0 %v4365_v61  ;;  %v3495_v48 = vld [vmem:[%s6312_s4 + $0xf8] sm:$0xf0]  ;;  %v4532_v49 = vor.u32 %v3843_v43, %v3618_v45  ;;  %v3600_v50 = vld [vmem:[%s6313_s5 + $0xc0] sm:$0xf]  ;;  %v3841_v54 = vld [vmem:[%s6313_s5 + $0xcc] sm:$0xf0] }
  0x1e   :  { %732 = vmatpush.bf16.msra.mxu1 %v4368_v62  ;;  %398 = vmatpush.bf16.msra.mxu3 %v3306_v35  ;;  %6466 = vst [vmem:[#allocation18_spill] sm:$0xff] %v4518_v44  ;;  %v4537_v51 = vor.u32 %v3812_v47, %v3495_v48  ;;  %v3839_v55 = vld [vmem:[%s6313_s5 + $0xc4] sm:$0xf]  ;;  %v3602_v56 = vld [vmem:[%s6313_s5 + $0xd0] sm:$0xf0]  ;;  %v4550_v57 = vor.u32 %v3841_v54, %v3600_v50 }
  0x1f   :  { %3345 = vmatmul.msk.bf16.gmra.mxu3 %vm175_vm0, %v4296_v38  ;;  %369 = vmatpush.bf16.msra.mxu2 %v3302_v39  ;;  %6467 = vst [vmem:[#allocation19_spill] sm:$0xff] %v4532_v49  ;;  %v4552_v58 = vor.u32 %v3839_v55, %v3602_v56  ;;  %v3808_v59 = vld [vmem:[%s6312_s4 + $0xcc] sm:$0xf]  ;;  %v3479_v60 = vld [vmem:[%s6312_s4 + $0xd8] sm:$0xf0] }
  0x20   :  { %6468 = vst [vmem:[#allocation20_spill] sm:$0xff] %v4550_v57  ;;  %v3584_v63 = vld [vmem:[%s6313_s5 + $0xa0] sm:$0xf]  ;;  %v4564_v0 = vor.u32 %v3808_v59, %v3479_v60  ;;  %v3837_v1 = vld [vmem:[%s6313_s5 + $0xac] sm:$0xf0] }
  0x21   :  { %720 = vmatpush.bf16.msra.mxu0 %v4383_v3  ;;  %6469 = vst [vmem:[#allocation21_spill] sm:$0xff] %v4552_v58  ;;  %v3835_v2 = vld [vmem:[%s6313_s5 + $0xa4] sm:$0xf]  ;;  %v3586_v6 = vld [vmem:[%s6313_s5 + $0xb0] sm:$0xf0]  ;;  %v4582_v10 = vor.u32 %v3837_v1, %v3584_v63 }
  0x22   :  { %733 = vmatpush.bf16.msra.mxu1 %v4386_v4  ;;  %v3493_v7 = vld [vmem:[%s6312_s4 + $0xe8] sm:$0xf]  ;;  %v3814_v8 = vld [vmem:[%s6312_s4 + $0xf4] sm:$0xf0]  ;;  %v4587_v13 = vor.u32 %v3835_v2, %v3586_v6  ;;  %v3568_v15 = vld [vmem:[%s6313_s5 + $0x80] sm:$0xf] }
  0x23   :  { %6470 = vst [vmem:[#allocation22_spill] sm:$0xff] %v4582_v10  ;;  %v4584_v12 = vor.u32 %v3814_v8, %v3493_v7  ;;  %v3833_v17 = vld [vmem:[%s6313_s5 + $0x8c] sm:$0xf0]  ;;  %v3831_v19 = vld [vmem:[%s6313_s5 + $0x84] sm:$0xf] }
  0x24   :  { %6471 = vst [vmem:[#allocation23_spill] sm:$0xff] %v4587_v13  ;;  %v4602_v20 = vor.u32 %v3833_v17, %v3568_v15  ;;  %v3570_v21 = vld [vmem:[%s6313_s5 + $0x90] sm:$0xf0]  ;;  %v3552_v26 = vld [vmem:[%s6313_s5 + $0x60] sm:$0xf] }
  0x25   :  { %721 = vmatpush.bf16.msra.mxu0 %v4408_v9  ;;  %v4607_v22 = vor.u32 %v3831_v19, %v3570_v21  ;;  %v3829_v27 = vld [vmem:[%s6313_s5 + $0x6c] sm:$0xf0]  ;;  %v3827_v28 = vld [vmem:[%s6313_s5 + $0x64] sm:$0xf]  ;;  %v3554_v32 = vld [vmem:[%s6313_s5 + $0x70] sm:$0xf0] }
  0x26   :  { %734 = vmatpush.bf16.msra.mxu1 %v4417_v11  ;;  %6472 = vst [vmem:[#allocation24_spill] sm:$0xff] %v4602_v20  ;;  %v4622_v29 = vor.u32 %v3829_v27, %v3552_v26  ;;  %v3804_v33 = vld [vmem:[%s6312_s4 + $0xac] sm:$0xf]  ;;  %v3463_v34 = vld [vmem:[%s6312_s4 + $0xb8] sm:$0xf0]  ;;  %v4635_v35 = vor.u32 %v3827_v28, %v3554_v32 }
  0x27   :  { %6473 = vst [vmem:[#allocation25_spill] sm:$0xff] %v4607_v22  ;;  %v3477_v36 = vld [vmem:[%s6312_s4 + $0xc8] sm:$0xf]  ;;  %v4640_v39 = vor.u32 %v3804_v33, %v3463_v34  ;;  %v3810_v40 = vld [vmem:[%s6312_s4 + $0xd4] sm:$0xf0] }
  0x28   :  { %6474 = vst [vmem:[#allocation26_spill] sm:$0xff] %v4622_v29  ;;  %v4647_v41 = vor.u32 %v3810_v40, %v3477_v36  ;;  %v3536_v43 = vld [vmem:[%s6313_s5 + $0x40] sm:$0xf]  ;;  %v3825_v45 = vld [vmem:[%s6313_s5 + $0x4c] sm:$0xf0] }
  0x29   :  { %722 = vmatpush.bf16.msra.mxu0 %v4429_v16  ;;  %6475 = vst [vmem:[#allocation27_spill] sm:$0xff] %v4635_v35  ;;  %v3823_v47 = vld [vmem:[%s6313_s5 + $0x44] sm:$0xf]  ;;  %v4659_v48 = vor.u32 %v3825_v45, %v3536_v43  ;;  %v3538_v50 = vld [vmem:[%s6313_s5 + $0x50] sm:$0xf0] }
  0x2a   :  { %735 = vmatpush.bf16.msra.mxu1 %v4435_v18  ;;  %v4665_v54 = vor.u32 %v3823_v47, %v3538_v50  ;;  %v3800_v55 = vld [vmem:[%s6312_s4 + $0x8c] sm:$0xf]  ;;  %v3447_v56 = vld [vmem:[%s6312_s4 + $0x98] sm:$0xf0]  ;;  %v3520_v59 = vld [vmem:[%s6313_s5 + $0x20] sm:$0xf] }
  0x2b   :  { %6476 = vst [vmem:[#allocation28_spill] sm:$0xff] %v4659_v48  ;;  %v4678_v60 = vor.u32 %v3800_v55, %v3447_v56  ;;  %v3821_v63 = vld [vmem:[%s6313_s5 + $0x2c] sm:$0xf0]  ;;  %v3819_v1 = vld [vmem:[%s6313_s5 + $0x24] sm:$0xf] }
  0x2c   :  { %3342 = vmatmul.msk.bf16.gmra.mxu2 %vm175_vm0, %v4391_v5  ;;  %3356 = vmatmul.msk.bf16.gmra.mxu0 %vm175_vm0, %v4259_v23  ;;  %6477 = vst [vmem:[#allocation29_spill] sm:$0xff] %v4665_v54  ;;  %v3522_v2 = vld [vmem:[%s6313_s5 + $0x30] sm:$0xf0]  ;;  %v4689_v6 = vor.u32 %v3821_v63, %v3520_v59  ;;  %v3461_v8 = vld [vmem:[%s6312_s4 + $0xa8] sm:$0xf] }
  0x2d   :  { %3360 = vmatmul.msk.bf16.gmra.mxu1 %vm175_vm0, %v4259_v23  ;;  %723 = vmatpush.bf16.msra.mxu0 %v4450_v24  ;;  %v4691_v7 = vor.u32 %v3819_v1, %v3522_v2  ;;  %v3806_v15 = vld [vmem:[%s6312_s4 + $0xb4] sm:$0xf0]  ;;  %v3504_v19 = vld [vmem:[%s6313_s5] sm:$0xf]  ;;  %v3817_v21 = vld [vmem:[%s6313_s5 + $0xc] sm:$0xf0] }
  0x2e   :  { %736 = vmatpush.bf16.msra.mxu1 %v4453_v25  ;;  %6478 = vst [vmem:[#allocation30_spill] sm:$0xff] %v4689_v6  ;;  %v4700_v17 = vor.u32 %v3806_v15, %v3461_v8  ;;  %v3815_v26 = vld [vmem:[%s6313_s5 + $0x4] sm:$0xf]  ;;  %v4714_v27 = vor.u32 %v3817_v21, %v3504_v19  ;;  %v3506_v28 = vld [vmem:[%s6313_s5 + $0x10] sm:$0xf0] }
  0x2f   :  { %3346 = vmatmul.msk.bf16.gmra.mxu3 %vm175_vm0, %v4391_v5  ;;  %6479 = vst [vmem:[#allocation31_spill] sm:$0xff] %v4691_v7  ;;  %v4719_v32 = vor.u32 %v3815_v26, %v3506_v28  ;;  %v3445_v33 = vld [vmem:[%s6312_s4 + $0x88] sm:$0xf]  ;;  %v3802_v34 = vld [vmem:[%s6312_s4 + $0x94] sm:$0xf0] }
  0x30   :  { %6480 = vst [vmem:[#allocation32_spill] sm:$0xff] %v4714_v27  ;;  %v4729_v36 = vor.u32 %v3802_v34, %v3445_v33  ;;  %v3796_v40 = vld [vmem:[%s6312_s4 + $0x6c] sm:$0xf]  ;;  %v3431_v43 = vld [vmem:[%s6312_s4 + $0x78] sm:$0xf0]  ;;  %v4800_v33 = vld [vmem:[%s6314_s3] sm:$0xff] }
  0x31   :  { %724 = vmatpush.bf16.msra.mxu0 %v4468_v30  ;;  %6481 = vst [vmem:[#allocation33_spill] sm:$0xff] %v4719_v32  ;;  %v4743_v45 = vor.u32 %v3796_v40, %v3431_v43  ;;  %v3798_v47 = vld [vmem:[%s6312_s4 + $0x74] sm:$0xf0]  ;;  %v3413_v55 = vld [vmem:[%s6312_s4 + $0x48] sm:$0xf] }
  0x32   :  { %737 = vmatpush.bf16.msra.mxu1 %v4471_v31  ;;  %v3794_v56 = vld [vmem:[%s6312_s4 + $0x54] sm:$0xf0]  ;;  %v3792_v59 = vld [vmem:[%s6312_s4 + $0x4c] sm:$0xf]  ;;  %v3415_v1 = vld [vmem:[%s6312_s4 + $0x58] sm:$0xf0] }
  0x33   :  { %v4768_v63 = vor.u32 %v3794_v56, %v3413_v55  ;;  %v4774_v2 = vor.u32 %v3792_v59, %v3415_v1  ;;  %v3397_v8 = vld [vmem:[%s6312_s4 + $0x28] sm:$0xf]  ;;  %v3790_v15 = vld [vmem:[%s6312_s4 + $0x34] sm:$0xf0]  ;;  %v3788_v19 = vld [vmem:[%s6312_s4 + $0x2c] sm:$0xf] }
  0x34   :  { %v4788_v21 = vor.u32 %v3790_v15, %v3397_v8  ;;  %v3399_v26 = vld [vmem:[%s6312_s4 + $0x38] sm:$0xf0]  ;;  %v3381_v43 = vld [vmem:[%s6312_s4 + $0x8] sm:$0xf]  ;;  %v3846_v1 = vld [vmem:[%s6313_s5 + $0xf4] sm:$0xf0] }
  0x35   :  { %1012 = vmatpush.bf16.msrb.mxu0 %v4518_v44  ;;  %v4794_v28 = vor.u32 %v3788_v19, %v3399_v26  ;;  %v3383_v56 = vld [vmem:[%s6312_s4 + $0x18] sm:$0xf0]  ;;  %v3624_v59 = vld [vmem:[%s6313_s5 + $0xe8] sm:$0xf]  ;;  %v4830_v8 = vperm.slane %v4800_v33, 0 }
  0x36   :  { %1025 = vmatpush.bf16.msrb.mxu1 %v4532_v49  ;;  %v4836_v19 = vor.u32 %v3846_v1, %v3624_v59  ;;  %v3844_v26 = vld [vmem:[%s6313_s5 + $0xec] sm:$0xf]  ;;  %v3608_v59 = vld [vmem:[%s6313_s5 + $0xc8] sm:$0xf]  ;;  %v3842_v1 = vld [vmem:[%s6313_s5 + $0xd4] sm:$0xf0] }
  0x37   :  { %6483 = vst [vmem:[#allocation35_spill] sm:$0xff] %v4830_v8 }
  0x38   :  { %6485 = vst [vmem:[#allocation37_spill] sm:$0xff] %v4836_v19 }
  0x39   :  { %1013 = vmatpush.bf16.msrb.mxu0 %v4550_v57 }
  0x3a   :  { %1026 = vmatpush.bf16.msrb.mxu1 %v4552_v58 }
  0x3c   :  { %3347 = vmatmul.msk.bf16.vlgmr.msrb.gmra.mxu2 %vm175_vm0, %v4236_v14  ;;  %3357 = vmatmul.msk.bf16.gmra.mxu0 %vm175_vm0, %v4296_v38 }
  0x3d   :  { %3361 = vmatmul.msk.bf16.gmra.mxu1 %vm175_vm0, %v4296_v38  ;;  %743 = vmatpush.bf16.msrb.mxu2 %v4584_v12 }
  0x3e   :  { %1014 = vmatpush.bf16.msrb.mxu0 %v4582_v10  ;;  %1027 = vmatpush.bf16.msrb.mxu1 %v4587_v13 }
  0x3f   :  { %3351 = vmatmul.msk.bf16.vlgmr.msrb.gmra.mxu3 %vm175_vm0, %v4236_v14 }
  0x40   :  { %756 = vmatpush.bf16.msrb.mxu3 %v4537_v51 }
  0x41   :  { %744 = vmatpush.bf16.msrb.mxu2 %v4647_v41 }
  0x42   :  { %1015 = vmatpush.bf16.msrb.mxu0 %v4602_v20  ;;  %1028 = vmatpush.bf16.msrb.mxu1 %v4607_v22 }
  0x44   :  { %757 = vmatpush.bf16.msrb.mxu3 %v4564_v0 }
  0x45   :  { %745 = vmatpush.bf16.msrb.mxu2 %v4700_v17 }
  0x46   :  { %1016 = vmatpush.bf16.msrb.mxu0 %v4622_v29  ;;  %1029 = vmatpush.bf16.msrb.mxu1 %v4635_v35 }
  0x48   :  { %758 = vmatpush.bf16.msrb.mxu3 %v4640_v39 }
  0x49   :  { %746 = vmatpush.bf16.msrb.mxu2 %v4729_v36 }
  0x4a   :  { %1017 = vmatpush.bf16.msrb.mxu0 %v4659_v48  ;;  %1030 = vmatpush.bf16.msrb.mxu1 %v4665_v54 }
  0x4c   :  { %3348 = vmatmul.msk.bf16.gmra.mxu2 %vm175_vm0, %v4259_v23  ;;  %3358 = vmatmul.msk.bf16.gmra.mxu0 %vm175_vm0, %v4391_v5 }
  0x4d   :  { %3362 = vmatmul.msk.bf16.gmra.mxu1 %vm175_vm0, %v4391_v5  ;;  %759 = vmatpush.bf16.msrb.mxu3 %v4678_v60 }
  0x4e   :  { %1018 = vmatpush.bf16.msrb.mxu0 %v4689_v6  ;;  %1031 = vmatpush.bf16.msrb.mxu1 %v4691_v7 }
  0x4f   :  { %3352 = vmatmul.msk.bf16.gmra.mxu3 %vm175_vm0, %v4259_v23 }
  0x51   :  { %760 = vmatpush.bf16.msrb.mxu3 %v4743_v45 }
  0x52   :  { %1019 = vmatpush.bf16.msrb.mxu0 %v4714_v27  ;;  %1032 = vmatpush.bf16.msrb.mxu1 %v4719_v32 }
  0x55   :  { %761 = vmatpush.bf16.msrb.mxu3 %v4774_v2 }
  0x59   :  { %762 = vmatpush.bf16.msrb.mxu3 %v4794_v28 }
  0x5c   :  { %3349 = vmatmul.msk.bf16.gmra.mxu2 %vm175_vm0, %v4296_v38  ;;  %725 = vmatmul.bf16.vlgmr.msra.gmra.mxu0 %v6320_v37 }
  0x5d   :  { %738 = vmatmul.bf16.vlgmr.msra.gmra.mxu1 %v6320_v37  ;;  %1149 = vmatpush.bf16.msra.mxu0 %v4311_v42 }
  0x5e   :  { %1162 = vmatpush.bf16.msra.mxu1 %v4326_v46 }
  0x5f   :  { %3353 = vmatmul.msk.bf16.gmra.mxu3 %vm175_vm0, %v4296_v38 }
  0x61   :  { %1150 = vmatpush.bf16.msra.mxu0 %v4342_v52 }
  0x62   :  { %1163 = vmatpush.bf16.msra.mxu1 %v4344_v53 }
  0x65   :  { %1151 = vmatpush.bf16.msra.mxu0 %v4365_v61 }
  0x66   :  { %1164 = vmatpush.bf16.msra.mxu1 %v4368_v62 }
  0x69   :  { %1152 = vmatpush.bf16.msra.mxu0 %v4383_v3 }
  0x6a   :  { %1165 = vmatpush.bf16.msra.mxu1 %v4386_v4 }
  0x6c   :  { %3350 = vmatmul.msk.bf16.gmra.mxu2 %vm175_vm0, %v4391_v5  ;;  %1020 = vmatmul.bf16.vlgmr.msrb.gmra.mxu0 %v6320_v37 }
  0x6d   :  { %1033 = vmatmul.bf16.vlgmr.msrb.gmra.mxu1 %v6320_v37  ;;  %1153 = vmatpush.bf16.msra.mxu0 %v4408_v9  ;;  %v4869_v37 = vor.u32 %v3842_v1, %v3608_v59  ;;  %v3610_v9 = vld [vmem:[%s6313_s5 + $0xd8] sm:$0xf0]  ;;  %v3838_v59 = vld [vmem:[%s6313_s5 + $0xb4] sm:$0xf0]  ;;  %v3836_v1 = vld [vmem:[%s6313_s5 + $0xac] sm:$0xf] }
  0x6e   :  { %1166 = vmatpush.bf16.msra.mxu1 %v4417_v11 }
  0x6f   :  { %3354 = vmatmul.msk.bf16.gmra.mxu3 %vm175_vm0, %v4391_v5  ;;  %6489 = vst [vmem:[#allocation41_spill] sm:$0xff] %v4869_v37 }
  0x71   :  { %1154 = vmatpush.bf16.msra.mxu0 %v4429_v16 }
  0x72   :  { %1167 = vmatpush.bf16.msra.mxu1 %v4435_v18  ;;  %v3578_v18 = vld [vmem:[%s6313_s5 + $0x98] sm:$0xf0] }
  0x75   :  { %1155 = vmatpush.bf16.msra.mxu0 %v4450_v24 }
  0x76   :  { %1168 = vmatpush.bf16.msra.mxu1 %v4453_v25 }
  0x79   :  { %1156 = vmatpush.bf16.msra.mxu0 %v4468_v30 }
  0x7a   :  { %1169 = vmatpush.bf16.msra.mxu1 %v4471_v31 }
  0x7c   :  { %3363 = vmatmul.msk.bf16.vlgmr.msra.gmra.mxu2 %vm175_vm0, %v4236_v14 }
  0x7d   :  { %1287 = vmatpush.bf16.msrb.mxu0 %v4518_v44 }
  0x7e   :  { %1300 = vmatpush.bf16.msrb.mxu1 %v4532_v49 }
  0x7f   :  { %3367 = vmatmul.msk.bf16.vlgmr.msra.gmra.mxu3 %vm175_vm0, %v4236_v14  ;;  %v3429_v14 = vld [vmem:[%s6312_s4 + $0x68] sm:$0xf] }
  0x80   :  { %v4753_v50 = vor.u32 %v3798_v47, %v3429_v14  ;;  %v3786_v14 = vld [vmem:[%s6312_s4 + $0x14] sm:$0xf0]  ;;  %v3784_v47 = vld [vmem:[%s6312_s4 + $0xc] sm:$0xf] }
  0x81   :  { %v4817_v55 = vor.u32 %v3786_v14, %v3381_v43  ;;  %v4834_v15 = vor.u32 %v3784_v47, %v3383_v56  ;;  %v3626_v43 = vld [vmem:[%s6313_s5 + $0xf8] sm:$0xf0]  ;;  %v4846_v14 = vperm.slane %v4800_v33, 1  ;;  %1288 = vmatpush.bf16.msrb.mxu0 %v4550_v57 }
  0x82   :  { %747 = vmatpush.bf16.msrb.mxu2 %v4753_v50  ;;  %v4851_v47 = vor.u32 %v3844_v26, %v3626_v43  ;;  %1301 = vmatpush.bf16.msrb.mxu1 %v4552_v58 }
  0x83   :  { %6482 = vst [vmem:[#allocation34_spill] sm:$0xff] %v4817_v55  ;;  %763 = vmatpush.bf16.msrb.mxu3 %v4834_v15 }
  0x84   :  { %6484 = vst [vmem:[#allocation36_spill] sm:$0xff] %v4834_v15 }
  0x85   :  { %6486 = vst [vmem:[#allocation38_spill] sm:$0xff] %v4846_v14  ;;  %1289 = vmatpush.bf16.msrb.mxu0 %v4582_v10 }
  0x86   :  { %748 = vmatpush.bf16.msrb.mxu2 %v4768_v63  ;;  %6487 = vst [vmem:[#allocation39_spill] sm:$0xff] %v4851_v47  ;;  %1302 = vmatpush.bf16.msrb.mxu1 %v4587_v13 }
  0x87   :  { %1051 = vmatpush.bf16.msra.mxu3 %v4851_v47 }
  0x89   :  { %v4802_v34 = vpop.f32.mrf.mxu0  ;;  %1290 = vmatpush.bf16.msrb.mxu0 %v4602_v20 }
  0x8a   :  { %749 = vmatpush.bf16.msrb.mxu2 %v4788_v21  ;;  %v4805_v40 = vpop.f32.mrf.mxu1  ;;  %1303 = vmatpush.bf16.msrb.mxu1 %v4607_v22 }
  0x8c   :  { %3364 = vmatmul.msk.bf16.gmra.mxu2 %vm175_vm0, %v4259_v23 }
  0x8d   :  { %1291 = vmatpush.bf16.msrb.mxu0 %v4622_v29 }
  0x8e   :  { %750 = vmatpush.bf16.msrb.mxu2 %v4817_v55  ;;  %1304 = vmatpush.bf16.msrb.mxu1 %v4635_v35 }
  0x8f   :  { %3368 = vmatmul.msk.bf16.gmra.mxu3 %vm175_vm0, %v4259_v23  ;;  %v202_v56 = vpop.f32.mrf.mxu2  ;;  %v3840_v23 = vld [vmem:[%s6313_s5 + $0xcc] sm:$0xf] }
  0x90   :  { %v4867_v26 = vadd.f32 %v202_v56, %v4830_v8  ;;  %v4880_v62 = vor.u32 %v3840_v23, %v3610_v9  ;;  %v3592_v56 = vld [vmem:[%s6313_s5 + $0xa8] sm:$0xf]  ;;  %v3594_v23 = vld [vmem:[%s6313_s5 + $0xb8] sm:$0xf0] }
  0x91   :  { %v4878_v3 = vpop.f32.mrf.mxu0  ;;  %v4896_v9 = vor.u32 %v3838_v59, %v3592_v56  ;;  %v3576_v56 = vld [vmem:[%s6313_s5 + $0x88] sm:$0xf]  ;;  %v3834_v59 = vld [vmem:[%s6313_s5 + $0x94] sm:$0xf0]  ;;  %1292 = vmatpush.bf16.msrb.mxu0 %v4659_v48 }
  0x92   :  { %1038 = vmatpush.bf16.msra.mxu2 %v4836_v19  ;;  %6488 = vst [vmem:[#allocation40_spill] sm:$0xff] %v4867_v26  ;;  %v231_v43 = vpop.f32.mrf.mxu3  ;;  %v4882_v11 = vpop.f32.mrf.mxu1  ;;  %1052 = vmatpush.bf16.msra.mxu3 %v4880_v62  ;;  %v4908_v26 = vperm.slane %v4800_v33, 5  ;;  %v4925_v24 = vor.u32 %v3834_v59, %v3576_v56 }
  0x93   :  { %v4876_v4 = vadd.f32 %v231_v43, %v4846_v14  ;;  %6491 = vst [vmem:[#allocation43_spill] sm:$0xff] %v4878_v3  ;;  %v4902_v43 = vor.u32 %v3836_v1, %v3594_v23  ;;  %v3832_v1 = vld [vmem:[%s6313_s5 + $0x8c] sm:$0xf]  ;;  %1305 = vmatpush.bf16.msrb.mxu1 %v4665_v54 }
  0x94   :  { %6492 = vst [vmem:[#allocation44_spill] sm:$0xff] %v4880_v62  ;;  %v4934_v53 = vor.u32 %v3832_v1, %v3578_v18  ;;  %v3830_v18 = vld [vmem:[%s6313_s5 + $0x74] sm:$0xf0]  ;;  %v3562_v1 = vld [vmem:[%s6313_s5 + $0x78] sm:$0xf0] }
  0x95   :  { %6490 = vst [vmem:[#allocation42_spill] sm:$0xff] %v4876_v4  ;;  %v4905_v4 = vperm.slane %v4800_v33, 4  ;;  %1293 = vmatpush.bf16.msrb.mxu0 %v4689_v6 }
  0x96   :  { %6493 = vst [vmem:[#allocation45_spill] sm:$0xff] %v4882_v11  ;;  %1039 = vmatpush.bf16.msra.mxu2 %v4869_v37  ;;  %1053 = vmatpush.bf16.msra.mxu3 %v4902_v43 }
  0x97   :  { %6494 = vst [vmem:[#allocation46_spill] sm:$0xff] %v4896_v9  ;;  %v204_v11 = vpop.f32.mrf.mxu2  ;;  %1306 = vmatpush.bf16.msrb.mxu1 %v4691_v7 }
  0x98   :  { %6495 = vst [vmem:[#allocation47_spill] sm:$0xff] %v4902_v43  ;;  %v4923_v23 = vadd.f32 %v204_v11, %v4830_v8 }
  0x99   :  { %6496 = vst [vmem:[#allocation48_spill] sm:$0xff] %v4905_v4  ;;  %v313_v61 = vpop.f32.mrf.mxu0  ;;  %1294 = vmatpush.bf16.msrb.mxu0 %v4714_v27 }
  0x9a   :  { %6497 = vst [vmem:[#allocation49_spill] sm:$0xff] %v4908_v26  ;;  %1040 = vmatpush.bf16.msra.mxu2 %v4896_v9  ;;  %v233_v3 = vpop.f32.mrf.mxu3  ;;  %v4938_v11 = vadd.f32 %v313_v61, %v4905_v4  ;;  %1054 = vmatpush.bf16.msra.mxu3 %v4934_v53  ;;  %v3828_v61 = vld [vmem:[%s6313_s5 + $0x6c] sm:$0xf] }
  0x9b   :  { %6498 = vst [vmem:[#allocation50_spill] sm:$0xff] %v4923_v23  ;;  %v4932_v16 = vadd.f32 %v233_v3, %v4846_v14  ;;  %v342_v23 = vpop.f32.mrf.mxu1  ;;  %v3560_v3 = vld [vmem:[%s6313_s5 + $0x68] sm:$0xf]  ;;  %1307 = vmatpush.bf16.msrb.mxu1 %v4719_v32 }
  0x9c   :  { %6499 = vst [vmem:[#allocation51_spill] sm:$0xff] %v4925_v24  ;;  %v4942_v56 = vadd.f32 %v342_v23, %v4908_v26  ;;  %3365 = vmatmul.msk.bf16.gmra.mxu2 %vm175_vm0, %v4296_v38  ;;  %v4957_v59 = vor.u32 %v3830_v18, %v3560_v3  ;;  %v4965_v23 = vor.u32 %v3828_v61, %v3562_v1  ;;  %v3544_v3 = vld [vmem:[%s6313_s5 + $0x48] sm:$0xf]  ;;  %v3826_v18 = vld [vmem:[%s6313_s5 + $0x54] sm:$0xf0] }
  0x9d   :  { %6500 = vst [vmem:[#allocation52_spill] sm:$0xff] %v4932_v16  ;;  %v4979_v61 = vor.u32 %v3826_v18, %v3544_v3  ;;  %v3824_v1 = vld [vmem:[%s6313_s5 + $0x4c] sm:$0xf]  ;;  %v3546_v16 = vld [vmem:[%s6313_s5 + $0x58] sm:$0xf0] }
  0x9e   :  { %6501 = vst [vmem:[#allocation53_spill] sm:$0xff] %v4934_v53  ;;  %1041 = vmatpush.bf16.msra.mxu2 %v4925_v24  ;;  %1055 = vmatpush.bf16.msra.mxu3 %v4965_v23  ;;  %v3528_v18 = vld [vmem:[%s6313_s5 + $0x28] sm:$0xf] }
  0x9f   :  { %6502 = vst [vmem:[#allocation54_spill] sm:$0xff] %v4938_v11  ;;  %3369 = vmatmul.msk.bf16.gmra.mxu3 %vm175_vm0, %v4296_v38 }
  0xa0   :  { %6503 = vst [vmem:[#allocation55_spill] sm:$0xff] %v4942_v56  ;;  %v207_v56 = vpop.f32.mrf.mxu2 }
  0xa1   :  { %6504 = vst [vmem:[#allocation56_spill] sm:$0xff] %v4957_v59  ;;  %v4977_v11 = vadd.f32 %v207_v56, %v4830_v8  ;;  %v4991_v49 = vpop.f32.mrf.mxu0  ;;  %v4993_v56 = vor.u32 %v3824_v1, %v3546_v16  ;;  %v3820_v16 = vld [vmem:[%s6313_s5 + $0x2c] sm:$0xf] }
  0xa2   :  { %6505 = vst [vmem:[#allocation57_spill] sm:$0xff] %v4965_v23  ;;  %1042 = vmatpush.bf16.msra.mxu2 %v4957_v59  ;;  %v236_v38 = vpop.f32.mrf.mxu3 }
  0xa3   :  { %6506 = vst [vmem:[#allocation58_spill] sm:$0xff] %v4977_v11  ;;  %v4989_v57 = vadd.f32 %v236_v38, %v4846_v14  ;;  %v4996_v3 = vpop.f32.mrf.mxu1  ;;  %1056 = vmatpush.bf16.msra.mxu3 %v4993_v56  ;;  %v3822_v38 = vld [vmem:[%s6313_s5 + $0x34] sm:$0xf0] }
  0xa4   :  { %6507 = vst [vmem:[#allocation59_spill] sm:$0xff] %v4979_v61  ;;  %v5009_v1 = vor.u32 %v3822_v38, %v3528_v18  ;;  %v3512_v18 = vld [vmem:[%s6313_s5 + $0x8] sm:$0xf]  ;;  %v3818_v38 = vld [vmem:[%s6313_s5 + $0x14] sm:$0xf0] }
  0xa5   :  { %6508 = vst [vmem:[#allocation60_spill] sm:$0xff] %v4989_v57  ;;  %v5033_v11 = vor.u32 %v3818_v38, %v3512_v18 }
  0xa6   :  { %6509 = vst [vmem:[#allocation61_spill] sm:$0xff] %v4991_v49  ;;  %1043 = vmatpush.bf16.msra.mxu2 %v4979_v61 }
  0xa7   :  { %6510 = vst [vmem:[#allocation62_spill] sm:$0xff] %v4993_v56 }
  0xa8   :  { %6511 = vst [vmem:[#allocation63_spill] sm:$0xff] %v4996_v3  ;;  %v3530_v3 = vld [vmem:[%s6313_s5 + $0x38] sm:$0xf0]  ;;  %v5019_v57 = vpop.f32.mrf.mxu2 }
  0xa9   :  { %6512 = vst [vmem:[#allocation64_spill] sm:$0xff] %v5009_v1  ;;  %v5015_v49 = vor.u32 %v3820_v16, %v3530_v3  ;;  %v3816_v3 = vld [vmem:[%s6313_s5 + $0xc] sm:$0xf]  ;;  %v318_v20 = vpop.f32.mrf.mxu0 }
  0xaa   :  { %1044 = vmatpush.bf16.msra.mxu2 %v5009_v1  ;;  %6514 = vst [vmem:[#allocation66_spill] sm:$0xff] %v5019_v57  ;;  %v5031_v16 = vpop.f32.mrf.mxu3  ;;  %v3514_v57 = vld [vmem:[%s6313_s5 + $0x18] sm:$0xf0]  ;;  %v5043_v10 = vadd.f32 %v318_v20, %v4905_v4 }
  0xab   :  { %6513 = vst [vmem:[#allocation65_spill] sm:$0xff] %v5015_v49  ;;  %1057 = vmatpush.bf16.msra.mxu3 %v5015_v49  ;;  %v5039_v13 = vor.u32 %v3816_v3, %v3514_v57  ;;  %v347_v58 = vpop.f32.mrf.mxu1 }
  0xac   :  { %6515 = vst [vmem:[#allocation67_spill] sm:$0xff] %v5031_v16  ;;  %v5047_v18 = vadd.f32 %v347_v58, %v4908_v26  ;;  %3366 = vmatmul.msk.bf16.gmra.mxu2 %vm175_vm0, %v4391_v5 }
  0xad   :  { %6516 = vst [vmem:[#allocation68_spill] sm:$0xff] %v5033_v11 }
  0xae   :  { %6517 = vst [vmem:[#allocation69_spill] sm:$0xff] %v5039_v13  ;;  %1045 = vmatpush.bf16.msra.mxu2 %v5033_v11 }
  0xaf   :  { %6518 = vst [vmem:[#allocation70_spill] sm:$0xff] %v5043_v10  ;;  %1058 = vmatpush.bf16.msra.mxu3 %v5039_v13 }
  0xb0   :  { %6519 = vst [vmem:[#allocation71_spill] sm:$0xff] %v5047_v18  ;;  %3370 = vmatmul.msk.bf16.gmra.mxu3 %vm175_vm0, %v4391_v5  ;;  %v212_v57 = vpop.f32.mrf.mxu2 }
  0xb1   :  { %v5057_v20 = vadd.f32 %v212_v57, %v4830_v8  ;;  %v5063_v3 = vpop.f32.mrf.mxu0  ;;  %v5075_v57 = vld [vmem:[%s6315_s1] sm:$0xff] }
  0xb2   :  { %v241_v38 = vpop.f32.mrf.mxu3  ;;  %6522 = vst [vmem:[#allocation74_spill] sm:$0xff] %v5063_v3  ;;  %vm556_vm1 = vcmp.gt.s32.totalorder %v5075_v57, 0  ;;  %vm1147_vm2 = vcmp.gt.s32.totalorder %v5075_v57, 1  ;;  %vm851_vm3 = vcmp.gt.s32.totalorder %v5075_v57, 7  ;;  %vm1285_vm4 = vcmp.gt.s32.totalorder %v5075_v57, 6 }
  0xb3   :  { %6520 = vst [vmem:[#allocation72_spill] sm:$0xff] %v5057_v20  ;;  %v5061_v58 = vadd.f32 %v241_v38, %v4846_v14  ;;  %v5066_v18 = vpop.f32.mrf.mxu1  ;;  %vm1699_vm5 = vcmp.gt.s32.totalorder %v5075_v57, 3  ;;  %vm1423_vm6 = vcmp.gt.s32.totalorder %v5075_v57, 2 }
  0xb4   :  { %6523 = vst [vmem:[#allocation75_spill] sm:$0xff] %v5066_v18 }
  0xb5   :  { %6521 = vst [vmem:[#allocation73_spill] sm:$0xff] %v5061_v58  ;;  %v6526_v58 = vmov 0  }
  0xb6   :  { %v836_v10 = vsel %vm556_vm1, 1, %v6526_v58 }
  0xb7   :  { %838 = vperm.xlu0 %3892, %v836_v10  }
  0xb8   :  { %v5070_v5 = vpop.f32.mrf.mxu2 }
  0xb9   :  { %6524 = vst [vmem:[#allocation76_spill] sm:$0xff] %v5070_v5  ;;  %v323_v38 = vpop.f32.mrf.mxu0 }
  0xba   :  { %v5077_v20 = vpop.f32.mrf.mxu3  ;;  %v5083_v16 = vadd.f32 %v323_v38, %v4905_v4  ;;  %v1131_v38 = vsel %vm851_vm3, 1, %v6526_v58 }
  0xbb   :  { %6525 = vst [vmem:[#allocation77_spill] sm:$0xff] %v5077_v20  ;;  %v352_v18 = vpop.f32.mrf.mxu1 }
  0xbc   :  { %6527 = vst [vmem:[#allocation78_spill] sm:$0xff] %v5083_v16  ;;  %v5086_v5 = vadd.f32 %v352_v18, %v4908_v26  ;;  %751 = vmatmul.bf16.vlgmr.msrb.gmra.mxu2 %v6526_v58  ;;  %v1268_v18 = vsel %vm1147_vm2, 1, %v6526_v58 }
  0xbd   :  { %1175 = vmatpush.bf16.msrb.mxu2 %v4584_v12  ;;  %1270 = vperm.xlu1 %3893, %v1268_v18   ;;  %v1406_v18 = vsel %vm1285_vm4, 1, %v6526_v58 }
  0xbe   :  { %6528 = vst [vmem:[#allocation79_spill] sm:$0xff] %v5086_v5 }
  0xbf   :  { %1133 = vperm.xlu0 %3892, %v1131_v38   ;;  %v1820_v38 = vsel %vm1699_vm5, 1, %v6526_v58 }
  0xc0   :  { %764 = vmatmul.bf16.vlgmr.msrb.gmra.mxu3 %v6526_v58  ;;  %v5092_v20 = vpop.f32.mrf.mxu2 }
  0xc1   :  { %1188 = vmatpush.bf16.msrb.mxu3 %v4537_v51  ;;  %v5096_v32 = vpop.f32.mrf.mxu0  ;;  %1176 = vmatpush.bf16.msrb.mxu2 %v4647_v41 }
  0xc2   :  { %v5094_v3 = vpop.f32.mrf.mxu3  ;;  %6529 = vst [vmem:[#allocation80_spill] sm:$0xff] %v5096_v32 }
  0xc3   :  { %v5099_v10 = vpop.f32.mrf.mxu1 }
  0xc4   :  { %6530 = vst [vmem:[#allocation81_spill] sm:$0xff] %v5099_v10 }
  0xc5   :  { %1189 = vmatpush.bf16.msrb.mxu3 %v4564_v0  ;;  %1177 = vmatpush.bf16.msrb.mxu2 %v4700_v17 }
  0xc6   :  { %1408 = vperm.xlu1 %3893, %v1406_v18   ;;  %v198_v18 = vadd.f32 %v4802_v34, %v4830_v8 }
  0xc7   :  { %1822 = vperm.xlu0 %3892, %v1820_v38  }
  0xc8   :  { %v5107_v5 = vpop.f32.mrf.mxu2 }
  0xc9   :  { %6531 = vst [vmem:[#allocation82_spill] sm:$0xff] %v5107_v5  ;;  %1190 = vmatpush.bf16.msrb.mxu3 %v4640_v39  ;;  %v328_v10 = vpop.f32.mrf.mxu0  ;;  %1178 = vmatpush.bf16.msrb.mxu2 %v4729_v36 }
  0xca   :  { %v5110_v16 = vpop.f32.mrf.mxu3  ;;  %v5114_v32 = vadd.f32 %v328_v10, %v4905_v4  ;;  %v5128_v10 = vperm.slane %v4800_v33, 2 }
  0xcb   :  { %6532 = vst [vmem:[#allocation83_spill] sm:$0xff] %v5110_v16  ;;  %v357_v27 = vpop.f32.mrf.mxu1 }
  0xcc   :  { %6533 = vst [vmem:[#allocation84_spill] sm:$0xff] %v5114_v32  ;;  %v5117_v7 = vadd.f32 %v357_v27, %v4908_v26  ;;  %1046 = vmatmul.bf16.vlgmr.msra.gmra.mxu2 %v6526_v58  ;;  %v5131_v27 = vperm.slane %v4800_v33, 3 }
  0xcd   :  { %1191 = vmatpush.bf16.msrb.mxu3 %v4678_v60  ;;  %1179 = vmatpush.bf16.msrb.mxu2 %v4753_v50  ;;  %6535 = vst [vmem:[#allocation86_spill] sm:$0xff] %v5128_v10 }
  0xce   :  { %6534 = vst [vmem:[#allocation85_spill] sm:$0xff] %v5117_v7 }
  0xcf   :  { %6536 = vst [vmem:[#allocation87_spill] sm:$0xff] %v5131_v27 }
  0xd0   :  { %1059 = vmatmul.bf16.vlgmr.msra.gmra.mxu3 %v6526_v58  ;;  %v260_v7 = vpop.f32.mrf.mxu2 }
  0xd1   :  { %1192 = vmatpush.bf16.msrb.mxu3 %v4743_v45  ;;  %v5135_v32 = vadd.f32 %v260_v7, %v5128_v10  ;;  %v5140_v6 = vpop.f32.mrf.mxu0  ;;  %1180 = vmatpush.bf16.msrb.mxu2 %v4768_v63  ;;  %v227_v7 = vadd.f32 %v4805_v40, %v4846_v14 }
  0xd2   :  { %v289_v5 = vpop.f32.mrf.mxu3 }
  0xd3   :  { %6537 = vst [vmem:[#allocation88_spill] sm:$0xff] %v5135_v32  ;;  %v5138_v16 = vadd.f32 %v289_v5, %v5131_v27  ;;  %v5143_v54 = vpop.f32.mrf.mxu1 }
  0xd5   :  { %6538 = vst [vmem:[#allocation89_spill] sm:$0xff] %v5138_v16  ;;  %1193 = vmatpush.bf16.msrb.mxu3 %v4774_v2  ;;  %1181 = vmatpush.bf16.msrb.mxu2 %v4788_v21 }
  0xd8   :  { %v5151_v38 = vpop.f32.mrf.mxu2 }
  0xd9   :  { %6539 = vst [vmem:[#allocation90_spill] sm:$0xff] %v5151_v38  ;;  %1194 = vmatpush.bf16.msrb.mxu3 %v4794_v28  ;;  %v726_v32 = vpop.f32.mrf.mxu0  ;;  %1182 = vmatpush.bf16.msrb.mxu2 %v4817_v55 }
  0xda   :  { %v5154_v5 = vpop.f32.mrf.mxu3  ;;  %v769_v16 = vadd.f32 %v726_v32, %v198_v18 }
  0xdb   :  { %6540 = vst [vmem:[#allocation91_spill] sm:$0xff] %v5154_v5  ;;  %v739_v48 = vpop.f32.mrf.mxu1 }
  0xdc   :  { %v770_v35 = vadd.f32 %v739_v48, %v227_v7  ;;  %v1544_v48 = vsel %vm1423_vm6, 1, %v6526_v58 }
  0xdd   :  { %1313 = vmatpush.bf16.msra.mxu2 %v4836_v19  ;;  %1195 = vmatpush.bf16.msrb.mxu3 %v4834_v15 }
  0xde   :  { %1546 = vperm.xlu2 %3894, %v1544_v48  }
  0xe0   :  { %v265_v34 = vpop.f32.mrf.mxu2 }
  0xe1   :  { %1326 = vmatpush.bf16.msra.mxu3 %v4851_v47  ;;  %1314 = vmatpush.bf16.msra.mxu2 %v4869_v37  ;;  %v5162_v40 = vadd.f32 %v265_v34, %v5128_v10  ;;  %v728_v32 = vpop.f32.mrf.mxu0 }
  0xe2   :  { %v294_v38 = vpop.f32.mrf.mxu3 }
  0xe3   :  { %6541 = vst [vmem:[#allocation92_spill] sm:$0xff] %v5162_v40  ;;  %v5166_v5 = vadd.f32 %v294_v38, %v5131_v27  ;;  %v741_v18 = vpop.f32.mrf.mxu1  ;;  %v5197_v40 = vperm.slane %v4800_v33, 6 }
  0xe5   :  { %1327 = vmatpush.bf16.msra.mxu3 %v4880_v62  ;;  %6542 = vst [vmem:[#allocation93_spill] sm:$0xff] %v5166_v5  ;;  %1315 = vmatpush.bf16.msra.mxu2 %v4896_v9 }
  0xe6   :  { %6549 = vst [vmem:[#allocation100_spill] sm:$0xff] %v5197_v40 }
  0xe8   :  { %v5173_v7 = vpop.f32.mrf.mxu2 }
  0xe9   :  { %1328 = vmatpush.bf16.msra.mxu3 %v4902_v43  ;;  %1316 = vmatpush.bf16.msra.mxu2 %v4925_v24  ;;  %6543 = vst [vmem:[#allocation94_spill] sm:$0xff] %v5173_v7 }
  0xea   :  { %v5175_v34 = vpop.f32.mrf.mxu3 }
  0xeb   :  { %6544 = vst [vmem:[#allocation95_spill] sm:$0xff] %v5175_v34 }
  0xed   :  { %1329 = vmatpush.bf16.msra.mxu3 %v4934_v53  ;;  %1317 = vmatpush.bf16.msra.mxu2 %v4957_v59 }
  0xf0   :  { %v270_v38 = vpop.f32.mrf.mxu2 }
  0xf1   :  { %1330 = vmatpush.bf16.msra.mxu3 %v4965_v23  ;;  %1318 = vmatpush.bf16.msra.mxu2 %v4979_v61  ;;  %v5182_v32 = vadd.f32 %v270_v38, %v5128_v10  ;;  %v1021_v38 = vpop.f32.mrf.mxu0 }
  0xf2   :  { %v299_v48 = vpop.f32.mrf.mxu3 }
  0xf3   :  { %6545 = vst [vmem:[#allocation96_spill] sm:$0xff] %v5182_v32  ;;  %v5186_v18 = vadd.f32 %v299_v48, %v5131_v27  ;;  %v1034_v32 = vpop.f32.mrf.mxu1  ;;  %v5200_v48 = vperm.slane %v4800_v33, 7 }
  0xf5   :  { %1331 = vmatpush.bf16.msra.mxu3 %v4993_v56  ;;  %6546 = vst [vmem:[#allocation97_spill] sm:$0xff] %v5186_v18  ;;  %1319 = vmatpush.bf16.msra.mxu2 %v5009_v1 }
  0xf6   :  { %6550 = vst [vmem:[#allocation101_spill] sm:$0xff] %v5200_v48 }
  0xf8   :  { %v5191_v7 = vpop.f32.mrf.mxu2 }
  0xf9   :  { %1332 = vmatpush.bf16.msra.mxu3 %v5015_v49  ;;  %1320 = vmatpush.bf16.msra.mxu2 %v5033_v11  ;;  %6547 = vst [vmem:[#allocation98_spill] sm:$0xff] %v5191_v7  ;;  %v1023_v7 = vpop.f32.mrf.mxu0 }
  0xfa   :  { %v5193_v34 = vpop.f32.mrf.mxu3 }
  0xfb   :  { %6548 = vst [vmem:[#allocation99_spill] sm:$0xff] %v5193_v34  ;;  %v1036_v34 = vpop.f32.mrf.mxu1 }
  0xfc   :  { %v360_v34 = vadd.f32 %v5143_v54, %v4908_v26  ;;  %v256_v26 = vadd.f32 %v5092_v20, %v5128_v10 }
  0xfd   :  { %1333 = vmatpush.bf16.msra.mxu3 %v5039_v13 }
 0x100   :  { %v371_v18 = vpop.f32.mrf.mxu2 }
 0x101   :  { %v5203_v5 = vadd.f32 %v371_v18, %v5197_v40 }
 0x102   :  { %v400_v14 = vpop.f32.mrf.mxu3 }
 0x103   :  { %6551 = vst [vmem:[#allocation102_spill] sm:$0xff] %v5203_v5  ;;  %v5206_v8 = vadd.f32 %v400_v14, %v5200_v48  ;;  %v3500_v14 = vmul.f32 -1.442695, %v770_v35  ;;  %v1065_v35 = vadd.f32 %v1034_v32, %v360_v34 }
 0x105   :  { %6552 = vst [vmem:[#allocation103_spill] sm:$0xff] %v5206_v8  ;;  %v3499_v8 = vmul.f32 -1.442695, %v769_v16  ;;  %3896 = vpow2.f32 %v3500_v14 }
 0x107   :  { %3898 = vpow2.f32 %v3499_v8 }
 0x108   :  { %v5208_v11 = vpop.f32.mrf.mxu2 }
 0x109   :  { %6553 = vst [vmem:[#allocation104_spill] sm:$0xff] %v5208_v11 }
 0x10a   :  { %v5210_v13 = vpop.f32.mrf.mxu3 }
 0x10b   :  { %6554 = vst [vmem:[#allocation105_spill] sm:$0xff] %v5210_v13 }
 0x110   :  { %v376_v49 = vpop.f32.mrf.mxu2 }
 0x111   :  { %v5213_v1 = vadd.f32 %v376_v49, %v5197_v40 }
 0x112   :  { %v405_v33 = vpop.f32.mrf.mxu3 }
 0x113   :  { %6555 = vst [vmem:[#allocation106_spill] sm:$0xff] %v5213_v1  ;;  %v5216_v56 = vadd.f32 %v405_v33, %v5200_v48  ;;  %v331_v33 = vadd.f32 %v5140_v6, %v4905_v4  ;;  %v3897_v1 = vpop.eup %3896 }
 0x114   :  { %v795_v16 = vadd.f32 1.0, %v3897_v1 }
 0x115   :  { %6556 = vst [vmem:[#allocation107_spill] sm:$0xff] %v5216_v56  ;;  %v3899_v56 = vpop.eup %3898  ;;  %v1064_v14 = vadd.f32 %v1021_v38, %v331_v33 }
 0x116   :  { %v776_v8 = vadd.f32 1.0, %v3899_v56  ;;  %3900 = vrcp.f32 %v795_v16  ;;  %vm801_vm7 = vweird.f32 %v795_v16 }
 0x118   :  { %v5218_v18 = vpop.f32.mrf.mxu2  ;;  %3902 = vrcp.f32 %v776_v8  ;;  %vm782_vm9 = vweird.f32 %v776_v8  ;;  %v788_v61 = vand.u32 2147483648, %v776_v8  ;;  %v786_v10 = vand.u32 2147483647, %v776_v8 }
 0x119   :  { %6557 = vst [vmem:[#allocation108_spill] sm:$0xff] %v5218_v18 }
 0x11a   :  { %v5220_v5 = vpop.f32.mrf.mxu3  ;;  %vm787_vm14 = vcmp.eq.f32.partialorder %v786_v10, 8.507059e+37 }
 0x11b   :  { %6558 = vst [vmem:[#allocation109_spill] sm:$0xff] %v5220_v5  ;;  %v3631_v5 = vmul.f32 -1.442695, %v1065_v35 }
 0x11d   :  { %3904 = vpow2.f32 %v3631_v5 }
 0x120   :  { %v381_v7 = vpop.f32.mrf.mxu2 }
 0x121   :  { %v5225_v11 = vadd.f32 %v381_v7, %v5197_v40  ;;  %v3630_v7 = vmul.f32 -1.442695, %v1064_v14 }
 0x122   :  { %v410_v49 = vpop.f32.mrf.mxu3 }
 0x123   :  { %6559 = vst [vmem:[#allocation110_spill] sm:$0xff] %v5225_v11  ;;  %v5228_v13 = vadd.f32 %v410_v49, %v5200_v48  ;;  %3906 = vpow2.f32 %v3630_v7  ;;  %v3901_v11 = vpop.eup %3900 }
 0x124   :  { %v3903_v32 = vpop.eup %3902  ;;  %v797_v38 = vmul.f32 %v3901_v11, %v795_v16  ;;  %vm802_vm8 = vweird.f32 %v3901_v11 }
 0x125   :  { %6560 = vst [vmem:[#allocation111_spill] sm:$0xff] %v5228_v13  ;;  %v3905_v56 = vpop.eup %3904  ;;  %v778_v33 = vmul.f32 %v3903_v32, %v776_v8  ;;  %vm783_vm10 = vweird.f32 %v3903_v32  ;;  %vm5256_vm11 = vmor %vm801_vm7, %vm802_vm8  ;;  %vm1837_vm8 = vcmp.gt.s32.totalorder %v5075_v57, 4 }
 0x126   :  { %v5242_v35 = vadd.f32 1.0, %v3905_v56  ;;  %v798_v14 = vsub.f32 1.0, %v797_v38  ;;  %v285_v56 = vadd.f32 %v5094_v3, %v5131_v27  ;;  %v807_v38 = vand.u32 2147483648, %v795_v16  ;;  %vm5264_vm12 = vmor %vm782_vm9, %vm783_vm10 }
 0x127   :  { %vm1561_vm9 = vcmp.gt.s32.totalorder %v5075_v57, 5 }
 0x128   :  { %v5232_v18 = vpop.f32.mrf.mxu2  ;;  %3908 = vrcp.f32 %v5242_v35  ;;  %vm1096_vm0 = vweird.f32 %v5242_v35 }
 0x129   :  { %6561 = vst [vmem:[#allocation112_spill] sm:$0xff] %v5232_v18  ;;  %v3907_v34 = vpop.eup %3906  ;;  %v5274_v53 = vpop.permute.xlu0 %838 }
 0x12a   :  { %v5234_v54 = vpop.f32.mrf.mxu3  ;;  %v5244_v18 = vadd.f32 1.0, %v3907_v34  ;;  %6569 = vst [vmem:[#allocation116_spill] sm:$0xff] %v5274_v53  ;;  %vm840_vm15 = vcmp.eq.s32.totalorder %v5274_v53, 1  ;;  %v6651_v53 = vld [vmem:[#allocation62_spill] sm:$0xff] }
 0x12b   :  { %6562 = vst [vmem:[#allocation113_spill] sm:$0xff] %v5234_v54  ;;  %v779_v54 = vsub.f32 1.0, %v778_v33 }
 0x12c   :  { %3910 = vrcp.f32 %v5244_v18  ;;  %vm1077_vm2 = vweird.f32 %v5244_v18 }
 0x12e   :  { %v5254_v34 = vpop.eup %3908 }
 0x12f   :  { %v1092_v27 = vmul.f32 %v5254_v34, %v5242_v35  ;;  %vm1097_vm1 = vweird.f32 %v5254_v34 }
 0x130   :  { %v386_v49 = vpop.f32.mrf.mxu2  ;;  %vm5297_vm4 = vmor %vm1096_vm0, %vm1097_vm1 }
 0x131   :  { %v5237_v6 = vadd.f32 %v386_v49, %v5197_v40  ;;  %v799_v49 = vmul.f32 %v3901_v11, %v798_v14  ;;  %vm3633_vm0 = vmpackc.low %vm840_vm15, %vm840_vm15 }
 0x132   :  { %v5260_v23 = vpop.eup %3910 }
 0x133   :  { %6563 = vst [vmem:[#allocation114_spill] sm:$0xff] %v5237_v6  ;;  %v415_v13 = vpop.f32.mrf.mxu3  ;;  %v800_v33 = vadd.f32 %v3901_v11, %v799_v49  ;;  %v805_v6 = vand.u32 2147483647, %v795_v16  ;;  %v1073_v49 = vmul.f32 %v5260_v23, %v5244_v18  ;;  %vm1078_vm3 = vweird.f32 %v5260_v23 }
 0x134   :  { %v5240_v1 = vadd.f32 %v415_v13, %v5200_v48  ;;  %v780_v13 = vmul.f32 %v3903_v32, %v779_v54  ;;  %vm5305_vm5 = vmor %vm1077_vm2, %vm1078_vm3 }
 0x135   :  { %v804_v16 = vsel %vm5256_vm11, %v3901_v11, %v800_v33  ;;  %vm806_vm13 = vcmp.eq.f32.partialorder %v805_v6, 8.507059e+37 }
 0x136   :  { %6564 = vst [vmem:[#allocation115_spill] sm:$0xff] %v5240_v1  ;;  %v781_v20 = vadd.f32 %v3903_v32, %v780_v13  ;;  %v789_v13 = vor.u32 1.1754944e-38, %v788_v61 }
 0x138   :  { %v388_v5 = vpop.f32.mrf.mxu2  ;;  %v785_v8 = vsel %vm5264_vm12, %v3903_v32, %v781_v20 }
 0x139   :  { %v389_v20 = vadd.f32 %v388_v5, %v5197_v40  ;;  %v1081_v5 = vand.u32 2147483647, %v5244_v18  ;;  %v6602_v40 = vld [vmem:[#allocation30_spill] sm:$0xff] }
 0x13b   :  { %v5246_v7 = vpop.f32.mrf.mxu3  ;;  %vm1082_vm7 = vcmp.eq.f32.partialorder %v1081_v5, 8.507059e+37 }
 0x140   :  { %v752_v4 = vpop.f32.mrf.mxu2 }
 0x141   :  { %v771_v1 = vadd.f32 %v752_v4, %v256_v26  ;;  %v808_v4 = vor.u32 1.1754944e-38, %v807_v38  ;;  %v1074_v38 = vsub.f32 1.0, %v1073_v49 }
 0x143   :  { %v765_v14 = vpop.f32.mrf.mxu3  ;;  %3912 = vtanh.f32 %v771_v1  ;;  %v1075_v10 = vmul.f32 %v5260_v23, %v1074_v38 }
 0x144   :  { %v772_v3 = vadd.f32 %v765_v14, %v285_v56  ;;  %v1093_v56 = vsub.f32 1.0, %v1092_v27  ;;  %v809_v14 = vsel %vm806_vm13, %v808_v4, %v804_v16  ;;  %v1102_v27 = vand.u32 2147483648, %v5242_v35 }
 0x145   :  { %v831_v6 = vmul.f32 0.0, %v809_v14  ;;  %v418_v16 = vadd.f32 %v5246_v7, %v5200_v48  ;;  %v1076_v14 = vadd.f32 %v5260_v23, %v1075_v10  ;;  %v1958_v10 = vsel %vm1837_vm8, 1, %v6526_v58  ;;  %v6603_v48 = vld [vmem:[#allocation31_spill] sm:$0xff] }
 0x146   :  { %v3501_v26 = vmul.f32 -1.442695, %v772_v3  ;;  %v790_v3 = vsel %vm787_vm14, %v789_v13, %v785_v8  ;;  %v1094_v61 = vmul.f32 %v5254_v34, %v1093_v56  ;;  %v1083_v13 = vand.u32 2147483648, %v5244_v18  ;;  %1960 = vperm.xlu1 %3893, %v1958_v10  }
 0x147   :  { %v1103_v38 = vor.u32 1.1754944e-38, %v1102_v27 }
 0x148   :  { %3914 = vpow2.f32 %v3501_v26  ;;  %v754_v29 = vpop.f32.mrf.mxu2  ;;  %v1095_v4 = vadd.f32 %v5254_v34, %v1094_v61  ;;  %v1100_v26 = vand.u32 2147483647, %v5242_v35  ;;  %v1080_v61 = vsel %vm5305_vm5, %v5260_v23, %v1076_v14 }
 0x149   :  { %v3913_v1 = vpop.eup %3912 }
 0x14a   :  { %v832_v11 = vmul.f32 %v3913_v1, %v790_v3  ;;  %v1099_v3 = vsel %vm5297_vm4, %v5254_v34, %v1095_v4  ;;  %vm1101_vm6 = vcmp.eq.f32.partialorder %v1100_v26, 8.507059e+37  ;;  %v1682_v34 = vsel %vm1561_vm9, 1, %v6526_v58 }
 0x14b   :  { %v767_v54 = vpop.f32.mrf.mxu3  ;;  %1684 = vperm.xlu2 %3894, %v1682_v34   ;;  %v6576_v34 = vld [vmem:[#allocation6_spill] sm:$0xff] }
 0x14c   :  { %v833_v59 = vadd.f32 %v832_v11, %v831_v6  ;;  %v1084_v54 = vor.u32 1.1754944e-38, %v1083_v13 }
 0x14e   :  { %v3915_v33 = vpop.eup %3914  ;;  %v5285_v29 = vsel %vm840_vm15, %v833_v59, 0.0  ;;  %v1085_v26 = vsel %vm1082_vm7, %v1084_v54, %v1080_v61 }
 0x14f   :  { %v5278_v32 = vadd.f32 1.0, %v3915_v33  ;;  %v1104_v33 = vsel %vm1101_vm6, %v1103_v38, %v1099_v3 }
 0x150   :  { %v1047_v49 = vpop.f32.mrf.mxu2 }
 0x151   :  { %3916 = vrcp.f32 %v5278_v32  ;;  %v1066_v56 = vadd.f32 %v1047_v49, %v389_v20  ;;  %v827_v23 = vand.u32 2147483648, %v5278_v32  ;;  %v825_v13 = vand.u32 2147483647, %v5278_v32 }
 0x152   :  { %vm821_vm12 = vweird.f32 %v5278_v32 }
 0x153   :  { %v1060_v1 = vpop.f32.mrf.mxu3  ;;  %3918 = vtanh.f32 %v1066_v56  ;;  %v5322_v56 = vpop.permute.xlu0 %1133  ;;  %vm826_vm14 = vcmp.eq.f32.partialorder %v825_v13, 8.507059e+37 }
 0x154   :  { %v1067_v7 = vadd.f32 %v1060_v1, %v418_v16  ;;  %v1126_v16 = vmul.f32 0.0, %v1104_v33  ;;  %6574 = vst [vmem:[#allocation117_spill] sm:$0xff] %v5322_v56  ;;  %vm1135_vm11 = vcmp.eq.s32.totalorder %v5322_v56, 1  ;;  %v828_v1 = vor.u32 1.1754944e-38, %v827_v23  ;;  %v6577_v23 = vld [vmem:[#allocation7_spill] sm:$0xff] }
 0x155   :  { %vm3648_vm5 = vmpackc.low %vm1135_vm11, %vm1135_vm11  ;;  %v6650_v56 = vld [vmem:[#allocation59_spill] sm:$0xff] }
 0x156   :  { %v3632_v11 = vmul.f32 -1.442695, %v1067_v7 }
 0x157   :  { %v3917_v6 = vpop.eup %3916 }
 0x158   :  { %v817_v18 = vmul.f32 %v3917_v6, %v5278_v32  ;;  %3920 = vpow2.f32 %v3632_v11  ;;  %v1049_v20 = vpop.f32.mrf.mxu2  ;;  %vm822_vm10 = vweird.f32 %v3917_v6 }
 0x159   :  { %v3919_v4 = vpop.eup %3918  ;;  %3922 = vtanh.f32 %v833_v59  ;;  %vm823_vm13 = vmor %vm821_vm12, %vm822_vm10 }
 0x15a   :  { %v818_v27 = vsub.f32 1.0, %v817_v18  ;;  %v1127_v8 = vmul.f32 %v3919_v4, %v1085_v26  ;;  %v6578_v26 = vld [vmem:[#allocation8_spill] sm:$0xff] }
 0x15b   :  { %v1062_v49 = vpop.f32.mrf.mxu3 }
 0x15c   :  { %v819_v57 = vmul.f32 %v3917_v6, %v818_v27  ;;  %v1128_v5 = vadd.f32 %v1127_v8, %v1126_v16  ;;  %v6580_v8 = vld [vmem:[#allocation9_spill] sm:$0xff] }
 0x15e   :  { %v3921_v58 = vpop.eup %3920  ;;  %v820_v14 = vadd.f32 %v3917_v6, %v819_v57  ;;  %v5328_v7 = vsel %vm1135_vm11, %v1128_v5, 0.0 }
 0x15f   :  { %v1110_v59 = vadd.f32 1.0, %v3921_v58  ;;  %v3923_v38 = vpop.eup %3922  ;;  %v6581_v58 = vld [vmem:[#allocation10_spill] sm:$0xff] }
 0x160   :  { %v824_v35 = vsel %vm823_vm13, %v3917_v6, %v820_v14  ;;  %v6582_v14 = vld [vmem:[#allocation11_spill] sm:$0xff] }
 0x161   :  { %v829_v3 = vsel %vm826_vm14, %v828_v1, %v824_v35  ;;  %3924 = vrcp.f32 %v1110_v59  ;;  %v1122_v18 = vand.u32 2147483648, %v1110_v59  ;;  %v1120_v10 = vand.u32 2147483647, %v1110_v59  ;;  %v6584_v1 = vld [vmem:[#allocation13_spill] sm:$0xff]  ;;  %v6586_v35 = vld [vmem:[#allocation15_spill] sm:$0xff] }
 0x162   :  { %v5330_v54 = vmul.f32 %v3923_v38, %v829_v3  ;;  %3926 = vtanh.f32 %v1128_v5  ;;  %vm1116_vm2 = vweird.f32 %v1110_v59  ;;  %v6583_v5 = vld [vmem:[#allocation12_spill] sm:$0xff]  ;;  %v6587_v38 = vld [vmem:[#allocation19_spill] sm:$0xff] }
 0x163   :  { %v1123_v20 = vor.u32 1.1754944e-38, %v1122_v18  ;;  %vm1121_vm4 = vcmp.eq.f32.partialorder %v1120_v10, 8.507059e+37  ;;  %v6588_v3 = vld [vmem:[#allocation20_spill] sm:$0xff]  ;;  %v6593_v18 = vld [vmem:[#allocation53_spill] sm:$0xff]  ;;  %v6595_v10 = vld [vmem:[#allocation27_spill] sm:$0xff] }
 0x164   :  { %6575 = vst [vmem:[#allocation118_spill] sm:$0xff] %v5330_v54  ;;  %v3634_v32 = vpack.c.bf16 %v5330_v54, %v5330_v54 }
 0x166   :  { %3635 = vmatmul.msk.bf16.vlgmr.msra.gmra.mxu0 %vm3633_vm0, %v3634_v32  ;;  %3638 = vmatmul.msk.bf16.vlgmr.msra.gmra.mxu1 %vm3633_vm0, %v3634_v32 }
 0x167   :  { %v3925_v11 = vpop.eup %3924  ;;  %3641 = vmatmul.msk.bf16.vlgmr.msrb.gmra.mxu2 %vm3633_vm0, %v3634_v32  ;;  %3644 = vmatmul.msk.bf16.vlgmr.msrb.gmra.mxu3 %vm3633_vm0, %v3634_v32  ;;  %v6589_v32 = vld [vmem:[#allocation21_spill] sm:$0xff] }
 0x168   :  { %v1112_v6 = vmul.f32 %v3925_v11, %v1110_v59  ;;  %1425 = vmatpush.bf16.msra.mxu0 %v4311_v42  ;;  %1438 = vmatpush.bf16.msra.mxu1 %v4326_v46  ;;  %vm1117_vm1 = vweird.f32 %v3925_v11  ;;  %v3927_v16 = vpop.eup %3926  ;;  %v6585_v59 = vld [vmem:[#allocation14_spill] sm:$0xff] }
 0x169   :  { %1451 = vmatpush.bf16.msrb.mxu2 %v4584_v12  ;;  %1464 = vmatpush.bf16.msrb.mxu3 %v4537_v51  ;;  %vm1118_vm3 = vmor %vm1116_vm2, %vm1117_vm1 }
 0x16a   :  { %v1113_v61 = vsub.f32 1.0, %v1112_v6  ;;  %v6591_v6 = vld [vmem:[#allocation23_spill] sm:$0xff] }
 0x16c   :  { %v1114_v33 = vmul.f32 %v3925_v11, %v1113_v61  ;;  %1426 = vmatpush.bf16.msra.mxu0 %v4342_v52  ;;  %1439 = vmatpush.bf16.msra.mxu1 %v6576_v34  ;;  %v6592_v61 = vld [vmem:[#allocation24_spill] sm:$0xff] }
 0x16d   :  { %1452 = vmatpush.bf16.msrb.mxu2 %v4647_v41  ;;  %1465 = vmatpush.bf16.msrb.mxu3 %v4564_v0 }
 0x16e   :  { %v1115_v27 = vadd.f32 %v3925_v11, %v1114_v33  ;;  %v6594_v33 = vld [vmem:[#allocation26_spill] sm:$0xff] }
 0x170   :  { %v1119_v4 = vsel %vm1118_vm3, %v3925_v11, %v1115_v27  ;;  %1427 = vmatpush.bf16.msra.mxu0 %v6577_v23  ;;  %1440 = vmatpush.bf16.msra.mxu1 %v6578_v26  ;;  %v6590_v11 = vld [vmem:[#allocation22_spill] sm:$0xff]  ;;  %v6596_v27 = vld [vmem:[#allocation56_spill] sm:$0xff] }
 0x171   :  { %v1124_v49 = vsel %vm1121_vm4, %v1123_v20, %v1119_v4  ;;  %1453 = vmatpush.bf16.msrb.mxu2 %v4700_v17  ;;  %1466 = vmatpush.bf16.msrb.mxu3 %v4640_v39  ;;  %v6597_v20 = vld [vmem:[#allocation57_spill] sm:$0xff]  ;;  %v6598_v4 = vld [vmem:[#allocation28_spill] sm:$0xff] }
 0x172   :  { %v5349_v57 = vmul.f32 %v3927_v16, %v1124_v49  ;;  %v6599_v16 = vld [vmem:[#allocation29_spill] sm:$0xff]  ;;  %v6600_v49 = vld [vmem:[#allocation59_spill] sm:$0xff] }
 0x174   :  { %6579 = vst [vmem:[#allocation6_spill] sm:$0xff] %v5349_v57  ;;  %v3649_v13 = vpack.c.bf16 %v5349_v57, %v5349_v57  ;;  %1428 = vmatpush.bf16.msra.mxu0 %v6580_v8  ;;  %1441 = vmatpush.bf16.msra.mxu1 %v6581_v58 }
 0x175   :  { %1454 = vmatpush.bf16.msrb.mxu2 %v4729_v36  ;;  %1467 = vmatpush.bf16.msrb.mxu3 %v4678_v60 }
 0x176   :  { %3650 = vmatmul.msk.bf16.vlgmr.msrb.gmra.mxu0 %vm3648_vm5, %v3649_v13  ;;  %3653 = vmatmul.msk.bf16.vlgmr.msrb.gmra.mxu1 %vm3648_vm5, %v3649_v13 }
 0x177   :  { %3656 = vmatmul.msk.bf16.vlgmr.msra.gmra.mxu2 %vm3648_vm5, %v3649_v13  ;;  %3659 = vmatmul.msk.bf16.vlgmr.msra.gmra.mxu3 %vm3648_vm5, %v3649_v13  ;;  %v6601_v13 = vld [vmem:[#allocation62_spill] sm:$0xff] }
 0x178   :  { %1429 = vmatpush.bf16.msra.mxu0 %v6582_v14  ;;  %1442 = vmatpush.bf16.msra.mxu1 %v6583_v5 }
 0x179   :  { %1455 = vmatpush.bf16.msrb.mxu2 %v4753_v50  ;;  %1468 = vmatpush.bf16.msrb.mxu3 %v4743_v45 }
 0x17c   :  { %1430 = vmatpush.bf16.msra.mxu0 %v6584_v1  ;;  %1443 = vmatpush.bf16.msra.mxu1 %v6585_v59 }
 0x17d   :  { %1456 = vmatpush.bf16.msrb.mxu2 %v4768_v63  ;;  %1469 = vmatpush.bf16.msrb.mxu3 %v4774_v2 }
 0x180   :  { %1431 = vmatpush.bf16.msra.mxu0 %v6586_v35  ;;  %1444 = vmatpush.bf16.msra.mxu1 %v4453_v25 }
 0x181   :  { %1457 = vmatpush.bf16.msrb.mxu2 %v4788_v21  ;;  %1470 = vmatpush.bf16.msrb.mxu3 %v4794_v28 }
 0x184   :  { %1432 = vmatpush.bf16.msra.mxu0 %v4468_v30  ;;  %1445 = vmatpush.bf16.msra.mxu1 %v4471_v31 }
 0x185   :  { %1458 = vmatpush.bf16.msrb.mxu2 %v4817_v55  ;;  %1471 = vmatpush.bf16.msrb.mxu3 %v4834_v15 }
 0x188   :  { %1563 = vmatpush.bf16.msrb.mxu0 %v4518_v44  ;;  %1576 = vmatpush.bf16.msrb.mxu1 %v6587_v38 }
 0x189   :  { %1589 = vmatpush.bf16.msra.mxu2 %v4836_v19  ;;  %1602 = vmatpush.bf16.msra.mxu3 %v4851_v47 }
 0x18c   :  { %1564 = vmatpush.bf16.msrb.mxu0 %v6588_v3  ;;  %1577 = vmatpush.bf16.msrb.mxu1 %v6589_v32 }
 0x18d   :  { %1590 = vmatpush.bf16.msra.mxu2 %v4869_v37  ;;  %1603 = vmatpush.bf16.msra.mxu3 %v4880_v62 }
 0x190   :  { %1565 = vmatpush.bf16.msrb.mxu0 %v6590_v11  ;;  %1578 = vmatpush.bf16.msrb.mxu1 %v6591_v6  ;;  %v6615_v6 = vld [vmem:[#allocation83_spill] sm:$0xff] }
 0x191   :  { %1591 = vmatpush.bf16.msra.mxu2 %v4896_v9  ;;  %1604 = vmatpush.bf16.msra.mxu3 %v4902_v43 }
 0x194   :  { %1566 = vmatpush.bf16.msrb.mxu0 %v6592_v61  ;;  %1579 = vmatpush.bf16.msrb.mxu1 %v4607_v22  ;;  %v6613_v22 = vld [vmem:[#allocation45_spill] sm:$0xff] }
 0x195   :  { %1592 = vmatpush.bf16.msra.mxu2 %v4925_v24  ;;  %1605 = vmatpush.bf16.msra.mxu3 %v6593_v18  ;;  %v6604_v18 = vld [vmem:[#allocation64_spill] sm:$0xff] }
 0x198   :  { %1567 = vmatpush.bf16.msrb.mxu0 %v6594_v33  ;;  %1580 = vmatpush.bf16.msrb.mxu1 %v6595_v10  ;;  %v6605_v33 = vld [vmem:[#allocation65_spill] sm:$0xff]  ;;  %v6606_v10 = vld [vmem:[#allocation32_spill] sm:$0xff] }
 0x199   :  { %1593 = vmatpush.bf16.msra.mxu2 %v6596_v27  ;;  %1606 = vmatpush.bf16.msra.mxu3 %v6597_v20  ;;  %v6607_v27 = vld [vmem:[#allocation33_spill] sm:$0xff]  ;;  %v6608_v20 = vld [vmem:[#allocation68_spill] sm:$0xff] }
 0x19c   :  { %1568 = vmatpush.bf16.msrb.mxu0 %v6598_v4  ;;  %1581 = vmatpush.bf16.msrb.mxu1 %v6599_v16  ;;  %v6609_v4 = vld [vmem:[#allocation69_spill] sm:$0xff]  ;;  %v6610_v16 = vld [vmem:[#allocation35_spill] sm:$0xff] }
 0x19d   :  { %1594 = vmatpush.bf16.msra.mxu2 %v6600_v49  ;;  %1607 = vmatpush.bf16.msra.mxu3 %v6601_v13  ;;  %v6611_v49 = vld [vmem:[#allocation43_spill] sm:$0xff]  ;;  %v6612_v13 = vld [vmem:[#allocation38_spill] sm:$0xff] }
 0x19e   :  { %v200_v24 = vadd.f32 %v6611_v49, %v6610_v16 }
 0x1a0   :  { %1569 = vmatpush.bf16.msrb.mxu0 %v6602_v40  ;;  %1582 = vmatpush.bf16.msrb.mxu1 %v6603_v48  ;;  %v229_v40 = vadd.f32 %v6613_v22, %v6612_v13 }
 0x1a1   :  { %1595 = vmatpush.bf16.msra.mxu2 %v6604_v18  ;;  %1608 = vmatpush.bf16.msra.mxu3 %v6605_v33 }
 0x1a4   :  { %1570 = vmatpush.bf16.msrb.mxu0 %v6606_v10  ;;  %1583 = vmatpush.bf16.msrb.mxu1 %v6607_v27  ;;  %v6614_v10 = vld [vmem:[#allocation87_spill] sm:$0xff] }
 0x1a5   :  { %1596 = vmatpush.bf16.msra.mxu2 %v6608_v20  ;;  %1609 = vmatpush.bf16.msra.mxu3 %v6609_v4  ;;  %v287_v27 = vadd.f32 %v6615_v6, %v6614_v10 }
 0x1e3   :  { %v1158_v61 = vpop.f32.mrf.mxu0  ;;  %v1171_v48 = vpop.f32.mrf.mxu1 }
 0x1e4   :  { %v1201_v43 = vadd.f32 %v1158_v61, %v200_v24  ;;  %v1202_v18 = vadd.f32 %v1171_v48, %v229_v40  ;;  %v6617_v40 = vld [vmem:[#allocation82_spill] sm:$0xff] }
 0x1e6   :  { %v3645_v9 = vmul.f32 -1.442695, %v1201_v43  ;;  %v3646_v33 = vmul.f32 -1.442695, %v1202_v18  ;;  %v6618_v18 = vld [vmem:[#allocation84_spill] sm:$0xff] }
 0x1e8   :  { %3928 = vpow2.f32 %v3645_v9  ;;  %v6616_v9 = vld [vmem:[#allocation86_spill] sm:$0xff] }
 0x1e9   :  { %3930 = vpow2.f32 %v3646_v33  ;;  %v258_v48 = vadd.f32 %v6617_v40, %v6616_v9 }
 0x1ea   :  { %v1184_v20 = vpop.f32.mrf.mxu2  ;;  %v1197_v11 = vpop.f32.mrf.mxu3 }
 0x1eb   :  { %v1204_v4 = vadd.f32 %v1197_v11, %v287_v27  ;;  %v1160_v62 = vpop.f32.mrf.mxu0  ;;  %v1173_v37 = vpop.f32.mrf.mxu1  ;;  %v6619_v11 = vld [vmem:[#allocation85_spill] sm:$0xff]  ;;  %v1203_v27 = vadd.f32 %v1184_v20, %v258_v48 }
 0x1ed   :  { %v3647_v49 = vmul.f32 -1.442695, %v1204_v4 }
 0x1ee   :  { %v3929_v16 = vpop.eup %3928 }
 0x1ef   :  { %v3931_v32 = vpop.eup %3930  ;;  %v1208_v22 = vadd.f32 1.0, %v3929_v16  ;;  %3932 = vpow2.f32 %v3647_v49 }
 0x1f0   :  { %v1227_v13 = vadd.f32 1.0, %v3931_v32 }
 0x1f1   :  { %3934 = vrcp.f32 %v1208_v22  ;;  %v1218_v40 = vand.u32 2147483647, %v1208_v22  ;;  %vm1214_vm9 = vweird.f32 %v1208_v22 }
 0x1f2   :  { %3936 = vrcp.f32 %v1227_v13  ;;  %v1186_v24 = vpop.f32.mrf.mxu2  ;;  %v1199_v43 = vpop.f32.mrf.mxu3  ;;  %vm1233_vm8 = vweird.f32 %v1227_v13 }
 0x1f3   :  { %v1296_v6 = vpop.f32.mrf.mxu0  ;;  %v1309_v61 = vpop.f32.mrf.mxu1  ;;  %vm1219_vm12 = vcmp.eq.f32.partialorder %v1218_v40, 8.507059e+37 }
 0x1f4   :  { %v1339_v33 = vadd.f32 %v1296_v6, %v6618_v18  ;;  %v1340_v62 = vadd.f32 %v1309_v61, %v6619_v11  ;;  %v1239_v61 = vand.u32 2147483648, %v1227_v13  ;;  %v1220_v11 = vand.u32 2147483648, %v1208_v22 }
 0x1f5   :  { %v3933_v37 = vpop.eup %3932 }
 0x1f6   :  { %v5418_v4 = vadd.f32 1.0, %v3933_v37  ;;  %v3660_v16 = vmul.f32 -1.442695, %v1339_v33  ;;  %v3661_v32 = vmul.f32 -1.442695, %v1340_v62  ;;  %v6620_v37 = vld [vmem:[#allocation115_spill] sm:$0xff] }
 0x1f7   :  { %v3935_v49 = vpop.eup %3934  ;;  %v1237_v62 = vand.u32 2147483647, %v1227_v13 }
 0x1f8   :  { %v3937_v10 = vpop.eup %3936  ;;  %v1210_v3 = vmul.f32 %v3935_v49, %v1208_v22  ;;  %3938 = vrcp.f32 %v5418_v4  ;;  %vm1215_vm6 = vweird.f32 %v3935_v49  ;;  %vm1253_vm2 = vweird.f32 %v5418_v4 }
 0x1f9   :  { %v1229_v24 = vmul.f32 %v3937_v10, %v1227_v13  ;;  %3940 = vtanh.f32 %v1203_v27  ;;  %vm1234_vm7 = vweird.f32 %v3937_v10  ;;  %vm1216_vm10 = vmor %vm1214_vm9, %vm1215_vm6  ;;  %vm1238_vm14 = vcmp.eq.f32.partialorder %v1237_v62, 8.507059e+37  ;;  %v5427_v62 = vpop.permute.xlu1 %1270 }
 0x1fa   :  { %v1211_v43 = vsub.f32 1.0, %v1210_v3  ;;  %3942 = vpow2.f32 %v3660_v16  ;;  %v1322_v9 = vpop.f32.mrf.mxu2  ;;  %v1335_v6 = vpop.f32.mrf.mxu3  ;;  %vm1235_vm13 = vmor %vm1233_vm8, %vm1234_vm7  ;;  %6621 = vst [vmem:[#allocation7_spill] sm:$0xff] %v5427_v62  ;;  %vm1272_vm1 = vcmp.eq.s32.totalorder %v5427_v62, 1  ;;  %v6654_v62 = vld [vmem:[#allocation64_spill] sm:$0xff] }
 0x1fb   :  { %v1230_v18 = vsub.f32 1.0, %v1229_v24  ;;  %3944 = vpow2.f32 %v3661_v32  ;;  %v1298_v20 = vpop.f32.mrf.mxu0  ;;  %v1311_v48 = vpop.f32.mrf.mxu1  ;;  %v1342_v47 = vadd.f32 %v1335_v6, %v6620_v37  ;;  %v1221_v24 = vor.u32 1.1754944e-38, %v1220_v11 }
 0x1fc   :  { %v1212_v33 = vmul.f32 %v3935_v49, %v1211_v43  ;;  %v1240_v43 = vor.u32 1.1754944e-38, %v1239_v61 }
 0x1fd   :  { %v1231_v19 = vmul.f32 %v3937_v10, %v1230_v18  ;;  %v3662_v27 = vmul.f32 -1.442695, %v1342_v47 }
 0x1fe   :  { %v3939_v38 = vpop.eup %3938  ;;  %v1213_v3 = vadd.f32 %v3935_v49, %v1212_v33 }
 0x1ff   :  { %v3941_v16 = vpop.eup %3940  ;;  %v1232_v44 = vadd.f32 %v3937_v10, %v1231_v19  ;;  %v1249_v32 = vmul.f32 %v3939_v38, %v5418_v4  ;;  %3946 = vpow2.f32 %v3662_v27  ;;  %vm1254_vm0 = vweird.f32 %v3939_v38 }
 0x200   :  { %v3943_v20 = vpop.eup %3942  ;;  %v1217_v48 = vsel %vm1216_vm10, %v3935_v49, %v1213_v3  ;;  %v1257_v27 = vand.u32 2147483647, %v5418_v4  ;;  %vm1255_vm3 = vmor %vm1253_vm2, %vm1254_vm0 }
 0x201   :  { %v3945_v6 = vpop.eup %3944  ;;  %v1222_v18 = vsel %vm1219_vm12, %v1221_v24, %v1217_v48  ;;  %v1236_v37 = vsel %vm1235_vm13, %v3937_v10, %v1232_v44  ;;  %v1250_v13 = vsub.f32 1.0, %v1249_v32  ;;  %v1346_v33 = vadd.f32 1.0, %v3943_v20 }
 0x202   :  { %v1241_v22 = vsel %vm1238_vm14, %v1240_v43, %v1236_v37  ;;  %v1264_v47 = vmul.f32 %v3941_v16, %v1222_v18  ;;  %v5423_v15 = vadd.f32 1.0, %v3945_v6  ;;  %v1324_v40 = vpop.f32.mrf.mxu2  ;;  %v1337_v11 = vpop.f32.mrf.mxu3  ;;  %v1259_v44 = vand.u32 2147483648, %v5418_v4  ;;  %v6622_v16 = vld [vmem:[#allocation114_spill] sm:$0xff] }
 0x203   :  { %v1263_v19 = vmul.f32 %v1241_v22, %v5285_v29  ;;  %v1251_v55 = vmul.f32 %v3939_v38, %v1250_v13  ;;  %3948 = vrcp.f32 %v1346_v33  ;;  %v1341_v24 = vadd.f32 %v1322_v9, %v6622_v16 }
 0x204   :  { %3950 = vrcp.f32 %v5423_v15  ;;  %v1260_v6 = vor.u32 1.1754944e-38, %v1259_v44  ;;  %vm1258_vm4 = vcmp.eq.f32.partialorder %v1257_v27, 8.507059e+37  ;;  %v1377_v13 = vand.u32 2147483648, %v5423_v15 }
 0x205   :  { %v1265_v49 = vadd.f32 %v1264_v47, %v1263_v19  ;;  %v3947_v61 = vpop.eup %3946  ;;  %v1252_v3 = vadd.f32 %v3939_v38, %v1251_v55  ;;  %v1358_v22 = vand.u32 2147483648, %v1346_v33  ;;  %v1356_v40 = vand.u32 2147483647, %v1346_v33 }
 0x206   :  { %v5431_v10 = vadd.f32 1.0, %v3947_v61  ;;  %v1375_v61 = vand.u32 2147483647, %v5423_v15  ;;  %vm1352_vm7 = vweird.f32 %v1346_v33  ;;  %vm1371_vm8 = vweird.f32 %v5423_v15 }
 0x207   :  { %3952 = vtanh.f32 %v1265_v49  ;;  %v5439_v32 = vsel %vm1272_vm1, %v1265_v49, %v5285_v29  ;;  %v1256_v48 = vsel %vm1255_vm3, %v3939_v38, %v1252_v3  ;;  %v841_v38 = vsel %vm840_vm15, %v5330_v54, 0.0  ;;  %v6653_v54 = vld [vmem:[#allocation31_spill] sm:$0xff] }
 0x208   :  { %3954 = vrcp.f32 %v5431_v10  ;;  %v1261_v29 = vsel %vm1258_vm4, %v1260_v6, %v1256_v48  ;;  %v1359_v16 = vor.u32 1.1754944e-38, %v1358_v22  ;;  %v1378_v6 = vor.u32 1.1754944e-38, %v1377_v13  ;;  %v5459_v22 = vpop.permute.xlu1 %1408 }
 0x209   :  { %v3949_v55 = vpop.eup %3948  ;;  %3956 = vtanh.f32 %v1341_v24  ;;  %vm1357_vm12 = vcmp.eq.f32.partialorder %v1356_v40, 8.507059e+37  ;;  %vm1376_vm13 = vcmp.eq.f32.partialorder %v1375_v61, 8.507059e+37  ;;  %6624 = vst [vmem:[#allocation9_spill] sm:$0xff] %v5459_v22  ;;  %vm1410_vm14 = vcmp.eq.s32.totalorder %v5459_v22, 1  ;;  %v6655_v22 = vld [vmem:[#allocation65_spill] sm:$0xff] }
 0x20a   :  { %v3951_v20 = vpop.eup %3950  ;;  %v1348_v43 = vmul.f32 %v3949_v55, %v1346_v33  ;;  %vm1353_vm5 = vweird.f32 %v3949_v55  ;;  %v1397_v13 = vand.u32 2147483648, %v5431_v10  ;;  %vm1391_vm2 = vweird.f32 %v5431_v10 }
 0x20b   :  { %v1367_v18 = vmul.f32 %v3951_v20, %v5423_v15  ;;  %vm1372_vm6 = vweird.f32 %v3951_v20  ;;  %vm1354_vm9 = vmor %vm1352_vm7, %vm1353_vm5 }
 0x20c   :  { %v1349_v37 = vsub.f32 1.0, %v1348_v43  ;;  %vm1373_vm10 = vmor %vm1371_vm8, %vm1372_vm6  ;;  %v1398_v61 = vor.u32 1.1754944e-38, %v1397_v13  ;;  %v6640_v13 = vld [vmem:[#allocation24_spill] sm:$0xff] }
 0x20d   :  { %v3953_v4 = vpop.eup %3952  ;;  %v1368_v9 = vsub.f32 1.0, %v1367_v18 }
 0x20e   :  { %v1350_v47 = vmul.f32 %v3949_v55, %v1349_v37  ;;  %v5444_v11 = vmul.f32 %v3953_v4, %v1261_v29  ;;  %v3955_v19 = vpop.eup %3954 }
 0x20f   :  { %v1369_v49 = vmul.f32 %v3951_v20, %v1368_v9  ;;  %v1387_v44 = vmul.f32 %v3955_v19, %v5431_v10  ;;  %v3957_v48 = vpop.eup %3956  ;;  %vm1392_vm0 = vweird.f32 %v3955_v19 }
 0x210   :  { %6623 = vst [vmem:[#allocation8_spill] sm:$0xff] %v5444_v11  ;;  %v1351_v3 = vadd.f32 %v3949_v55, %v1350_v47  ;;  %v5454_v27 = vsel %vm1272_vm1, %v5444_v11, %v841_v38  ;;  %v1395_v38 = vand.u32 2147483647, %v5431_v10  ;;  %vm1393_vm3 = vmor %vm1391_vm2, %vm1392_vm0  ;;  %v1136_v10 = vsel %vm1135_vm11, %v5349_v57, 0.0  ;;  %v6648_v57 = vld [vmem:[#allocation28_spill] sm:$0xff]  ;;  %v6652_v11 = vld [vmem:[#allocation30_spill] sm:$0xff] }
 0x211   :  { %v1370_v24 = vadd.f32 %v3951_v20, %v1369_v49  ;;  %v1424_v43 = vpack.c.bf16 %v5454_v27, %v5454_v27  ;;  %v1388_v33 = vsub.f32 1.0, %v1387_v44 }
 0x212   :  { %v1355_v18 = vsel %vm1354_vm9, %v3949_v55, %v1351_v3  ;;  %vm1396_vm4 = vcmp.eq.f32.partialorder %v1395_v38, 8.507059e+37  ;;  %v6641_v38 = vld [vmem:[#allocation25_spill] sm:$0xff] }
 0x213   :  { %v1360_v37 = vsel %vm1357_vm12, %v1359_v16, %v1355_v18  ;;  %v1374_v4 = vsel %vm1373_vm10, %v3951_v20, %v1370_v24  ;;  %1433 = vmatmul.bf16.vlgmr.msra.gmra.mxu0 %v1424_v43  ;;  %1446 = vmatmul.bf16.vlgmr.msra.gmra.mxu1 %v1424_v43  ;;  %v1389_v15 = vmul.f32 %v3955_v19, %v1388_v33  ;;  %v6626_v24 = vld [vmem:[#allocation34_spill] sm:$0xff]  ;;  %v6630_v18 = vld [vmem:[#allocation37_spill] sm:$0xff]  ;;  %v6631_v33 = vld [vmem:[#allocation39_spill] sm:$0xff] }
 0x214   :  { %v1379_v9 = vsel %vm1376_vm13, %v1378_v6, %v1374_v4  ;;  %v1402_v29 = vmul.f32 %v3957_v48, %v1360_v37  ;;  %1459 = vmatmul.bf16.vlgmr.msrb.gmra.mxu2 %v1424_v43  ;;  %1472 = vmatmul.bf16.vlgmr.msrb.gmra.mxu3 %v1424_v43  ;;  %v6627_v43 = vld [vmem:[#allocation36_spill] sm:$0xff]  ;;  %v6628_v48 = vld [vmem:[#allocation18_spill] sm:$0xff]  ;;  %v6629_v6 = vld [vmem:[#allocation19_spill] sm:$0xff] }
 0x215   :  { %v1401_v47 = vmul.f32 %v1379_v9, %v5328_v7  ;;  %1701 = vmatpush.bf16.msra.mxu0 %v4311_v42  ;;  %1714 = vmatpush.bf16.msra.mxu1 %v4326_v46  ;;  %v1390_v20 = vadd.f32 %v3955_v19, %v1389_v15  ;;  %v6632_v37 = vld [vmem:[#allocation20_spill] sm:$0xff]  ;;  %v6633_v4 = vld [vmem:[#allocation21_spill] sm:$0xff]  ;;  %v6636_v15 = vld [vmem:[#allocation22_spill] sm:$0xff] }
 0x216   :  { %1727 = vmatpush.bf16.msrb.mxu2 %v4584_v12  ;;  %1740 = vmatpush.bf16.msrb.mxu3 %v4537_v51  ;;  %v6634_v9 = vld [vmem:[#allocation41_spill] sm:$0xff] }
 0x217   :  { %v1403_v55 = vadd.f32 %v1402_v29, %v1401_v47  ;;  %v1394_v49 = vsel %vm1393_vm3, %v3955_v19, %v1390_v20  ;;  %v6635_v29 = vld [vmem:[#allocation44_spill] sm:$0xff]  ;;  %v6637_v47 = vld [vmem:[#allocation23_spill] sm:$0xff] }
 0x218   :  { %v1399_v3 = vsel %vm1396_vm4, %v1398_v61, %v1394_v49  ;;  %v6639_v20 = vld [vmem:[#allocation47_spill] sm:$0xff]  ;;  %v6643_v61 = vld [vmem:[#allocation53_spill] sm:$0xff] }
 0x219   :  { %3958 = vtanh.f32 %v1403_v55  ;;  %1702 = vmatpush.bf16.msra.mxu0 %v4342_v52  ;;  %1715 = vmatpush.bf16.msra.mxu1 %v6576_v34  ;;  %v5473_v40 = vsel %vm1410_vm14, %v1403_v55, %v5328_v7  ;;  %v6638_v55 = vld [vmem:[#allocation46_spill] sm:$0xff]  ;;  %v6642_v49 = vld [vmem:[#allocation51_spill] sm:$0xff] }
 0x21a   :  { %1728 = vmatpush.bf16.msrb.mxu2 %v4647_v41  ;;  %1741 = vmatpush.bf16.msrb.mxu3 %v4564_v0 }
 0x21d   :  { %1703 = vmatpush.bf16.msra.mxu0 %v6577_v23  ;;  %1716 = vmatpush.bf16.msra.mxu1 %v6578_v26 }
 0x21e   :  { %1729 = vmatpush.bf16.msrb.mxu2 %v4700_v17  ;;  %1742 = vmatpush.bf16.msrb.mxu3 %v4640_v39 }
 0x21f   :  { %v3959_v7 = vpop.eup %3958 }
 0x220   :  { %v5483_v44 = vmul.f32 %v3959_v7, %v1399_v3  ;;  %v6644_v7 = vld [vmem:[#allocation26_spill] sm:$0xff]  ;;  %v6645_v3 = vld [vmem:[#allocation27_spill] sm:$0xff] }
 0x221   :  { %1704 = vmatpush.bf16.msra.mxu0 %v6580_v8  ;;  %1717 = vmatpush.bf16.msra.mxu1 %v6581_v58 }
 0x222   :  { %6625 = vst [vmem:[#allocation10_spill] sm:$0xff] %v5483_v44  ;;  %v5493_v19 = vsel %vm1410_vm14, %v5483_v44, %v1136_v10  ;;  %1730 = vmatpush.bf16.msrb.mxu2 %v4729_v36  ;;  %1743 = vmatpush.bf16.msrb.mxu3 %v4678_v60  ;;  %v6646_v10 = vld [vmem:[#allocation56_spill] sm:$0xff]  ;;  %v6649_v44 = vld [vmem:[#allocation29_spill] sm:$0xff] }
 0x223   :  { %v1562_v16 = vpack.c.bf16 %v5493_v19, %v5493_v19 }
 0x225   :  { %1571 = vmatmul.bf16.vlgmr.msrb.gmra.mxu0 %v1562_v16  ;;  %1584 = vmatmul.bf16.vlgmr.msrb.gmra.mxu1 %v1562_v16 }
 0x226   :  { %1597 = vmatmul.bf16.vlgmr.msra.gmra.mxu2 %v1562_v16  ;;  %1610 = vmatmul.bf16.vlgmr.msra.gmra.mxu3 %v1562_v16  ;;  %v6647_v16 = vld [vmem:[#allocation57_spill] sm:$0xff] }
 0x227   :  { %1705 = vmatpush.bf16.msra.mxu0 %v6582_v14  ;;  %1718 = vmatpush.bf16.msra.mxu1 %v6583_v5 }
 0x228   :  { %1731 = vmatpush.bf16.msrb.mxu2 %v4753_v50  ;;  %1744 = vmatpush.bf16.msrb.mxu3 %v4743_v45 }
 0x22b   :  { %1706 = vmatpush.bf16.msra.mxu0 %v6584_v1  ;;  %1719 = vmatpush.bf16.msra.mxu1 %v6585_v59 }
 0x22c   :  { %1732 = vmatpush.bf16.msrb.mxu2 %v4768_v63  ;;  %1745 = vmatpush.bf16.msrb.mxu3 %v4774_v2 }
 0x22f   :  { %1707 = vmatpush.bf16.msra.mxu0 %v6586_v35  ;;  %1720 = vmatpush.bf16.msra.mxu1 %v4453_v25 }
 0x230   :  { %1733 = vmatpush.bf16.msrb.mxu2 %v4788_v21  ;;  %1746 = vmatpush.bf16.msrb.mxu3 %v4794_v28 }
 0x233   :  { %1708 = vmatpush.bf16.msra.mxu0 %v4468_v30  ;;  %1721 = vmatpush.bf16.msra.mxu1 %v4471_v31 }
 0x234   :  { %1734 = vmatpush.bf16.msrb.mxu2 %v6626_v24  ;;  %1747 = vmatpush.bf16.msrb.mxu3 %v6627_v43 }
 0x237   :  { %1839 = vmatpush.bf16.msrb.mxu0 %v6628_v48  ;;  %1852 = vmatpush.bf16.msrb.mxu1 %v6629_v6 }
 0x238   :  { %1865 = vmatpush.bf16.msra.mxu2 %v6630_v18  ;;  %1878 = vmatpush.bf16.msra.mxu3 %v6631_v33 }
 0x23b   :  { %1840 = vmatpush.bf16.msrb.mxu0 %v6632_v37  ;;  %1853 = vmatpush.bf16.msrb.mxu1 %v6633_v4 }
 0x23c   :  { %1866 = vmatpush.bf16.msra.mxu2 %v6634_v9  ;;  %1879 = vmatpush.bf16.msra.mxu3 %v6635_v29 }
 0x23f   :  { %1841 = vmatpush.bf16.msrb.mxu0 %v6636_v15  ;;  %1854 = vmatpush.bf16.msrb.mxu1 %v6637_v47 }
 0x240   :  { %1867 = vmatpush.bf16.msra.mxu2 %v6638_v55  ;;  %1880 = vmatpush.bf16.msra.mxu3 %v6639_v20 }
 0x243   :  { %1842 = vmatpush.bf16.msrb.mxu0 %v6640_v13  ;;  %1855 = vmatpush.bf16.msrb.mxu1 %v6641_v38  ;;  %v6662_v38 = vld [vmem:[#allocation89_spill] sm:$0xff] }
 0x244   :  { %1868 = vmatpush.bf16.msra.mxu2 %v6642_v49  ;;  %1881 = vmatpush.bf16.msra.mxu3 %v6643_v61  ;;  %v6661_v61 = vld [vmem:[#allocation42_spill] sm:$0xff] }
 0x247   :  { %1843 = vmatpush.bf16.msrb.mxu0 %v6644_v7  ;;  %1856 = vmatpush.bf16.msrb.mxu1 %v6645_v3  ;;  %v6656_v3 = vld [vmem:[#allocation32_spill] sm:$0xff] }
 0x248   :  { %1869 = vmatpush.bf16.msra.mxu2 %v6646_v10  ;;  %1882 = vmatpush.bf16.msra.mxu3 %v6647_v16  ;;  %v6657_v10 = vld [vmem:[#allocation33_spill] sm:$0xff]  ;;  %v6658_v16 = vld [vmem:[#allocation68_spill] sm:$0xff] }
 0x249   :  { %v6660_v7 = vld [vmem:[#allocation40_spill] sm:$0xff] }
 0x24b   :  { %1844 = vmatpush.bf16.msrb.mxu0 %v6648_v57  ;;  %1857 = vmatpush.bf16.msrb.mxu1 %v6649_v44  ;;  %v6659_v57 = vld [vmem:[#allocation69_spill] sm:$0xff] }
 0x24c   :  { %1870 = vmatpush.bf16.msra.mxu2 %v6650_v56  ;;  %1883 = vmatpush.bf16.msra.mxu3 %v6651_v53 }
 0x24f   :  { %1845 = vmatpush.bf16.msrb.mxu0 %v6652_v11  ;;  %1858 = vmatpush.bf16.msrb.mxu1 %v6653_v54 }
 0x250   :  { %1871 = vmatpush.bf16.msra.mxu2 %v6654_v62  ;;  %1884 = vmatpush.bf16.msra.mxu3 %v6655_v22 }
 0x253   :  { %1846 = vmatpush.bf16.msrb.mxu0 %v6656_v3  ;;  %1859 = vmatpush.bf16.msrb.mxu1 %v6657_v10 }
 0x254   :  { %1872 = vmatpush.bf16.msra.mxu2 %v6658_v16  ;;  %1885 = vmatpush.bf16.msra.mxu3 %v6659_v57 }
 0x290   :  { %v1434_v44 = vpop.f32.mrf.mxu0  ;;  %v1447_v56 = vpop.f32.mrf.mxu1 }
 0x291   :  { %v1477_v53 = vadd.f32 %v1434_v44, %v6660_v7  ;;  %v1478_v11 = vadd.f32 %v1447_v56, %v6661_v61  ;;  %v6666_v61 = vld [vmem:[#allocation81_spill] sm:$0xff] }
 0x293   :  { %v3663_v49 = vmul.f32 -1.442695, %v1477_v53  ;;  %v3664_v54 = vmul.f32 -1.442695, %v1478_v11  ;;  %v6663_v53 = vld [vmem:[#allocation48_spill] sm:$0xff] }
 0x294   :  { %v6664_v11 = vld [vmem:[#allocation80_spill] sm:$0xff] }
 0x295   :  { %3960 = vpow2.f32 %v3663_v49  ;;  %v326_v49 = vadd.f32 %v6664_v11, %v6663_v53 }
 0x296   :  { %3962 = vpow2.f32 %v3664_v54  ;;  %v6665_v54 = vld [vmem:[#allocation49_spill] sm:$0xff] }
 0x297   :  { %v1460_v62 = vpop.f32.mrf.mxu2  ;;  %v1473_v22 = vpop.f32.mrf.mxu3  ;;  %v355_v7 = vadd.f32 %v6666_v61, %v6665_v54 }
 0x298   :  { %v1480_v3 = vadd.f32 %v1473_v22, %v6662_v38  ;;  %v1436_v13 = vpop.f32.mrf.mxu0  ;;  %v1449_v10 = vpop.f32.mrf.mxu1  ;;  %v6667_v38 = vld [vmem:[#allocation88_spill] sm:$0xff] }
 0x29a   :  { %v3665_v20 = vmul.f32 -1.442695, %v1480_v3  ;;  %v1479_v3 = vadd.f32 %v1460_v62, %v6667_v38 }
 0x29b   :  { %v3961_v16 = vpop.eup %3960 }
 0x29c   :  { %v3963_v55 = vpop.eup %3962  ;;  %v1484_v57 = vadd.f32 1.0, %v3961_v16  ;;  %3964 = vpow2.f32 %v3665_v20 }
 0x29d   :  { %v1503_v47 = vadd.f32 1.0, %v3963_v55 }
 0x29e   :  { %3966 = vrcp.f32 %v1484_v57  ;;  %v1494_v62 = vand.u32 2147483647, %v1484_v57  ;;  %vm1490_vm7 = vweird.f32 %v1484_v57 }
 0x29f   :  { %3968 = vrcp.f32 %v1503_v47  ;;  %v1462_v44 = vpop.f32.mrf.mxu2  ;;  %v1475_v56 = vpop.f32.mrf.mxu3  ;;  %v1515_v33 = vand.u32 2147483648, %v1503_v47  ;;  %vm1509_vm8 = vweird.f32 %v1503_v47 }
 0x2a0   :  { %v6668_v44 = vld [vmem:[#allocation101_spill] sm:$0xff]  ;;  %vm1495_vm12 = vcmp.eq.f32.partialorder %v1494_v62, 8.507059e+37 }
 0x2a1   :  { %v6669_v56 = vld [vmem:[#allocation113_spill] sm:$0xff] }
 0x2a2   :  { %v3965_v15 = vpop.eup %3964  ;;  %v1572_v22 = vpop.f32.mrf.mxu0  ;;  %v413_v11 = vadd.f32 %v6669_v56, %v6668_v44 }
 0x2a3   :  { %v1585_v13 = vpop.f32.mrf.mxu1  ;;  %v5555_v10 = vadd.f32 1.0, %v3965_v15  ;;  %v1615_v16 = vadd.f32 %v1572_v22, %v326_v49  ;;  %v1496_v15 = vand.u32 2147483648, %v1484_v57  ;;  %v1513_v49 = vand.u32 2147483647, %v1503_v47 }
 0x2a4   :  { %v1616_v20 = vadd.f32 %v1585_v13, %v355_v7  ;;  %v3967_v55 = vpop.eup %3966 }
 0x2a5   :  { %v3969_v29 = vpop.eup %3968  ;;  %v1486_v9 = vmul.f32 %v3967_v55, %v1484_v57  ;;  %3970 = vrcp.f32 %v5555_v10  ;;  %v3666_v61 = vmul.f32 -1.442695, %v1615_v16  ;;  %vm1491_vm5 = vweird.f32 %v3967_v55 }
 0x2a6   :  { %v1505_v53 = vmul.f32 %v3969_v29, %v1503_v47  ;;  %3972 = vtanh.f32 %v1479_v3  ;;  %v3667_v54 = vmul.f32 -1.442695, %v1616_v20  ;;  %vm1510_vm6 = vweird.f32 %v3969_v29  ;;  %vm1492_vm9 = vmor %vm1490_vm7, %vm1491_vm5 }
 0x2a7   :  { %v1487_v4 = vsub.f32 1.0, %v1486_v9  ;;  %3974 = vpow2.f32 %v3666_v61  ;;  %vm1511_vm10 = vmor %vm1509_vm8, %vm1510_vm6  ;;  %v1516_v61 = vor.u32 1.1754944e-38, %v1515_v33  ;;  %vm1514_vm13 = vcmp.eq.f32.partialorder %v1513_v49, 8.507059e+37 }
 0x2a8   :  { %v1506_v37 = vsub.f32 1.0, %v1505_v53  ;;  %3976 = vpow2.f32 %v3667_v54  ;;  %v1497_v53 = vor.u32 1.1754944e-38, %v1496_v15  ;;  %vm1529_vm3 = vweird.f32 %v5555_v10 }
 0x2a9   :  { %v1488_v38 = vmul.f32 %v3967_v55, %v1487_v4  ;;  %v1598_v7 = vpop.f32.mrf.mxu2  ;;  %v1611_v22 = vpop.f32.mrf.mxu3  ;;  %v1533_v49 = vand.u32 2147483647, %v5555_v10 }
 0x2aa   :  { %v1507_v13 = vmul.f32 %v3969_v29, %v1506_v37  ;;  %v1618_v18 = vadd.f32 %v1611_v22, %v413_v11  ;;  %v1574_v56 = vpop.f32.mrf.mxu0 }
 0x2ab   :  { %v1587_v44 = vpop.f32.mrf.mxu1  ;;  %v3971_v9 = vpop.eup %3970  ;;  %v1489_v3 = vadd.f32 %v3967_v55, %v1488_v38  ;;  %vm1534_vm5 = vcmp.eq.f32.partialorder %v1533_v49, 8.507059e+37 }
 0x2ac   :  { %v1508_v16 = vadd.f32 %v3969_v29, %v1507_v13  ;;  %v1525_v4 = vmul.f32 %v3971_v9, %v5555_v10  ;;  %v3973_v20 = vpop.eup %3972  ;;  %v3668_v37 = vmul.f32 -1.442695, %v1618_v18  ;;  %v5562_v56 = vpop.permute.xlu2 %1546  ;;  %vm1530_vm0 = vweird.f32 %v3971_v9 }
 0x2ad   :  { %v1493_v6 = vsel %vm1492_vm9, %v3967_v55, %v1489_v3  ;;  %v3975_v22 = vpop.eup %3974  ;;  %6670 = vst [vmem:[#allocation11_spill] sm:$0xff] %v5562_v56  ;;  %vm1548_vm2 = vcmp.eq.s32.totalorder %v5562_v56, 1  ;;  %vm1531_vm4 = vmor %vm1529_vm3, %vm1530_vm0  ;;  %v6702_v56 = vld [vmem:[#allocation31_spill] sm:$0xff] }
 0x2ae   :  { %v1498_v54 = vsel %vm1495_vm12, %v1497_v53, %v1493_v6  ;;  %v1512_v11 = vsel %vm1511_vm10, %v3969_v29, %v1508_v16  ;;  %v1526_v44 = vsub.f32 1.0, %v1525_v4  ;;  %3978 = vpow2.f32 %v3668_v37  ;;  %v3977_v47 = vpop.eup %3976  ;;  %v6671_v53 = vld [vmem:[#allocation100_spill] sm:$0xff] }
 0x2af   :  { %v1517_v38 = vsel %vm1514_vm13, %v1516_v61, %v1512_v11  ;;  %v1540_v57 = vmul.f32 %v3973_v20, %v1498_v54  ;;  %v1622_v48 = vadd.f32 1.0, %v3975_v22  ;;  %v5565_v43 = vadd.f32 1.0, %v3977_v47  ;;  %v6672_v16 = vld [vmem:[#allocation112_spill] sm:$0xff] }
 0x2b0   :  { %v1539_v15 = vmul.f32 %v1517_v38, %v5439_v32  ;;  %v1527_v13 = vmul.f32 %v3971_v9, %v1526_v44  ;;  %v1535_v29 = vand.u32 2147483648, %v5555_v10  ;;  %v384_v4 = vadd.f32 %v6672_v16, %v6671_v53  ;;  %v6704_v53 = vld [vmem:[#allocation65_spill] sm:$0xff] }
 0x2b1   :  { %v1600_v33 = vpop.f32.mrf.mxu2  ;;  %v1613_v55 = vpop.f32.mrf.mxu3  ;;  %3980 = vrcp.f32 %v1622_v48  ;;  %vm1628_vm8 = vweird.f32 %v1622_v48  ;;  %vm1647_vm9 = vweird.f32 %v5565_v43 }
 0x2b2   :  { %v1541_v18 = vadd.f32 %v1540_v57, %v1539_v15  ;;  %v1528_v6 = vadd.f32 %v3971_v9, %v1527_v13  ;;  %3982 = vrcp.f32 %v5565_v43  ;;  %v1536_v54 = vor.u32 1.1754944e-38, %v1535_v29 }
 0x2b3   :  { %v1617_v11 = vadd.f32 %v1598_v7, %v384_v4  ;;  %v1653_v13 = vand.u32 2147483648, %v5565_v43  ;;  %v1634_v33 = vand.u32 2147483648, %v1622_v48  ;;  %v1632_v7 = vand.u32 2147483647, %v1622_v48 }
 0x2b4   :  { %3984 = vtanh.f32 %v1541_v18  ;;  %v3979_v62 = vpop.eup %3978  ;;  %v5575_v3 = vsel %vm1548_vm2, %v1541_v18, %v5439_v32  ;;  %v1532_v61 = vsel %vm1531_vm4, %v3971_v9, %v1528_v6  ;;  %v1651_v29 = vand.u32 2147483647, %v5565_v43 }
 0x2b5   :  { %v5579_v20 = vadd.f32 1.0, %v3979_v62  ;;  %v1537_v32 = vsel %vm1534_vm5, %v1536_v54, %v1532_v61  ;;  %v1635_v4 = vor.u32 1.1754944e-38, %v1634_v33  ;;  %vm1633_vm13 = vcmp.eq.f32.partialorder %v1632_v7, 8.507059e+37 }
 0x2b6   :  { %vm1652_vm0 = vcmp.eq.f32.partialorder %v1651_v29, 8.507059e+37 }
 0x2b7   :  { %v3981_v37 = vpop.eup %3980  ;;  %3986 = vrcp.f32 %v5579_v20  ;;  %vm1667_vm5 = vweird.f32 %v5579_v20 }
 0x2b8   :  { %v3983_v44 = vpop.eup %3982  ;;  %v1624_v22 = vmul.f32 %v3981_v37, %v1622_v48  ;;  %3988 = vtanh.f32 %v1617_v11  ;;  %vm1629_vm6 = vweird.f32 %v3981_v37 }
 0x2b9   :  { %v1643_v38 = vmul.f32 %v3983_v44, %v5565_v43  ;;  %vm1648_vm7 = vweird.f32 %v3983_v44  ;;  %vm1630_vm10 = vmor %vm1628_vm8, %vm1629_vm6 }
 0x2ba   :  { %v3985_v10 = vpop.eup %3984  ;;  %v1625_v57 = vsub.f32 1.0, %v1624_v22  ;;  %vm1649_vm12 = vmor %vm1647_vm9, %vm1648_vm7 }
 0x2bb   :  { %v5583_v47 = vmul.f32 %v3985_v10, %v1537_v32  ;;  %v1644_v15 = vsub.f32 1.0, %v1643_v38 }
 0x2bc   :  { %v1626_v9 = vmul.f32 %v3981_v37, %v1625_v57 }
 0x2bd   :  { %6673 = vst [vmem:[#allocation12_spill] sm:$0xff] %v5583_v47  ;;  %v5590_v55 = vsel %vm1548_vm2, %v5583_v47, %v5454_v27  ;;  %v3987_v18 = vpop.eup %3986  ;;  %v1645_v6 = vmul.f32 %v3983_v44, %v1644_v15  ;;  %v1654_v27 = vor.u32 1.1754944e-38, %v1653_v13  ;;  %v1673_v13 = vand.u32 2147483648, %v5579_v20  ;;  %v6701_v47 = vld [vmem:[#allocation30_spill] sm:$0xff] }
 0x2be   :  { %v1700_v62 = vpack.c.bf16 %v5590_v55, %v5590_v55  ;;  %v1627_v49 = vadd.f32 %v3981_v37, %v1626_v9  ;;  %v1663_v16 = vmul.f32 %v3987_v18, %v5579_v20  ;;  %v3989_v22 = vpop.eup %3988  ;;  %vm1668_vm4 = vweird.f32 %v3987_v18 }
 0x2bf   :  { %v1646_v61 = vadd.f32 %v3983_v44, %v1645_v6  ;;  %v1671_v9 = vand.u32 2147483647, %v5579_v20  ;;  %vm1669_vm6 = vmor %vm1667_vm5, %vm1668_vm4  ;;  %v1674_v6 = vor.u32 1.1754944e-38, %v1673_v13  ;;  %v6693_v13 = vld [vmem:[#allocation26_spill] sm:$0xff] }
 0x2c0   :  { %1709 = vmatmul.bf16.vlgmr.msra.gmra.mxu0 %v1700_v62  ;;  %1722 = vmatmul.bf16.vlgmr.msra.gmra.mxu1 %v1700_v62  ;;  %v1631_v54 = vsel %vm1630_vm10, %v3981_v37, %v1627_v49  ;;  %v1664_v11 = vsub.f32 1.0, %v1663_v16  ;;  %v5601_v37 = vpop.permute.xlu2 %1684  ;;  %v6677_v49 = vld [vmem:[#allocation18_spill] sm:$0xff]  ;;  %v6678_v16 = vld [vmem:[#allocation19_spill] sm:$0xff] }
 0x2c1   :  { %1735 = vmatmul.bf16.vlgmr.msrb.gmra.mxu2 %v1700_v62  ;;  %1748 = vmatmul.bf16.vlgmr.msrb.gmra.mxu3 %v1700_v62  ;;  %v1636_v10 = vsel %vm1633_vm13, %v1635_v4, %v1631_v54  ;;  %v1650_v38 = vsel %vm1649_vm12, %v3983_v44, %v1646_v61  ;;  %6674 = vst [vmem:[#allocation13_spill] sm:$0xff] %v5601_v37  ;;  %vm1686_vm3 = vcmp.eq.s32.totalorder %v5601_v37, 1  ;;  %vm1672_vm7 = vcmp.eq.f32.partialorder %v1671_v9, 8.507059e+37  ;;  %v6679_v4 = vld [vmem:[#allocation37_spill] sm:$0xff]  ;;  %v6680_v61 = vld [vmem:[#allocation39_spill] sm:$0xff]  ;;  %v6703_v37 = vld [vmem:[#allocation64_spill] sm:$0xff] }
 0x2c2   :  { %1975 = vmatpush.bf16.msra.mxu0 %v4311_v42  ;;  %1988 = vmatpush.bf16.msra.mxu1 %v4326_v46  ;;  %v1655_v43 = vsel %vm1652_vm0, %v1654_v27, %v1650_v38  ;;  %v1678_v48 = vmul.f32 %v3989_v22, %v1636_v10  ;;  %v1665_v32 = vmul.f32 %v3987_v18, %v1664_v11  ;;  %v6681_v27 = vld [vmem:[#allocation20_spill] sm:$0xff]  ;;  %v6682_v54 = vld [vmem:[#allocation21_spill] sm:$0xff]  ;;  %v6685_v10 = vld [vmem:[#allocation22_spill] sm:$0xff] }
 0x2c3   :  { %2001 = vmatpush.bf16.msrb.mxu2 %v4584_v12  ;;  %2014 = vmatpush.bf16.msrb.mxu3 %v4537_v51  ;;  %v1677_v57 = vmul.f32 %v1655_v43, %v5473_v40  ;;  %v6683_v11 = vld [vmem:[#allocation41_spill] sm:$0xff]  ;;  %v6684_v22 = vld [vmem:[#allocation44_spill] sm:$0xff]  ;;  %v6686_v38 = vld [vmem:[#allocation23_spill] sm:$0xff] }
 0x2c4   :  { %v1666_v44 = vadd.f32 %v3987_v18, %v1665_v32  ;;  %v6687_v43 = vld [vmem:[#allocation46_spill] sm:$0xff]  ;;  %v6689_v32 = vld [vmem:[#allocation24_spill] sm:$0xff]  ;;  %v6694_v9 = vld [vmem:[#allocation27_spill] sm:$0xff] }
 0x2c5   :  { %v1679_v15 = vadd.f32 %v1678_v48, %v1677_v57  ;;  %v6688_v48 = vld [vmem:[#allocation47_spill] sm:$0xff]  ;;  %v6690_v57 = vld [vmem:[#allocation25_spill] sm:$0xff] }
 0x2c6   :  { %1976 = vmatpush.bf16.msra.mxu0 %v4342_v52  ;;  %1989 = vmatpush.bf16.msra.mxu1 %v6576_v34  ;;  %v1670_v7 = vsel %vm1669_vm6, %v3987_v18, %v1666_v44  ;;  %v6692_v44 = vld [vmem:[#allocation53_spill] sm:$0xff] }
 0x2c7   :  { %2002 = vmatpush.bf16.msrb.mxu2 %v4647_v41  ;;  %2015 = vmatpush.bf16.msrb.mxu3 %v4564_v0  ;;  %3990 = vtanh.f32 %v1679_v15  ;;  %v5613_v33 = vsel %vm1686_vm3, %v1679_v15, %v5473_v40  ;;  %v1675_v62 = vsel %vm1672_vm7, %v1674_v6, %v1670_v7  ;;  %v6691_v15 = vld [vmem:[#allocation51_spill] sm:$0xff]  ;;  %v6695_v7 = vld [vmem:[#allocation56_spill] sm:$0xff]  ;;  %v6696_v6 = vld [vmem:[#allocation57_spill] sm:$0xff] }
 0x2ca   :  { %1977 = vmatpush.bf16.msra.mxu0 %v6577_v23  ;;  %1990 = vmatpush.bf16.msra.mxu1 %v6578_v26 }
 0x2cb   :  { %2003 = vmatpush.bf16.msrb.mxu2 %v4700_v17  ;;  %2016 = vmatpush.bf16.msrb.mxu3 %v4640_v39 }
 0x2cd   :  { %v3991_v29 = vpop.eup %3990 }
 0x2ce   :  { %1978 = vmatpush.bf16.msra.mxu0 %v6580_v8  ;;  %1991 = vmatpush.bf16.msra.mxu1 %v6581_v58  ;;  %v5623_v40 = vmul.f32 %v3991_v29, %v1675_v62  ;;  %v6697_v29 = vld [vmem:[#allocation28_spill] sm:$0xff]  ;;  %v6698_v62 = vld [vmem:[#allocation29_spill] sm:$0xff] }
 0x2cf   :  { %2004 = vmatpush.bf16.msrb.mxu2 %v4729_v36  ;;  %2017 = vmatpush.bf16.msrb.mxu3 %v4678_v60 }
 0x2d0   :  { %6675 = vst [vmem:[#allocation14_spill] sm:$0xff] %v5623_v40  ;;  %v5631_v20 = vsel %vm1686_vm3, %v5623_v40, %v5493_v19  ;;  %v6676_v19 = vld [vmem:[#allocation36_spill] sm:$0xff]  ;;  %v6700_v40 = vld [vmem:[#allocation62_spill] sm:$0xff] }
 0x2d1   :  { %v1838_v18 = vpack.c.bf16 %v5631_v20, %v5631_v20 }
 0x2d2   :  { %1979 = vmatpush.bf16.msra.mxu0 %v6582_v14  ;;  %1992 = vmatpush.bf16.msra.mxu1 %v6583_v5 }
 0x2d3   :  { %2005 = vmatpush.bf16.msrb.mxu2 %v4753_v50  ;;  %2018 = vmatpush.bf16.msrb.mxu3 %v4743_v45 }
 0x2d4   :  { %1847 = vmatmul.bf16.vlgmr.msrb.gmra.mxu0 %v1838_v18  ;;  %1860 = vmatmul.bf16.vlgmr.msrb.gmra.mxu1 %v1838_v18 }
 0x2d5   :  { %1873 = vmatmul.bf16.vlgmr.msra.gmra.mxu2 %v1838_v18  ;;  %1886 = vmatmul.bf16.vlgmr.msra.gmra.mxu3 %v1838_v18  ;;  %v6699_v18 = vld [vmem:[#allocation59_spill] sm:$0xff] }
 0x2d6   :  { %1980 = vmatpush.bf16.msra.mxu0 %v6584_v1  ;;  %1993 = vmatpush.bf16.msra.mxu1 %v6585_v59 }
 0x2d7   :  { %2006 = vmatpush.bf16.msrb.mxu2 %v4768_v63  ;;  %2019 = vmatpush.bf16.msrb.mxu3 %v4774_v2 }
 0x2da   :  { %1981 = vmatpush.bf16.msra.mxu0 %v6586_v35  ;;  %1994 = vmatpush.bf16.msra.mxu1 %v4453_v25 }
 0x2db   :  { %2007 = vmatpush.bf16.msrb.mxu2 %v4788_v21  ;;  %2020 = vmatpush.bf16.msrb.mxu3 %v4794_v28 }
 0x2de   :  { %1982 = vmatpush.bf16.msra.mxu0 %v4468_v30  ;;  %1995 = vmatpush.bf16.msra.mxu1 %v4471_v31 }
 0x2df   :  { %2008 = vmatpush.bf16.msrb.mxu2 %v6626_v24  ;;  %2021 = vmatpush.bf16.msrb.mxu3 %v6676_v19 }
 0x2e2   :  { %2106 = vmatpush.bf16.msrb.mxu0 %v6677_v49  ;;  %2119 = vmatpush.bf16.msrb.mxu1 %v6678_v16  ;;  %v5698_v16 = vpop.permute.xlu0 %1822 }
 0x2e3   :  { %2132 = vmatpush.bf16.msra.mxu2 %v6679_v4  ;;  %2145 = vmatpush.bf16.msra.mxu3 %v6680_v61  ;;  %6718 = vst [vmem:[#allocation15_spill] sm:$0xff] %v5698_v16 }
 0x2e6   :  { %2107 = vmatpush.bf16.msrb.mxu0 %v6681_v27  ;;  %2120 = vmatpush.bf16.msrb.mxu1 %v6682_v54 }
 0x2e7   :  { %2133 = vmatpush.bf16.msra.mxu2 %v6683_v11  ;;  %2146 = vmatpush.bf16.msra.mxu3 %v6684_v22 }
 0x2ea   :  { %2108 = vmatpush.bf16.msrb.mxu0 %v6685_v10  ;;  %2121 = vmatpush.bf16.msrb.mxu1 %v6686_v38 }
 0x2eb   :  { %2134 = vmatpush.bf16.msra.mxu2 %v6687_v43  ;;  %2147 = vmatpush.bf16.msra.mxu3 %v6688_v48 }
 0x2ee   :  { %2109 = vmatpush.bf16.msrb.mxu0 %v6689_v32  ;;  %2122 = vmatpush.bf16.msrb.mxu1 %v6690_v57  ;;  %v6712_v57 = vld [vmem:[#allocation91_spill] sm:$0xff] }
 0x2ef   :  { %2135 = vmatpush.bf16.msra.mxu2 %v6691_v15  ;;  %2148 = vmatpush.bf16.msra.mxu3 %v6692_v44  ;;  %v6710_v44 = vld [vmem:[#allocation52_spill] sm:$0xff] }
 0x2f2   :  { %2110 = vmatpush.bf16.msrb.mxu0 %v6693_v13  ;;  %2123 = vmatpush.bf16.msrb.mxu1 %v6694_v9  ;;  %v6705_v9 = vld [vmem:[#allocation32_spill] sm:$0xff]  ;;  %v6709_v13 = vld [vmem:[#allocation50_spill] sm:$0xff] }
 0x2f3   :  { %2136 = vmatpush.bf16.msra.mxu2 %v6695_v7  ;;  %2149 = vmatpush.bf16.msra.mxu3 %v6696_v6  ;;  %v6706_v7 = vld [vmem:[#allocation33_spill] sm:$0xff]  ;;  %v6707_v6 = vld [vmem:[#allocation68_spill] sm:$0xff] }
 0x2f6   :  { %2111 = vmatpush.bf16.msrb.mxu0 %v6697_v29  ;;  %2124 = vmatpush.bf16.msrb.mxu1 %v6698_v62  ;;  %v6708_v29 = vld [vmem:[#allocation69_spill] sm:$0xff] }
 0x2f7   :  { %2137 = vmatpush.bf16.msra.mxu2 %v6699_v18  ;;  %2150 = vmatpush.bf16.msra.mxu3 %v6700_v40 }
 0x2fa   :  { %2112 = vmatpush.bf16.msrb.mxu0 %v6701_v47  ;;  %2125 = vmatpush.bf16.msrb.mxu1 %v6702_v56 }
 0x2fb   :  { %2138 = vmatpush.bf16.msra.mxu2 %v6703_v37  ;;  %2151 = vmatpush.bf16.msra.mxu3 %v6704_v53  ;;  %v6711_v37 = vld [vmem:[#allocation87_spill] sm:$0xff] }
 0x2fc   :  { %v292_v53 = vadd.f32 %v6712_v57, %v6711_v37 }
 0x2fe   :  { %2113 = vmatpush.bf16.msrb.mxu0 %v6705_v9  ;;  %2126 = vmatpush.bf16.msrb.mxu1 %v6706_v7 }
 0x2ff   :  { %2139 = vmatpush.bf16.msra.mxu2 %v6707_v6  ;;  %2152 = vmatpush.bf16.msra.mxu3 %v6708_v29 }
 0x33d   :  { %v1710_v62 = vpop.f32.mrf.mxu0  ;;  %v1723_v18 = vpop.f32.mrf.mxu1 }
 0x33e   :  { %v1753_v40 = vadd.f32 %v1710_v62, %v6709_v13  ;;  %v1754_v47 = vadd.f32 %v1723_v18, %v6710_v44  ;;  %v6714_v44 = vld [vmem:[#allocation90_spill] sm:$0xff] }
 0x340   :  { %v3669_v15 = vmul.f32 -1.442695, %v1753_v40  ;;  %v3670_v56 = vmul.f32 -1.442695, %v1754_v47 }
 0x342   :  { %3992 = vpow2.f32 %v3669_v15  ;;  %v6713_v15 = vld [vmem:[#allocation86_spill] sm:$0xff] }
 0x343   :  { %3994 = vpow2.f32 %v3670_v56  ;;  %v263_v62 = vadd.f32 %v6714_v44, %v6713_v15 }
 0x344   :  { %v1736_v9 = vpop.f32.mrf.mxu2  ;;  %v1749_v32 = vpop.f32.mrf.mxu3 }
 0x345   :  { %v1756_v7 = vadd.f32 %v1749_v32, %v292_v53  ;;  %v1712_v48 = vpop.f32.mrf.mxu0  ;;  %v1725_v6 = vpop.f32.mrf.mxu1  ;;  %v1755_v56 = vadd.f32 %v1736_v9, %v263_v62 }
 0x347   :  { %v3671_v43 = vmul.f32 -1.442695, %v1756_v7 }
 0x348   :  { %v3993_v29 = vpop.eup %3992 }
 0x349   :  { %v3995_v38 = vpop.eup %3994  ;;  %v1760_v10 = vadd.f32 1.0, %v3993_v29  ;;  %3996 = vpow2.f32 %v3671_v43  ;;  %v6715_v29 = vld [vmem:[#allocation78_spill] sm:$0xff] }
 0x34a   :  { %v1779_v13 = vadd.f32 1.0, %v3995_v38 }
 0x34b   :  { %3998 = vrcp.f32 %v1760_v10  ;;  %v1770_v15 = vand.u32 2147483647, %v1760_v10  ;;  %v1772_v9 = vand.u32 2147483648, %v1760_v10  ;;  %vm1766_vm12 = vweird.f32 %v1760_v10 }
 0x34c   :  { %4000 = vrcp.f32 %v1779_v13  ;;  %v1738_v40 = vpop.f32.mrf.mxu2  ;;  %v1751_v47 = vpop.f32.mrf.mxu3  ;;  %v1791_v44 = vand.u32 2147483648, %v1779_v13  ;;  %v1789_v27 = vand.u32 2147483647, %v1779_v13  ;;  %vm1785_vm10 = vweird.f32 %v1779_v13 }
 0x34d   :  { %v6716_v47 = vld [vmem:[#allocation79_spill] sm:$0xff]  ;;  %vm1771_vm4 = vcmp.eq.f32.partialorder %v1770_v15, 8.507059e+37 }
 0x34e   :  { %vm1790_vm5 = vcmp.eq.f32.partialorder %v1789_v27, 8.507059e+37 }
 0x34f   :  { %v3997_v57 = vpop.eup %3996 }
 0x350   :  { %v5689_v18 = vadd.f32 1.0, %v3997_v57 }
 0x351   :  { %v3999_v53 = vpop.eup %3998  ;;  %v1848_v48 = vpop.f32.mrf.mxu0 }
 0x352   :  { %v1861_v32 = vpop.f32.mrf.mxu1  ;;  %v4001_v7 = vpop.eup %4000  ;;  %v1762_v6 = vmul.f32 %v3999_v53, %v1760_v10  ;;  %4002 = vrcp.f32 %v5689_v18  ;;  %v1891_v40 = vadd.f32 %v1848_v48, %v6715_v29  ;;  %vm1767_vm8 = vweird.f32 %v3999_v53 }
 0x353   :  { %v1781_v43 = vmul.f32 %v4001_v7, %v1779_v13  ;;  %4004 = vtanh.f32 %v1755_v56  ;;  %v1892_v37 = vadd.f32 %v1861_v32, %v6716_v47  ;;  %vm1786_vm9 = vweird.f32 %v4001_v7  ;;  %vm1768_vm13 = vmor %vm1766_vm12, %vm1767_vm8  ;;  %v6717_v13 = vld [vmem:[#allocation111_spill] sm:$0xff] }
 0x354   :  { %v1763_v38 = vsub.f32 1.0, %v1762_v6  ;;  %v3672_v57 = vmul.f32 -1.442695, %v1891_v40  ;;  %v1773_v32 = vor.u32 1.1754944e-38, %v1772_v9  ;;  %vm1787_vm0 = vmor %vm1785_vm10, %vm1786_vm9  ;;  %vm1805_vm7 = vweird.f32 %v5689_v18 }
 0x355   :  { %v1782_v22 = vsub.f32 1.0, %v1781_v43  ;;  %v3673_v11 = vmul.f32 -1.442695, %v1892_v37  ;;  %v1792_v37 = vor.u32 1.1754944e-38, %v1791_v44  ;;  %vm1824_vm8 = vcmp.eq.s32.totalorder %v5698_v16, 1  ;;  %v6800_v16 = vld [vmem:[#allocation64_spill] sm:$0xff] }
 0x356   :  { %v1764_v62 = vmul.f32 %v3999_v53, %v1763_v38  ;;  %4006 = vpow2.f32 %v3672_v57 }
 0x357   :  { %v1783_v54 = vmul.f32 %v4001_v7, %v1782_v22  ;;  %4008 = vpow2.f32 %v3673_v11 }
 0x358   :  { %v4003_v61 = vpop.eup %4002  ;;  %v1765_v4 = vadd.f32 %v3999_v53, %v1764_v62  ;;  %v1874_v56 = vpop.f32.mrf.mxu2 }
 0x359   :  { %v1887_v48 = vpop.f32.mrf.mxu3  ;;  %v1784_v6 = vadd.f32 %v4001_v7, %v1783_v54  ;;  %v1801_v43 = vmul.f32 %v4003_v61, %v5689_v18  ;;  %v1850_v38 = vpop.f32.mrf.mxu0  ;;  %vm1806_vm6 = vweird.f32 %v4003_v61 }
 0x35a   :  { %v1863_v29 = vpop.f32.mrf.mxu1  ;;  %v4005_v40 = vpop.eup %4004  ;;  %v1769_v22 = vsel %vm1768_vm13, %v3999_v53, %v1765_v4  ;;  %v1894_v47 = vadd.f32 %v1887_v48, %v6717_v13  ;;  %v1811_v48 = vand.u32 2147483648, %v5689_v18  ;;  %vm1807_vm9 = vmor %vm1805_vm7, %vm1806_vm6  ;;  %v6719_v13 = vld [vmem:[#allocation110_spill] sm:$0xff] }
 0x35b   :  { %v1774_v10 = vsel %vm1771_vm4, %v1773_v32, %v1769_v22  ;;  %v1788_v62 = vsel %vm1787_vm0, %v4001_v7, %v1784_v6  ;;  %v1802_v57 = vsub.f32 1.0, %v1801_v43 }
 0x35c   :  { %v1793_v19 = vsel %vm1790_vm5, %v1792_v37, %v1788_v62  ;;  %v1816_v9 = vmul.f32 %v4005_v40, %v1774_v10  ;;  %v3674_v54 = vmul.f32 -1.442695, %v1894_v47  ;;  %v4007_v38 = vpop.eup %4006  ;;  %v1812_v43 = vor.u32 1.1754944e-38, %v1811_v48 }
 0x35d   :  { %v1815_v24 = vmul.f32 %v1793_v19, %v5575_v3  ;;  %v1803_v11 = vmul.f32 %v4003_v61, %v1802_v57  ;;  %v4009_v29 = vpop.eup %4008  ;;  %v5700_v4 = vadd.f32 1.0, %v4007_v38  ;;  %v1809_v19 = vand.u32 2147483647, %v5689_v18 }
 0x35e   :  { %4010 = vpow2.f32 %v3674_v54  ;;  %v5702_v53 = vadd.f32 1.0, %v4009_v29  ;;  %v1893_v47 = vadd.f32 %v1874_v56, %v6719_v13 }
 0x35f   :  { %v1817_v44 = vadd.f32 %v1816_v9, %v1815_v24  ;;  %v1804_v15 = vadd.f32 %v4003_v61, %v1803_v11  ;;  %vm1810_vm10 = vcmp.eq.f32.partialorder %v1809_v19, 8.507059e+37  ;;  %v1910_v56 = vand.u32 2147483648, %v5700_v4 }
 0x360   :  { %v1876_v27 = vpop.f32.mrf.mxu2  ;;  %v1929_v29 = vand.u32 2147483648, %v5702_v53  ;;  %vm1904_vm0 = vweird.f32 %v5700_v4  ;;  %vm1923_vm4 = vweird.f32 %v5702_v53 }
 0x361   :  { %v1889_v7 = vpop.f32.mrf.mxu3  ;;  %4012 = vtanh.f32 %v1817_v44  ;;  %v1808_v32 = vsel %vm1807_vm9, %v4003_v61, %v1804_v15  ;;  %v5713_v6 = vsel %vm1824_vm8, %v1817_v44, %v5575_v3  ;;  %v1908_v15 = vand.u32 2147483647, %v5700_v4 }
 0x362   :  { %4014 = vrcp.f32 %v5700_v4  ;;  %v1813_v18 = vsel %vm1810_vm10, %v1812_v43, %v1808_v32  ;;  %v1927_v27 = vand.u32 2147483647, %v5702_v53  ;;  %v1911_v19 = vor.u32 1.1754944e-38, %v1910_v56 }
 0x363   :  { %4016 = vrcp.f32 %v5702_v53  ;;  %v1930_v43 = vor.u32 1.1754944e-38, %v1929_v29  ;;  %vm1909_vm7 = vcmp.eq.f32.partialorder %v1908_v15, 8.507059e+37 }
 0x364   :  { %v4011_v24 = vpop.eup %4010  ;;  %vm1928_vm9 = vcmp.eq.f32.partialorder %v1927_v27, 8.507059e+37  ;;  %v6724_v27 = vld [vmem:[#allocation34_spill] sm:$0xff] }
 0x365   :  { %v5715_v40 = vadd.f32 1.0, %v4011_v24 }
 0x367   :  { %v4013_v37 = vpop.eup %4012  ;;  %4018 = vrcp.f32 %v5715_v40  ;;  %v1947_v56 = vand.u32 2147483647, %v5715_v40 }
 0x368   :  { %v4015_v22 = vpop.eup %4014  ;;  %v5719_v10 = vmul.f32 %v4013_v37, %v1813_v18  ;;  %4020 = vtanh.f32 %v1893_v47 }
 0x369   :  { %v4017_v62 = vpop.eup %4016  ;;  %v1900_v61 = vmul.f32 %v4015_v22, %v5700_v4  ;;  %vm1905_vm12 = vweird.f32 %v4015_v22 }
 0x36a   :  { %6720 = vst [vmem:[#allocation43_spill] sm:$0xff] %v5719_v10  ;;  %v1919_v57 = vmul.f32 %v4017_v62, %v5702_v53  ;;  %v5727_v3 = vsel %vm1824_vm8, %v5719_v10, %v5590_v55  ;;  %vm1924_vm13 = vweird.f32 %v4017_v62  ;;  %vm1906_vm5 = vmor %vm1904_vm0, %vm1905_vm12  ;;  %v6749_v10 = vld [vmem:[#allocation31_spill] sm:$0xff] }
 0x36b   :  { %v1901_v9 = vsub.f32 1.0, %v1900_v61  ;;  %v1974_v54 = vpack.c.bf16 %v5727_v3, %v5727_v3  ;;  %vm1925_vm6 = vmor %vm1923_vm4, %vm1924_vm13  ;;  %vm1943_vm13 = vweird.f32 %v5715_v40  ;;  %vm1948_vm4 = vcmp.eq.f32.partialorder %v1947_v56, 8.507059e+37  ;;  %v6742_v56 = vld [vmem:[#allocation56_spill] sm:$0xff] }
 0x36c   :  { %v1920_v11 = vsub.f32 1.0, %v1919_v57  ;;  %v5750_v57 = vpop.permute.xlu1 %1960 }
 0x36d   :  { %v5732_v38 = vpop.eup %4018  ;;  %v1902_v44 = vmul.f32 %v4015_v22, %v1901_v9  ;;  %1983 = vmatmul.bf16.vlgmr.msra.gmra.mxu0 %v1974_v54  ;;  %1996 = vmatmul.bf16.vlgmr.msra.gmra.mxu1 %v1974_v54  ;;  %6721 = vst [vmem:[#allocation45_spill] sm:$0xff] %v5750_v57  ;;  %vm1962_vm10 = vcmp.eq.s32.totalorder %v5750_v57, 1  ;;  %v6798_v57 = vld [vmem:[#allocation30_spill] sm:$0xff] }
 0x36e   :  { %v1921_v55 = vmul.f32 %v4017_v62, %v1920_v11  ;;  %v1939_v7 = vmul.f32 %v5732_v38, %v5715_v40  ;;  %2009 = vmatmul.bf16.vlgmr.msrb.gmra.mxu2 %v1974_v54  ;;  %2022 = vmatmul.bf16.vlgmr.msrb.gmra.mxu3 %v1974_v54  ;;  %v4021_v4 = vpop.eup %4020  ;;  %vm1944_vm12 = vweird.f32 %v5732_v38  ;;  %v1949_v54 = vand.u32 2147483648, %v5715_v40 }
 0x36f   :  { %v1903_v48 = vadd.f32 %v4015_v22, %v1902_v44  ;;  %2237 = vmatpush.bf16.msra.mxu0 %v4311_v42  ;;  %2250 = vmatpush.bf16.msra.mxu1 %v4326_v46  ;;  %vm1945_vm0 = vmor %vm1943_vm13, %vm1944_vm12 }
 0x370   :  { %v1922_v24 = vadd.f32 %v4017_v62, %v1921_v55  ;;  %v1940_v32 = vsub.f32 1.0, %v1939_v7  ;;  %2263 = vmatpush.bf16.msrb.mxu2 %v4584_v12  ;;  %2276 = vmatpush.bf16.msrb.mxu3 %v4537_v51  ;;  %v1950_v44 = vor.u32 1.1754944e-38, %v1949_v54  ;;  %v6725_v7 = vld [vmem:[#allocation36_spill] sm:$0xff]  ;;  %v6741_v54 = vld [vmem:[#allocation27_spill] sm:$0xff] }
 0x371   :  { %v1907_v37 = vsel %vm1906_vm5, %v4015_v22, %v1903_v48  ;;  %v6726_v48 = vld [vmem:[#allocation37_spill] sm:$0xff] }
 0x372   :  { %v1912_v18 = vsel %vm1909_vm7, %v1911_v19, %v1907_v37  ;;  %v1926_v13 = vsel %vm1925_vm6, %v4017_v62, %v1922_v24  ;;  %v1941_v61 = vmul.f32 %v5732_v38, %v1940_v32  ;;  %v6727_v19 = vld [vmem:[#allocation39_spill] sm:$0xff]  ;;  %v6728_v24 = vld [vmem:[#allocation20_spill] sm:$0xff]  ;;  %v6729_v32 = vld [vmem:[#allocation21_spill] sm:$0xff] }
 0x373   :  { %v1931_v47 = vsel %vm1928_vm9, %v1930_v43, %v1926_v13  ;;  %v1954_v53 = vmul.f32 %v4021_v4, %v1912_v18  ;;  %2238 = vmatpush.bf16.msra.mxu0 %v4342_v52  ;;  %2251 = vmatpush.bf16.msra.mxu1 %v6576_v34  ;;  %v6730_v43 = vld [vmem:[#allocation41_spill] sm:$0xff]  ;;  %v6731_v37 = vld [vmem:[#allocation44_spill] sm:$0xff]  ;;  %v6732_v4 = vld [vmem:[#allocation22_spill] sm:$0xff] }
 0x374   :  { %v1953_v9 = vmul.f32 %v1931_v47, %v5613_v33  ;;  %2264 = vmatpush.bf16.msrb.mxu2 %v4647_v41  ;;  %2277 = vmatpush.bf16.msrb.mxu3 %v4564_v0  ;;  %v1942_v62 = vadd.f32 %v5732_v38, %v1941_v61  ;;  %v6733_v18 = vld [vmem:[#allocation23_spill] sm:$0xff]  ;;  %v6734_v13 = vld [vmem:[#allocation46_spill] sm:$0xff]  ;;  %v6737_v61 = vld [vmem:[#allocation25_spill] sm:$0xff] }
 0x375   :  { %v6735_v47 = vld [vmem:[#allocation47_spill] sm:$0xff] }
 0x376   :  { %v1955_v22 = vadd.f32 %v1954_v53, %v1953_v9  ;;  %v1946_v29 = vsel %vm1945_vm0, %v5732_v38, %v1942_v62  ;;  %v6736_v53 = vld [vmem:[#allocation24_spill] sm:$0xff]  ;;  %v6738_v9 = vld [vmem:[#allocation51_spill] sm:$0xff]  ;;  %v6740_v62 = vld [vmem:[#allocation26_spill] sm:$0xff] }
 0x377   :  { %2239 = vmatpush.bf16.msra.mxu0 %v6577_v23  ;;  %2252 = vmatpush.bf16.msra.mxu1 %v6578_v26 }
 0x378   :  { %4022 = vtanh.f32 %v1955_v22  ;;  %2265 = vmatpush.bf16.msrb.mxu2 %v4700_v17  ;;  %2278 = vmatpush.bf16.msrb.mxu3 %v4640_v39  ;;  %v5766_v11 = vsel %vm1962_vm10, %v1955_v22, %v5613_v33  ;;  %v1951_v33 = vsel %vm1948_vm4, %v1950_v44, %v1946_v29  ;;  %v6739_v22 = vld [vmem:[#allocation53_spill] sm:$0xff]  ;;  %v6744_v44 = vld [vmem:[#allocation28_spill] sm:$0xff] }
 0x379   :  { %v6743_v29 = vld [vmem:[#allocation57_spill] sm:$0xff] }
 0x37b   :  { %2240 = vmatpush.bf16.msra.mxu0 %v6580_v8  ;;  %2253 = vmatpush.bf16.msra.mxu1 %v6581_v58 }
 0x37c   :  { %2266 = vmatpush.bf16.msrb.mxu2 %v4729_v36  ;;  %2279 = vmatpush.bf16.msrb.mxu3 %v4678_v60 }
 0x37e   :  { %v4023_v15 = vpop.eup %4022 }
 0x37f   :  { %v5775_v55 = vmul.f32 %v4023_v15, %v1951_v33  ;;  %2241 = vmatpush.bf16.msra.mxu0 %v6582_v14  ;;  %2254 = vmatpush.bf16.msra.mxu1 %v6583_v5  ;;  %v6745_v15 = vld [vmem:[#allocation29_spill] sm:$0xff]  ;;  %v6746_v33 = vld [vmem:[#allocation59_spill] sm:$0xff] }
 0x380   :  { %2267 = vmatpush.bf16.msrb.mxu2 %v4753_v50  ;;  %2280 = vmatpush.bf16.msrb.mxu3 %v4743_v45 }
 0x381   :  { %6722 = vst [vmem:[#allocation83_spill] sm:$0xff] %v5775_v55  ;;  %v5785_v40 = vsel %vm1962_vm10, %v5775_v55, %v5631_v20  ;;  %v6723_v20 = vld [vmem:[#allocation19_spill] sm:$0xff]  ;;  %v6748_v55 = vld [vmem:[#allocation30_spill] sm:$0xff] }
 0x382   :  { %v2105_v38 = vpack.c.bf16 %v5785_v40, %v5785_v40 }
 0x383   :  { %2242 = vmatpush.bf16.msra.mxu0 %v6584_v1  ;;  %2255 = vmatpush.bf16.msra.mxu1 %v6585_v59 }
 0x384   :  { %2114 = vmatmul.bf16.vlgmr.msrb.gmra.mxu0 %v2105_v38  ;;  %2127 = vmatmul.bf16.vlgmr.msrb.gmra.mxu1 %v2105_v38 }
 0x385   :  { %2140 = vmatmul.bf16.vlgmr.msra.gmra.mxu2 %v2105_v38  ;;  %2153 = vmatmul.bf16.vlgmr.msra.gmra.mxu3 %v2105_v38  ;;  %v6747_v38 = vld [vmem:[#allocation62_spill] sm:$0xff] }
 0x386   :  { %2268 = vmatpush.bf16.msrb.mxu2 %v4768_v63  ;;  %2281 = vmatpush.bf16.msrb.mxu3 %v4774_v2 }
 0x387   :  { %2243 = vmatpush.bf16.msra.mxu0 %v6586_v35  ;;  %2256 = vmatpush.bf16.msra.mxu1 %v4453_v25 }
 0x38a   :  { %2269 = vmatpush.bf16.msrb.mxu2 %v4788_v21  ;;  %2282 = vmatpush.bf16.msrb.mxu3 %v4794_v28 }
 0x38b   :  { %2244 = vmatpush.bf16.msra.mxu0 %v4468_v30  ;;  %2257 = vmatpush.bf16.msra.mxu1 %v4471_v31 }
 0x38e   :  { %2270 = vmatpush.bf16.msrb.mxu2 %v6724_v27  ;;  %2283 = vmatpush.bf16.msrb.mxu3 %v6725_v7 }
 0x38f   :  { %2368 = vmatpush.bf16.msrb.mxu0 %v6677_v49  ;;  %2381 = vmatpush.bf16.msrb.mxu1 %v6723_v20 }
 0x392   :  { %2394 = vmatpush.bf16.msra.mxu2 %v6726_v48  ;;  %2407 = vmatpush.bf16.msra.mxu3 %v6727_v19 }
 0x393   :  { %2369 = vmatpush.bf16.msrb.mxu0 %v6728_v24  ;;  %2382 = vmatpush.bf16.msrb.mxu1 %v6729_v32 }
 0x396   :  { %2395 = vmatpush.bf16.msra.mxu2 %v6730_v43  ;;  %2408 = vmatpush.bf16.msra.mxu3 %v6731_v37  ;;  %v6764_v43 = vld [vmem:[#allocation101_spill] sm:$0xff] }
 0x397   :  { %2370 = vmatpush.bf16.msrb.mxu0 %v6732_v4  ;;  %2383 = vmatpush.bf16.msrb.mxu1 %v6733_v18 }
 0x39a   :  { %2396 = vmatpush.bf16.msra.mxu2 %v6734_v13  ;;  %2409 = vmatpush.bf16.msra.mxu3 %v6735_v47  ;;  %v6758_v47 = vld [vmem:[#allocation93_spill] sm:$0xff] }
 0x39b   :  { %2371 = vmatpush.bf16.msrb.mxu0 %v6736_v53  ;;  %2384 = vmatpush.bf16.msrb.mxu1 %v6737_v61  ;;  %v6757_v61 = vld [vmem:[#allocation60_spill] sm:$0xff] }
 0x39e   :  { %2397 = vmatpush.bf16.msra.mxu2 %v6738_v9  ;;  %2410 = vmatpush.bf16.msra.mxu3 %v6739_v22  ;;  %v6750_v22 = vld [vmem:[#allocation64_spill] sm:$0xff]  ;;  %v6756_v9 = vld [vmem:[#allocation58_spill] sm:$0xff] }
 0x39f   :  { %2372 = vmatpush.bf16.msrb.mxu0 %v6740_v62  ;;  %2385 = vmatpush.bf16.msrb.mxu1 %v6741_v54  ;;  %v6751_v62 = vld [vmem:[#allocation65_spill] sm:$0xff]  ;;  %v6752_v54 = vld [vmem:[#allocation32_spill] sm:$0xff] }
 0x3a2   :  { %2398 = vmatpush.bf16.msra.mxu2 %v6742_v56  ;;  %2411 = vmatpush.bf16.msra.mxu3 %v6743_v29  ;;  %v6753_v56 = vld [vmem:[#allocation33_spill] sm:$0xff]  ;;  %v6754_v29 = vld [vmem:[#allocation68_spill] sm:$0xff] }
 0x3a3   :  { %2373 = vmatpush.bf16.msrb.mxu0 %v6744_v44  ;;  %2386 = vmatpush.bf16.msrb.mxu1 %v6745_v15  ;;  %v6755_v44 = vld [vmem:[#allocation69_spill] sm:$0xff] }
 0x3a6   :  { %2399 = vmatpush.bf16.msra.mxu2 %v6746_v33  ;;  %2412 = vmatpush.bf16.msra.mxu3 %v6747_v38 }
 0x3a7   :  { %2374 = vmatpush.bf16.msrb.mxu0 %v6748_v55  ;;  %2387 = vmatpush.bf16.msrb.mxu1 %v6749_v10 }
 0x3aa   :  { %2400 = vmatpush.bf16.msra.mxu2 %v6750_v22  ;;  %2413 = vmatpush.bf16.msra.mxu3 %v6751_v62 }
 0x3ab   :  { %2375 = vmatpush.bf16.msrb.mxu0 %v6752_v54  ;;  %2388 = vmatpush.bf16.msrb.mxu1 %v6753_v56 }
 0x3ae   :  { %2401 = vmatpush.bf16.msra.mxu2 %v6754_v29  ;;  %2414 = vmatpush.bf16.msra.mxu3 %v6755_v44 }
 0x3ea   :  { %v1984_v15 = vpop.f32.mrf.mxu0  ;;  %v1997_v33 = vpop.f32.mrf.mxu1 }
 0x3eb   :  { %v2027_v38 = vadd.f32 %v1984_v15, %v6756_v9  ;;  %v2028_v55 = vadd.f32 %v1997_v33, %v6757_v61 }
 0x3ed   :  { %v3675_v53 = vmul.f32 -1.442695, %v2027_v38  ;;  %v3676_v10 = vmul.f32 -1.442695, %v2028_v55  ;;  %v6759_v55 = vld [vmem:[#allocation92_spill] sm:$0xff] }
 0x3ef   :  { %4024 = vpow2.f32 %v3675_v53 }
 0x3f0   :  { %4026 = vpow2.f32 %v3676_v10 }
 0x3f1   :  { %v2010_v22 = vpop.f32.mrf.mxu2  ;;  %v2023_v62 = vpop.f32.mrf.mxu3 }
 0x3f2   :  { %v2030_v54 = vadd.f32 %v2023_v62, %v6758_v47  ;;  %v1986_v13 = vpop.f32.mrf.mxu0  ;;  %v1999_v56 = vpop.f32.mrf.mxu1  ;;  %v2029_v53 = vadd.f32 %v2010_v22, %v6759_v55  ;;  %v6761_v62 = vld [vmem:[#allocation74_spill] sm:$0xff] }
 0x3f3   :  { %v6760_v13 = vld [vmem:[#allocation48_spill] sm:$0xff] }
 0x3f4   :  { %v3677_v18 = vmul.f32 -1.442695, %v2030_v54  ;;  %v321_v54 = vadd.f32 %v6761_v62, %v6760_v13 }
 0x3f5   :  { %v4025_v29 = vpop.eup %4024 }
 0x3f6   :  { %v4027_v4 = vpop.eup %4026  ;;  %v2034_v44 = vadd.f32 1.0, %v4025_v29  ;;  %4028 = vpow2.f32 %v3677_v18  ;;  %v6762_v18 = vld [vmem:[#allocation49_spill] sm:$0xff] }
 0x3f7   :  { %v2053_v37 = vadd.f32 1.0, %v4027_v4  ;;  %v6763_v4 = vld [vmem:[#allocation75_spill] sm:$0xff] }
 0x3f8   :  { %4030 = vrcp.f32 %v2034_v44  ;;  %v350_v29 = vadd.f32 %v6763_v4, %v6762_v18  ;;  %v2044_v24 = vand.u32 2147483647, %v2034_v44  ;;  %v2046_v19 = vand.u32 2147483648, %v2034_v44 }
 0x3f9   :  { %4032 = vrcp.f32 %v2053_v37  ;;  %v2012_v9 = vpop.f32.mrf.mxu2  ;;  %v2025_v61 = vpop.f32.mrf.mxu3  ;;  %v2065_v20 = vand.u32 2147483648, %v2053_v37  ;;  %v2063_v13 = vand.u32 2147483647, %v2053_v37  ;;  %vm2059_vm7 = vweird.f32 %v2053_v37 }
 0x3fa   :  { %v6765_v9 = vld [vmem:[#allocation109_spill] sm:$0xff]  ;;  %vm2040_vm9 = vweird.f32 %v2034_v44  ;;  %vm2045_vm0 = vcmp.eq.f32.partialorder %v2044_v24, 8.507059e+37 }
 0x3fb   :  { %v408_v61 = vadd.f32 %v6765_v9, %v6764_v43  ;;  %vm2064_vm4 = vcmp.eq.f32.partialorder %v2063_v13, 8.507059e+37 }
 0x3fc   :  { %v4029_v15 = vpop.eup %4028 }
 0x3fd   :  { %v5837_v10 = vadd.f32 1.0, %v4029_v15 }
 0x3fe   :  { %v4031_v33 = vpop.eup %4030 }
 0x3ff   :  { %v4033_v38 = vpop.eup %4032  ;;  %v2036_v47 = vmul.f32 %v4031_v33, %v2034_v44  ;;  %4034 = vrcp.f32 %v5837_v10  ;;  %vm2041_vm5 = vweird.f32 %v4031_v33 }
 0x400   :  { %v2055_v56 = vmul.f32 %v4033_v38, %v2053_v37  ;;  %4036 = vtanh.f32 %v2029_v53  ;;  %vm2060_vm6 = vweird.f32 %v4033_v38  ;;  %vm2042_vm12 = vmor %vm2040_vm9, %vm2041_vm5  ;;  %v2047_v53 = vor.u32 1.1754944e-38, %v2046_v19 }
 0x401   :  { %v2037_v32 = vsub.f32 1.0, %v2036_v47  ;;  %v2115_v22 = vpop.f32.mrf.mxu0  ;;  %v2128_v15 = vpop.f32.mrf.mxu1  ;;  %vm2061_vm13 = vmor %vm2059_vm7, %vm2060_vm6  ;;  %vm2079_vm6 = vweird.f32 %v5837_v10 }
 0x402   :  { %v2056_v55 = vsub.f32 1.0, %v2055_v56  ;;  %v2158_v48 = vadd.f32 %v2115_v22, %v321_v54  ;;  %v2159_v7 = vadd.f32 %v2128_v15, %v350_v29 }
 0x403   :  { %v2038_v49 = vmul.f32 %v4031_v33, %v2037_v32  ;;  %v2066_v32 = vor.u32 1.1754944e-38, %v2065_v20 }
 0x404   :  { %v2057_v62 = vmul.f32 %v4033_v38, %v2056_v55  ;;  %v3678_v27 = vmul.f32 -1.442695, %v2158_v48  ;;  %v3679_v47 = vmul.f32 -1.442695, %v2159_v7 }
 0x405   :  { %v4035_v4 = vpop.eup %4034  ;;  %v2039_v18 = vadd.f32 %v4031_v33, %v2038_v49 }
 0x406   :  { %v2058_v9 = vadd.f32 %v4033_v38, %v2057_v62  ;;  %v2075_v56 = vmul.f32 %v4035_v4, %v5837_v10  ;;  %4038 = vpow2.f32 %v3678_v27  ;;  %v4037_v54 = vpop.eup %4036  ;;  %vm2080_vm5 = vweird.f32 %v4035_v4 }
 0x407   :  { %v2043_v22 = vsel %vm2042_vm12, %v4031_v33, %v2039_v18  ;;  %4040 = vpow2.f32 %v3679_v47  ;;  %v2083_v47 = vand.u32 2147483647, %v5837_v10  ;;  %vm2081_vm7 = vmor %vm2079_vm6, %vm2080_vm5 }
 0x408   :  { %v2048_v29 = vsel %vm2045_vm0, %v2047_v53, %v2043_v22  ;;  %v2062_v15 = vsel %vm2061_vm13, %v4033_v38, %v2058_v9  ;;  %v2076_v48 = vsub.f32 1.0, %v2075_v56  ;;  %v2141_v37 = vpop.f32.mrf.mxu2  ;;  %v2154_v49 = vpop.f32.mrf.mxu3  ;;  %v2085_v38 = vand.u32 2147483648, %v5837_v10  ;;  %v6766_v56 = vld [vmem:[#allocation100_spill] sm:$0xff] }
 0x409   :  { %v2067_v44 = vsel %vm2064_vm4, %v2066_v32, %v2062_v15  ;;  %v2090_v7 = vmul.f32 %v4037_v54, %v2048_v29  ;;  %v2161_v55 = vadd.f32 %v2154_v49, %v408_v61  ;;  %v2117_v19 = vpop.f32.mrf.mxu0  ;;  %v2130_v62 = vpop.f32.mrf.mxu1  ;;  %v6767_v54 = vld [vmem:[#allocation108_spill] sm:$0xff]  ;;  %vm2084_vm9 = vcmp.eq.f32.partialorder %v2083_v47, 8.507059e+37 }
 0x40a   :  { %v2089_v43 = vmul.f32 %v2067_v44, %v5713_v6  ;;  %v2077_v27 = vmul.f32 %v4035_v4, %v2076_v48  ;;  %v379_v32 = vadd.f32 %v6767_v54, %v6766_v56  ;;  %v6801_v56 = vld [vmem:[#allocation65_spill] sm:$0xff] }
 0x40b   :  { %v3680_v31 = vmul.f32 -1.442695, %v2161_v55 }
 0x40c   :  { %v4039_v30 = vpop.eup %4038  ;;  %v2091_v20 = vadd.f32 %v2090_v7, %v2089_v43  ;;  %v2078_v24 = vadd.f32 %v4035_v4, %v2077_v27  ;;  %v2160_v48 = vadd.f32 %v2141_v37, %v379_v32 }
 0x40d   :  { %v4041_v33 = vpop.eup %4040  ;;  %v2165_v18 = vadd.f32 1.0, %v4039_v30  ;;  %4042 = vpow2.f32 %v3680_v31  ;;  %v2086_v31 = vor.u32 1.1754944e-38, %v2085_v38 }
 0x40e   :  { %4044 = vtanh.f32 %v2091_v20  ;;  %v2184_v13 = vadd.f32 1.0, %v4041_v33  ;;  %v5852_v61 = vsel %vm1962_vm10, %v2091_v20, %v5713_v6  ;;  %v2082_v30 = vsel %vm2081_vm7, %v4035_v4, %v2078_v24 }
 0x40f   :  { %4046 = vrcp.f32 %v2165_v18  ;;  %v2087_v6 = vsel %vm2084_vm9, %v2086_v31, %v2082_v30  ;;  %v2177_v62 = vand.u32 2147483648, %v2165_v18  ;;  %v2175_v33 = vand.u32 2147483647, %v2165_v18 }
 0x410   :  { %4048 = vrcp.f32 %v2184_v13  ;;  %v2143_v43 = vpop.f32.mrf.mxu2  ;;  %v2156_v53 = vpop.f32.mrf.mxu3  ;;  %v2196_v27 = vand.u32 2147483648, %v2184_v13  ;;  %v2194_v38 = vand.u32 2147483647, %v2184_v13  ;;  %vm2171_vm0 = vweird.f32 %v2165_v18 }
 0x411   :  { %vm2190_vm4 = vweird.f32 %v2184_v13  ;;  %vm2176_vm7 = vcmp.eq.f32.partialorder %v2175_v33, 8.507059e+37 }
 0x412   :  { %v2197_v31 = vor.u32 1.1754944e-38, %v2196_v27  ;;  %vm2195_vm9 = vcmp.eq.f32.partialorder %v2194_v38, 8.507059e+37  ;;  %v6772_v38 = vld [vmem:[#allocation34_spill] sm:$0xff] }
 0x413   :  { %v4043_v9 = vpop.eup %4042 }
 0x414   :  { %v4045_v22 = vpop.eup %4044  ;;  %v5858_v29 = vadd.f32 1.0, %v4043_v9 }
 0x415   :  { %v4047_v15 = vpop.eup %4046  ;;  %v5860_v49 = vmul.f32 %v4045_v22, %v2087_v6 }
 0x416   :  { %v4049_v10 = vpop.eup %4048  ;;  %v2167_v44 = vmul.f32 %v4047_v15, %v2165_v18  ;;  %4050 = vrcp.f32 %v5858_v29  ;;  %vm2172_vm12 = vweird.f32 %v4047_v15 }
 0x417   :  { %6768 = vst [vmem:[#allocation82_spill] sm:$0xff] %v5860_v49  ;;  %v2186_v7 = vmul.f32 %v4049_v10, %v2184_v13  ;;  %v5867_v55 = vsel %vm1962_vm10, %v5860_v49, %v5727_v3  ;;  %4052 = vtanh.f32 %v2160_v48  ;;  %vm2191_vm13 = vweird.f32 %v4049_v10  ;;  %vm2173_vm5 = vmor %vm2171_vm0, %vm2172_vm12  ;;  %v6799_v49 = vld [vmem:[#allocation31_spill] sm:$0xff] }
 0x418   :  { %v2168_v4 = vsub.f32 1.0, %v2167_v44  ;;  %v2236_v37 = vpack.c.bf16 %v5867_v55, %v5867_v55  ;;  %v2178_v3 = vor.u32 1.1754944e-38, %v2177_v62  ;;  %vm2192_vm6 = vmor %vm2190_vm4, %vm2191_vm13  ;;  %vm2210_vm13 = vweird.f32 %v5858_v29 }
 0x419   :  { %v2187_v19 = vsub.f32 1.0, %v2186_v7 }
 0x41a   :  { %v2169_v20 = vmul.f32 %v4047_v15, %v2168_v4  ;;  %2245 = vmatmul.bf16.vlgmr.msra.gmra.mxu0 %v2236_v37  ;;  %2258 = vmatmul.bf16.vlgmr.msra.gmra.mxu1 %v2236_v37 }
 0x41b   :  { %v2188_v24 = vmul.f32 %v4049_v10, %v2187_v19  ;;  %2271 = vmatmul.bf16.vlgmr.msrb.gmra.mxu2 %v2236_v37  ;;  %2284 = vmatmul.bf16.vlgmr.msrb.gmra.mxu3 %v2236_v37  ;;  %v2214_v19 = vand.u32 2147483647, %v5858_v29 }
 0x41c   :  { %v4051_v47 = vpop.eup %4050  ;;  %v2170_v43 = vadd.f32 %v4047_v15, %v2169_v20  ;;  %2499 = vmatpush.bf16.msra.mxu0 %v4311_v42  ;;  %2512 = vmatpush.bf16.msra.mxu1 %v4326_v46 }
 0x41d   :  { %v2189_v53 = vadd.f32 %v4049_v10, %v2188_v24  ;;  %v2206_v30 = vmul.f32 %v4051_v47, %v5858_v29  ;;  %2525 = vmatpush.bf16.msrb.mxu2 %v4584_v12  ;;  %2538 = vmatpush.bf16.msrb.mxu3 %v4537_v51  ;;  %v4053_v18 = vpop.eup %4052  ;;  %vm2211_vm12 = vweird.f32 %v4051_v47  ;;  %vm2215_vm4 = vcmp.eq.f32.partialorder %v2214_v19, 8.507059e+37  ;;  %v6771_v24 = vld [vmem:[#allocation17_spill] sm:$0xff]  ;;  %v6791_v19 = vld [vmem:[#allocation27_spill] sm:$0xff] }
 0x41e   :  { %v2174_v9 = vsel %vm2173_vm5, %v4047_v15, %v2170_v43  ;;  %vm2212_vm0 = vmor %vm2210_vm13, %vm2211_vm12  ;;  %v6774_v43 = vld [vmem:[#allocation18_spill] sm:$0xff] }
 0x41f   :  { %v2179_v13 = vsel %vm2176_vm7, %v2178_v3, %v2174_v9  ;;  %v2193_v54 = vsel %vm2192_vm6, %v4049_v10, %v2189_v53  ;;  %v2207_v32 = vsub.f32 1.0, %v2206_v30  ;;  %v2216_v10 = vand.u32 2147483648, %v5858_v29  ;;  %v6775_v3 = vld [vmem:[#allocation19_spill] sm:$0xff]  ;;  %v6776_v53 = vld [vmem:[#allocation37_spill] sm:$0xff] }
 0x420   :  { %v2198_v22 = vsel %vm2195_vm9, %v2197_v31, %v2193_v54  ;;  %v2221_v6 = vmul.f32 %v4053_v18, %v2179_v13  ;;  %2500 = vmatpush.bf16.msra.mxu0 %v4342_v52  ;;  %2513 = vmatpush.bf16.msra.mxu1 %v6576_v34  ;;  %v6777_v30 = vld [vmem:[#allocation39_spill] sm:$0xff]  ;;  %v6778_v31 = vld [vmem:[#allocation20_spill] sm:$0xff]  ;;  %v6779_v9 = vld [vmem:[#allocation21_spill] sm:$0xff] }
 0x421   :  { %v2220_v48 = vmul.f32 %v2198_v22, %v5766_v11  ;;  %v2208_v44 = vmul.f32 %v4051_v47, %v2207_v32  ;;  %2526 = vmatpush.bf16.msrb.mxu2 %v4647_v41  ;;  %2539 = vmatpush.bf16.msrb.mxu3 %v4564_v0  ;;  %v2217_v37 = vor.u32 1.1754944e-38, %v2216_v10  ;;  %v6780_v18 = vld [vmem:[#allocation41_spill] sm:$0xff]  ;;  %v6781_v13 = vld [vmem:[#allocation44_spill] sm:$0xff]  ;;  %v6782_v54 = vld [vmem:[#allocation22_spill] sm:$0xff] }
 0x422   :  { %v6783_v32 = vld [vmem:[#allocation23_spill] sm:$0xff]  ;;  %v6784_v22 = vld [vmem:[#allocation46_spill] sm:$0xff] }
 0x423   :  { %v2222_v15 = vadd.f32 %v2221_v6, %v2220_v48  ;;  %v2209_v7 = vadd.f32 %v4051_v47, %v2208_v44  ;;  %v6785_v6 = vld [vmem:[#allocation47_spill] sm:$0xff]  ;;  %v6786_v48 = vld [vmem:[#allocation24_spill] sm:$0xff]  ;;  %v6787_v44 = vld [vmem:[#allocation25_spill] sm:$0xff] }
 0x424   :  { %2501 = vmatpush.bf16.msra.mxu0 %v6577_v23  ;;  %2514 = vmatpush.bf16.msra.mxu1 %v6578_v26  ;;  %v6790_v10 = vld [vmem:[#allocation26_spill] sm:$0xff] }
 0x425   :  { %4054 = vtanh.f32 %v2222_v15  ;;  %v5888_v4 = vsel %vm1824_vm8, %v2222_v15, %v5766_v11  ;;  %2527 = vmatpush.bf16.msrb.mxu2 %v4700_v17  ;;  %2540 = vmatpush.bf16.msrb.mxu3 %v4640_v39  ;;  %v2213_v62 = vsel %vm2212_vm0, %v4051_v47, %v2209_v7  ;;  %v6773_v47 = vld [vmem:[#allocation36_spill] sm:$0xff]  ;;  %v6788_v15 = vld [vmem:[#allocation51_spill] sm:$0xff]  ;;  %v6789_v7 = vld [vmem:[#allocation53_spill] sm:$0xff] }
 0x426   :  { %v2218_v27 = vsel %vm2215_vm4, %v2217_v37, %v2213_v62  ;;  %v6792_v62 = vld [vmem:[#allocation56_spill] sm:$0xff]  ;;  %v6793_v37 = vld [vmem:[#allocation57_spill] sm:$0xff] }
 0x428   :  { %2502 = vmatpush.bf16.msra.mxu0 %v6580_v8  ;;  %2515 = vmatpush.bf16.msra.mxu1 %v6581_v58 }
 0x429   :  { %2528 = vmatpush.bf16.msrb.mxu2 %v4729_v36  ;;  %2541 = vmatpush.bf16.msrb.mxu3 %v4678_v60 }
 0x42b   :  { %v4055_v11 = vpop.eup %4054 }
 0x42c   :  { %v5898_v20 = vmul.f32 %v4055_v11, %v2218_v27  ;;  %2503 = vmatpush.bf16.msra.mxu0 %v6582_v14  ;;  %2516 = vmatpush.bf16.msra.mxu1 %v6583_v5  ;;  %v6794_v11 = vld [vmem:[#allocation28_spill] sm:$0xff]  ;;  %v6795_v27 = vld [vmem:[#allocation29_spill] sm:$0xff] }
 0x42d   :  { %2529 = vmatpush.bf16.msrb.mxu2 %v4753_v50  ;;  %2542 = vmatpush.bf16.msrb.mxu3 %v4743_v45 }
 0x42e   :  { %6769 = vst [vmem:[#allocation84_spill] sm:$0xff] %v5898_v20  ;;  %v5906_v29 = vsel %vm1824_vm8, %v5898_v20, %v5785_v40  ;;  %v6770_v40 = vld [vmem:[#allocation16_spill] sm:$0xff]  ;;  %v6797_v20 = vld [vmem:[#allocation62_spill] sm:$0xff] }
 0x42f   :  { %v2367_v33 = vpack.c.bf16 %v5906_v29, %v5906_v29 }
 0x430   :  { %2504 = vmatpush.bf16.msra.mxu0 %v6584_v1  ;;  %2517 = vmatpush.bf16.msra.mxu1 %v6585_v59 }
 0x431   :  { %2376 = vmatmul.bf16.vlgmr.msrb.gmra.mxu0 %v2367_v33  ;;  %2389 = vmatmul.bf16.vlgmr.msrb.gmra.mxu1 %v2367_v33 }
 0x432   :  { %2402 = vmatmul.bf16.vlgmr.msra.gmra.mxu2 %v2367_v33  ;;  %2415 = vmatmul.bf16.vlgmr.msra.gmra.mxu3 %v2367_v33  ;;  %v6796_v33 = vld [vmem:[#allocation59_spill] sm:$0xff] }
 0x433   :  { %2530 = vmatpush.bf16.msrb.mxu2 %v4768_v63  ;;  %2543 = vmatpush.bf16.msrb.mxu3 %v4774_v2 }
 0x434   :  { %2505 = vmatpush.bf16.msra.mxu0 %v6586_v35  ;;  %2518 = vmatpush.bf16.msra.mxu1 %v4453_v25 }
 0x437   :  { %2531 = vmatpush.bf16.msrb.mxu2 %v4788_v21  ;;  %2544 = vmatpush.bf16.msrb.mxu3 %v4794_v28 }
 0x438   :  { %2506 = vmatpush.bf16.msra.mxu0 %v6770_v40  ;;  %2519 = vmatpush.bf16.msra.mxu1 %v6771_v24 }
 0x43b   :  { %2532 = vmatpush.bf16.msrb.mxu2 %v6772_v38  ;;  %2545 = vmatpush.bf16.msrb.mxu3 %v6773_v47 }
 0x43c   :  { %2630 = vmatpush.bf16.msrb.mxu0 %v6774_v43  ;;  %2643 = vmatpush.bf16.msrb.mxu1 %v6775_v3 }
 0x43f   :  { %2656 = vmatpush.bf16.msra.mxu2 %v6776_v53  ;;  %2669 = vmatpush.bf16.msra.mxu3 %v6777_v30 }
 0x440   :  { %2631 = vmatpush.bf16.msrb.mxu0 %v6778_v31  ;;  %2644 = vmatpush.bf16.msrb.mxu1 %v6779_v9 }
 0x443   :  { %2657 = vmatpush.bf16.msra.mxu2 %v6780_v18  ;;  %2670 = vmatpush.bf16.msra.mxu3 %v6781_v13 }
 0x444   :  { %2632 = vmatpush.bf16.msrb.mxu0 %v6782_v54  ;;  %2645 = vmatpush.bf16.msrb.mxu1 %v6783_v32 }
 0x447   :  { %2658 = vmatpush.bf16.msra.mxu2 %v6784_v22  ;;  %2671 = vmatpush.bf16.msra.mxu3 %v6785_v6  ;;  %v6811_v6 = vld [vmem:[#allocation95_spill] sm:$0xff] }
 0x448   :  { %2633 = vmatpush.bf16.msrb.mxu0 %v6786_v48  ;;  %2646 = vmatpush.bf16.msrb.mxu1 %v6787_v44 }
 0x44b   :  { %2659 = vmatpush.bf16.msra.mxu2 %v6788_v15  ;;  %2672 = vmatpush.bf16.msra.mxu3 %v6789_v7  ;;  %v6809_v7 = vld [vmem:[#allocation67_spill] sm:$0xff] }
 0x44c   :  { %2634 = vmatpush.bf16.msrb.mxu0 %v6790_v10  ;;  %2647 = vmatpush.bf16.msrb.mxu1 %v6791_v19  ;;  %v6802_v10 = vld [vmem:[#allocation32_spill] sm:$0xff] }
 0x44f   :  { %2660 = vmatpush.bf16.msra.mxu2 %v6792_v62  ;;  %2673 = vmatpush.bf16.msra.mxu3 %v6793_v37  ;;  %v6803_v62 = vld [vmem:[#allocation33_spill] sm:$0xff]  ;;  %v6804_v37 = vld [vmem:[#allocation68_spill] sm:$0xff] }
 0x450   :  { %2635 = vmatpush.bf16.msrb.mxu0 %v6794_v11  ;;  %2648 = vmatpush.bf16.msrb.mxu1 %v6795_v27  ;;  %v6805_v11 = vld [vmem:[#allocation69_spill] sm:$0xff]  ;;  %v6806_v27 = vld [vmem:[#allocation35_spill] sm:$0xff] }
 0x453   :  { %2661 = vmatpush.bf16.msra.mxu2 %v6796_v33  ;;  %2674 = vmatpush.bf16.msra.mxu3 %v6797_v20  ;;  %v6807_v33 = vld [vmem:[#allocation66_spill] sm:$0xff] }
 0x454   :  { %2636 = vmatpush.bf16.msrb.mxu0 %v6798_v57  ;;  %2649 = vmatpush.bf16.msrb.mxu1 %v6799_v49  ;;  %v210_v19 = vadd.f32 %v6807_v33, %v6806_v27  ;;  %v6808_v20 = vld [vmem:[#allocation38_spill] sm:$0xff] }
 0x455   :  { %v239_v57 = vadd.f32 %v6809_v7, %v6808_v20 }
 0x457   :  { %2662 = vmatpush.bf16.msra.mxu2 %v6800_v16  ;;  %2675 = vmatpush.bf16.msra.mxu3 %v6801_v56 }
 0x458   :  { %2637 = vmatpush.bf16.msrb.mxu0 %v6802_v10  ;;  %2650 = vmatpush.bf16.msrb.mxu1 %v6803_v62  ;;  %v6810_v10 = vld [vmem:[#allocation87_spill] sm:$0xff] }
 0x459   :  { %v297_v62 = vadd.f32 %v6811_v6, %v6810_v10 }
 0x45b   :  { %2663 = vmatpush.bf16.msra.mxu2 %v6804_v37  ;;  %2676 = vmatpush.bf16.msra.mxu3 %v6805_v11 }
 0x497   :  { %v2246_v15 = vpop.f32.mrf.mxu0  ;;  %v2259_v49 = vpop.f32.mrf.mxu1 }
 0x498   :  { %v2289_v48 = vadd.f32 %v2246_v15, %v210_v19  ;;  %v2290_v16 = vadd.f32 %v2259_v49, %v239_v57  ;;  %v6812_v49 = vld [vmem:[#allocation86_spill] sm:$0xff] }
 0x49a   :  { %v3681_v44 = vmul.f32 -1.442695, %v2289_v48  ;;  %v3682_v56 = vmul.f32 -1.442695, %v2290_v16  ;;  %v6813_v48 = vld [vmem:[#allocation94_spill] sm:$0xff] }
 0x49c   :  { %4056 = vpow2.f32 %v3681_v44  ;;  %v268_v44 = vadd.f32 %v6813_v48, %v6812_v49 }
 0x49d   :  { %4058 = vpow2.f32 %v3682_v56 }
 0x49e   :  { %v2272_v37 = vpop.f32.mrf.mxu2  ;;  %v2285_v22 = vpop.f32.mrf.mxu3 }
 0x49f   :  { %v2292_v11 = vadd.f32 %v2285_v22, %v297_v62  ;;  %v2248_v54 = vpop.f32.mrf.mxu0  ;;  %v2261_v32 = vpop.f32.mrf.mxu1  ;;  %v2291_v56 = vadd.f32 %v2272_v37, %v268_v44 }
 0x4a1   :  { %v3683_v33 = vmul.f32 -1.442695, %v2292_v11 }
 0x4a2   :  { %v4057_v27 = vpop.eup %4056 }
 0x4a3   :  { %v4059_v13 = vpop.eup %4058  ;;  %v2296_v7 = vadd.f32 1.0, %v4057_v27  ;;  %4060 = vpow2.f32 %v3683_v33  ;;  %v6814_v27 = vld [vmem:[#allocation70_spill] sm:$0xff] }
 0x4a4   :  { %v2315_v20 = vadd.f32 1.0, %v4059_v13 }
 0x4a5   :  { %4062 = vrcp.f32 %v2296_v7  ;;  %v2306_v49 = vand.u32 2147483647, %v2296_v7  ;;  %v2308_v37 = vand.u32 2147483648, %v2296_v7  ;;  %vm2302_vm9 = vweird.f32 %v2296_v7 }
 0x4a6   :  { %4064 = vrcp.f32 %v2315_v20  ;;  %v2274_v57 = vpop.f32.mrf.mxu2  ;;  %v2287_v16 = vpop.f32.mrf.mxu3  ;;  %v2327_v48 = vand.u32 2147483648, %v2315_v20  ;;  %v2325_v9 = vand.u32 2147483647, %v2315_v20  ;;  %vm2321_vm7 = vweird.f32 %v2315_v20 }
 0x4a7   :  { %v6815_v57 = vld [vmem:[#allocation71_spill] sm:$0xff]  ;;  %vm2307_vm0 = vcmp.eq.f32.partialorder %v2306_v49, 8.507059e+37 }
 0x4a8   :  { %vm2326_vm4 = vcmp.eq.f32.partialorder %v2325_v9, 8.507059e+37 }
 0x4a9   :  { %v4061_v6 = vpop.eup %4060 }
 0x4aa   :  { %v5964_v15 = vadd.f32 1.0, %v4061_v6 }
 0x4ab   :  { %v4063_v22 = vpop.eup %4062 }
 0x4ac   :  { %v4065_v54 = vpop.eup %4064  ;;  %v2298_v32 = vmul.f32 %v4063_v22, %v2296_v7  ;;  %4066 = vrcp.f32 %v5964_v15  ;;  %vm2303_vm5 = vweird.f32 %v4063_v22  ;;  %v2347_v9 = vand.u32 2147483648, %v5964_v15 }
 0x4ad   :  { %v2317_v19 = vmul.f32 %v4065_v54, %v2315_v20  ;;  %4068 = vtanh.f32 %v2291_v56  ;;  %vm2322_vm6 = vweird.f32 %v4065_v54  ;;  %vm2304_vm12 = vmor %vm2302_vm9, %vm2303_vm5  ;;  %v2309_v56 = vor.u32 1.1754944e-38, %v2308_v37  ;;  %v6816_v37 = vld [vmem:[#allocation107_spill] sm:$0xff] }
 0x4ae   :  { %v2377_v62 = vpop.f32.mrf.mxu0  ;;  %v2390_v11 = vpop.f32.mrf.mxu1  ;;  %v2299_v13 = vsub.f32 1.0, %v2298_v32  ;;  %vm2323_vm13 = vmor %vm2321_vm7, %vm2322_vm6  ;;  %vm2341_vm6 = vweird.f32 %v5964_v15 }
 0x4af   :  { %v2420_v33 = vadd.f32 %v2377_v62, %v6814_v27  ;;  %v2421_v16 = vadd.f32 %v2390_v11, %v6815_v57  ;;  %v2318_v10 = vsub.f32 1.0, %v2317_v19  ;;  %v2328_v11 = vor.u32 1.1754944e-38, %v2327_v48 }
 0x4b0   :  { %v2300_v44 = vmul.f32 %v4063_v22, %v2299_v13 }
 0x4b1   :  { %v3684_v6 = vmul.f32 -1.442695, %v2420_v33  ;;  %v3685_v18 = vmul.f32 -1.442695, %v2421_v16  ;;  %v2319_v31 = vmul.f32 %v4065_v54, %v2318_v10 }
 0x4b2   :  { %v4067_v30 = vpop.eup %4066  ;;  %v2301_v53 = vadd.f32 %v4063_v22, %v2300_v44 }
 0x4b3   :  { %4070 = vpow2.f32 %v3684_v6  ;;  %v2320_v32 = vadd.f32 %v4065_v54, %v2319_v31  ;;  %v2337_v19 = vmul.f32 %v4067_v30, %v5964_v15  ;;  %v4069_v62 = vpop.eup %4068  ;;  %vm2342_vm5 = vweird.f32 %v4067_v30 }
 0x4b4   :  { %4072 = vpow2.f32 %v3685_v18  ;;  %v2305_v13 = vsel %vm2304_vm12, %v4063_v22, %v2301_v53  ;;  %vm2343_vm7 = vmor %vm2341_vm6, %vm2342_vm5 }
 0x4b5   :  { %v2403_v27 = vpop.f32.mrf.mxu2  ;;  %v2416_v10 = vpop.f32.mrf.mxu3  ;;  %v2310_v33 = vsel %vm2307_vm0, %v2309_v56, %v2305_v13  ;;  %v2324_v57 = vsel %vm2323_vm13, %v4065_v54, %v2320_v32  ;;  %v2338_v20 = vsub.f32 1.0, %v2337_v19  ;;  %v2345_v54 = vand.u32 2147483647, %v5964_v15 }
 0x4b6   :  { %v2379_v16 = vpop.f32.mrf.mxu0  ;;  %v2392_v7 = vpop.f32.mrf.mxu1  ;;  %v2329_v44 = vsel %vm2326_vm4, %v2328_v11, %v2324_v57  ;;  %v2352_v6 = vmul.f32 %v4069_v62, %v2310_v33  ;;  %v2423_v31 = vadd.f32 %v2416_v10, %v6816_v37  ;;  %v6818_v57 = vld [vmem:[#allocation106_spill] sm:$0xff] }
 0x4b7   :  { %v2351_v43 = vmul.f32 %v2329_v44, %v5852_v61  ;;  %v2339_v18 = vmul.f32 %v4067_v30, %v2338_v20  ;;  %vm2346_vm9 = vcmp.eq.f32.partialorder %v2345_v54, 8.507059e+37  ;;  %v2422_v20 = vadd.f32 %v2403_v27, %v6818_v57 }
 0x4b8   :  { %v3686_v38 = vmul.f32 -1.442695, %v2423_v31 }
 0x4b9   :  { %v4071_v47 = vpop.eup %4070  ;;  %v2353_v53 = vadd.f32 %v2352_v6, %v2351_v43  ;;  %v2340_v22 = vadd.f32 %v4067_v30, %v2339_v18 }
 0x4ba   :  { %v4073_v48 = vpop.eup %4072  ;;  %v2427_v49 = vadd.f32 1.0, %v4071_v47  ;;  %4074 = vpow2.f32 %v3686_v38  ;;  %v2348_v38 = vor.u32 1.1754944e-38, %v2347_v9  ;;  %v6885_v47 = vld [vmem:[#allocation87_spill] sm:$0xff] }
 0x4bb   :  { %v5972_v56 = vadd.f32 1.0, %v4073_v48  ;;  %4076 = vtanh.f32 %v2353_v53  ;;  %v2344_v43 = vsel %vm2343_vm7, %v4067_v30, %v2340_v22  ;;  %v5981_v62 = vsel %vm1686_vm3, %v2353_v53, %v5852_v61 }
 0x4bc   :  { %4078 = vrcp.f32 %v2427_v49  ;;  %v2349_v33 = vsel %vm2346_vm9, %v2348_v38, %v2344_v43  ;;  %v2439_v31 = vand.u32 2147483648, %v2427_v49  ;;  %v2437_v53 = vand.u32 2147483647, %v2427_v49 }
 0x4bd   :  { %v2405_v32 = vpop.f32.mrf.mxu2  ;;  %v2418_v19 = vpop.f32.mrf.mxu3  ;;  %4080 = vrcp.f32 %v5972_v56  ;;  %v2458_v18 = vand.u32 2147483648, %v5972_v56  ;;  %v2456_v9 = vand.u32 2147483647, %v5972_v56  ;;  %vm2433_vm0 = vweird.f32 %v2427_v49 }
 0x4be   :  { %vm2452_vm4 = vweird.f32 %v5972_v56  ;;  %v2440_v32 = vor.u32 1.1754944e-38, %v2439_v31  ;;  %vm2438_vm7 = vcmp.eq.f32.partialorder %v2437_v53, 8.507059e+37  ;;  %v6845_v31 = vld [vmem:[#allocation31_spill] sm:$0xff]  ;;  %v6849_v53 = vld [vmem:[#allocation33_spill] sm:$0xff] }
 0x4bf   :  { %v2459_v38 = vor.u32 1.1754944e-38, %v2458_v18  ;;  %vm2457_vm9 = vcmp.eq.f32.partialorder %v2456_v9, 8.507059e+37  ;;  %v6847_v18 = vld [vmem:[#allocation64_spill] sm:$0xff] }
 0x4c0   :  { %v4075_v11 = vpop.eup %4074  ;;  %v6851_v9 = vld [vmem:[#allocation68_spill] sm:$0xff] }
 0x4c1   :  { %v4077_v13 = vpop.eup %4076  ;;  %v5983_v10 = vadd.f32 1.0, %v4075_v11 }
 0x4c2   :  { %v4079_v15 = vpop.eup %4078  ;;  %v5986_v16 = vmul.f32 %v4077_v13, %v2349_v33 }
 0x4c3   :  { %v4081_v7 = vpop.eup %4080  ;;  %v2429_v44 = vmul.f32 %v4079_v15, %v2427_v49  ;;  %4082 = vrcp.f32 %v5983_v10  ;;  %vm2434_vm12 = vweird.f32 %v4079_v15 }
 0x4c4   :  { %v2448_v30 = vmul.f32 %v4081_v7, %v5972_v56  ;;  %v5994_v6 = vsel %vm1686_vm3, %v5986_v16, %v5867_v55  ;;  %4084 = vtanh.f32 %v2422_v20  ;;  %vm2453_vm13 = vweird.f32 %v4081_v7  ;;  %vm2435_vm5 = vmor %vm2433_vm0, %vm2434_vm12 }
 0x4c5   :  { %v2430_v61 = vsub.f32 1.0, %v2429_v44  ;;  %v2498_v27 = vpack.c.bf16 %v5994_v6, %v5994_v6  ;;  %vm2454_vm6 = vmor %vm2452_vm4, %vm2453_vm13  ;;  %vm2472_vm13 = vweird.f32 %v5983_v10 }
 0x4c6   :  { %v2449_v37 = vsub.f32 1.0, %v2448_v30  ;;  %v6842_v30 = vld [vmem:[#allocation28_spill] sm:$0xff] }
 0x4c7   :  { %v2431_v48 = vmul.f32 %v4079_v15, %v2430_v61  ;;  %2507 = vmatmul.bf16.vlgmr.msra.gmra.mxu0 %v2498_v27  ;;  %2520 = vmatmul.bf16.vlgmr.msra.gmra.mxu1 %v2498_v27  ;;  %v6843_v61 = vld [vmem:[#allocation59_spill] sm:$0xff] }
 0x4c8   :  { %v2450_v22 = vmul.f32 %v4081_v7, %v2449_v37  ;;  %2533 = vmatmul.bf16.vlgmr.msrb.gmra.mxu2 %v2498_v27  ;;  %2546 = vmatmul.bf16.vlgmr.msrb.gmra.mxu3 %v2498_v27  ;;  %v6844_v37 = vld [vmem:[#allocation62_spill] sm:$0xff] }
 0x4c9   :  { %v4083_v54 = vpop.eup %4082  ;;  %v2432_v55 = vadd.f32 %v4079_v15, %v2431_v48  ;;  %2774 = vmatpush.bf16.msra.mxu1 %v4326_v46  ;;  %2761 = vmatpush.bf16.msra.mxu0 %v4311_v42  ;;  %v6846_v27 = vld [vmem:[#allocation30_spill] sm:$0xff]  ;;  %v6848_v48 = vld [vmem:[#allocation65_spill] sm:$0xff] }
 0x4ca   :  { %v2451_v19 = vadd.f32 %v4081_v7, %v2450_v22  ;;  %v2468_v43 = vmul.f32 %v4083_v54, %v5983_v10  ;;  %2787 = vmatpush.bf16.msrb.mxu2 %v4584_v12  ;;  %2800 = vmatpush.bf16.msrb.mxu3 %v4537_v51  ;;  %v4085_v49 = vpop.eup %4084  ;;  %vm2473_vm12 = vweird.f32 %v4083_v54  ;;  %v2478_v12 = vand.u32 2147483648, %v5983_v10  ;;  %v6850_v22 = vld [vmem:[#allocation32_spill] sm:$0xff] }
 0x4cb   :  { %v2436_v11 = vsel %vm2435_vm5, %v4079_v15, %v2432_v55  ;;  %vm2474_vm0 = vmor %vm2472_vm13, %vm2473_vm12  ;;  %v6881_v15 = vld [vmem:[#allocation35_spill] sm:$0xff] }
 0x4cc   :  { %v2441_v56 = vsel %vm2438_vm7, %v2440_v32, %v2436_v11  ;;  %v2455_v13 = vsel %vm2454_vm6, %v4081_v7, %v2451_v19  ;;  %v2469_v33 = vsub.f32 1.0, %v2468_v43  ;;  %v6841_v7 = vld [vmem:[#allocation29_spill] sm:$0xff]  ;;  %v6853_v19 = vld [vmem:[#allocation72_spill] sm:$0xff] }
 0x4cd   :  { %v2460_v57 = vsel %vm2457_vm9, %v2459_v38, %v2455_v13  ;;  %v2483_v20 = vmul.f32 %v4085_v49, %v2441_v56  ;;  %2775 = vmatpush.bf16.msra.mxu1 %v6576_v34  ;;  %2762 = vmatpush.bf16.msra.mxu0 %v4342_v52  ;;  %v2476_v52 = vand.u32 2147483647, %v5983_v10  ;;  %v6840_v10 = vld [vmem:[#allocation57_spill] sm:$0xff] }
 0x4ce   :  { %v2482_v46 = vmul.f32 %v2460_v57, %v5888_v4  ;;  %v2470_v44 = vmul.f32 %v4083_v54, %v2469_v33  ;;  %2788 = vmatpush.bf16.msrb.mxu2 %v4647_v41  ;;  %2801 = vmatpush.bf16.msrb.mxu3 %v4564_v0  ;;  %v2479_v41 = vor.u32 1.1754944e-38, %v2478_v12  ;;  %v6854_v38 = vld [vmem:[#allocation73_spill] sm:$0xff] }
 0x4cf   :  { %vm2477_vm4 = vcmp.eq.f32.partialorder %v2476_v52, 8.507059e+37  ;;  %v6855_v57 = vld [vmem:[#allocation97_spill] sm:$0xff] }
 0x4d0   :  { %v2484_v42 = vadd.f32 %v2483_v20, %v2482_v46  ;;  %v2471_v51 = vadd.f32 %v4083_v54, %v2470_v44 }
 0x4d1   :  { %2776 = vmatpush.bf16.msra.mxu1 %v6578_v26  ;;  %2763 = vmatpush.bf16.msra.mxu0 %v6577_v23 }
 0x4d2   :  { %4086 = vtanh.f32 %v2484_v42  ;;  %v6018_v34 = vsel %vm1548_vm2, %v2484_v42, %v5888_v4  ;;  %2789 = vmatpush.bf16.msrb.mxu2 %v4700_v17  ;;  %2802 = vmatpush.bf16.msrb.mxu3 %v4640_v39  ;;  %v2475_v0 = vsel %vm2474_vm0, %v4083_v54, %v2471_v51  ;;  %v6820_v17 = vld [vmem:[#allocation34_spill] sm:$0xff]  ;;  %v6852_v54 = vld [vmem:[#allocation69_spill] sm:$0xff] }
 0x4d3   :  { %v2480_v26 = vsel %vm2477_vm4, %v2479_v41, %v2475_v0 }
 0x4d5   :  { %2777 = vmatpush.bf16.msra.mxu1 %v6581_v58  ;;  %2764 = vmatpush.bf16.msra.mxu0 %v6580_v8  ;;  %v6829_v8 = vld [vmem:[#allocation23_spill] sm:$0xff]  ;;  %v6830_v58 = vld [vmem:[#allocation22_spill] sm:$0xff] }
 0x4d6   :  { %2790 = vmatpush.bf16.msrb.mxu2 %v4729_v36  ;;  %2803 = vmatpush.bf16.msrb.mxu3 %v4678_v60  ;;  %v6821_v36 = vld [vmem:[#allocation36_spill] sm:$0xff] }
 0x4d8   :  { %v4087_v23 = vpop.eup %4086 }
 0x4d9   :  { %v6028_v4 = vmul.f32 %v4087_v23, %v2480_v26  ;;  %2778 = vmatpush.bf16.msra.mxu1 %v6583_v5  ;;  %2765 = vmatpush.bf16.msra.mxu0 %v6582_v14  ;;  %v6831_v14 = vld [vmem:[#allocation46_spill] sm:$0xff]  ;;  %v6832_v5 = vld [vmem:[#allocation47_spill] sm:$0xff] }
 0x4da   :  { %2791 = vmatpush.bf16.msrb.mxu2 %v4753_v50  ;;  %2804 = vmatpush.bf16.msrb.mxu3 %v4743_v45  ;;  %v6822_v45 = vld [vmem:[#allocation18_spill] sm:$0xff]  ;;  %v6823_v50 = vld [vmem:[#allocation37_spill] sm:$0xff] }
 0x4db   :  { %v6036_v39 = vsel %vm1548_vm2, %v6028_v4, %v5906_v29  ;;  %v6836_v29 = vld [vmem:[#allocation53_spill] sm:$0xff] }
 0x4dc   :  { %v2629_v60 = vpack.c.bf16 %v6036_v39, %v6036_v39 }
 0x4dd   :  { %2779 = vmatpush.bf16.msra.mxu1 %v6585_v59  ;;  %2766 = vmatpush.bf16.msra.mxu0 %v6584_v1  ;;  %v6833_v1 = vld [vmem:[#allocation25_spill] sm:$0xff]  ;;  %v6834_v59 = vld [vmem:[#allocation24_spill] sm:$0xff] }
 0x4de   :  { %2638 = vmatmul.bf16.vlgmr.msrb.gmra.mxu0 %v2629_v60  ;;  %2651 = vmatmul.bf16.vlgmr.msrb.gmra.mxu1 %v2629_v60 }
 0x4df   :  { %2664 = vmatmul.bf16.vlgmr.msra.gmra.mxu2 %v2629_v60  ;;  %2677 = vmatmul.bf16.vlgmr.msra.gmra.mxu3 %v2629_v60  ;;  %v6856_v60 = vld [vmem:[#allocation96_spill] sm:$0xff] }
 0x4e0   :  { %2792 = vmatpush.bf16.msrb.mxu2 %v4768_v63  ;;  %2805 = vmatpush.bf16.msrb.mxu3 %v4774_v2  ;;  %v6825_v63 = vld [vmem:[#allocation21_spill] sm:$0xff]  ;;  %v6826_v2 = vld [vmem:[#allocation20_spill] sm:$0xff] }
 0x4e1   :  { %2780 = vmatpush.bf16.msra.mxu1 %v4453_v25  ;;  %2767 = vmatpush.bf16.msra.mxu0 %v6586_v35  ;;  %v6824_v25 = vld [vmem:[#allocation39_spill] sm:$0xff] }
 0x4e2   :  { %v6835_v35 = vld [vmem:[#allocation51_spill] sm:$0xff] }
 0x4e4   :  { %2793 = vmatpush.bf16.msrb.mxu2 %v4788_v21  ;;  %2806 = vmatpush.bf16.msrb.mxu3 %v4794_v28  ;;  %v6827_v21 = vld [vmem:[#allocation41_spill] sm:$0xff]  ;;  %v6828_v28 = vld [vmem:[#allocation44_spill] sm:$0xff] }
 0x4e5   :  { %2781 = vmatpush.bf16.msra.mxu1 %v6771_v24  ;;  %2768 = vmatpush.bf16.msra.mxu0 %v6770_v40  ;;  %v6837_v40 = vld [vmem:[#allocation27_spill] sm:$0xff]  ;;  %v6838_v24 = vld [vmem:[#allocation26_spill] sm:$0xff] }
 0x4e8   :  { %2794 = vmatpush.bf16.msrb.mxu2 %v6820_v17  ;;  %2807 = vmatpush.bf16.msrb.mxu3 %v6821_v36 }
 0x4e9   :  { %2903 = vmatpush.bf16.msrb.mxu1 %v6775_v3  ;;  %2890 = vmatpush.bf16.msrb.mxu0 %v6822_v45  ;;  %v6839_v3 = vld [vmem:[#allocation56_spill] sm:$0xff] }
 0x4ec   :  { %2916 = vmatpush.bf16.msra.mxu2 %v6823_v50  ;;  %2929 = vmatpush.bf16.msra.mxu3 %v6824_v25  ;;  %v6857_v25 = vld [vmem:[#allocation48_spill] sm:$0xff] }
 0x4ed   :  { %2904 = vmatpush.bf16.msrb.mxu1 %v6825_v63  ;;  %2891 = vmatpush.bf16.msrb.mxu0 %v6826_v2  ;;  %v6858_v63 = vld [vmem:[#allocation61_spill] sm:$0xff] }
 0x4ee   :  { %v316_v2 = vadd.f32 %v6858_v63, %v6857_v25 }
 0x4f0   :  { %2917 = vmatpush.bf16.msra.mxu2 %v6827_v21  ;;  %2930 = vmatpush.bf16.msra.mxu3 %v6828_v28  ;;  %v6859_v21 = vld [vmem:[#allocation49_spill] sm:$0xff]  ;;  %v6860_v28 = vld [vmem:[#allocation63_spill] sm:$0xff] }
 0x4f1   :  { %2905 = vmatpush.bf16.msrb.mxu1 %v6829_v8  ;;  %2892 = vmatpush.bf16.msrb.mxu0 %v6830_v58  ;;  %v345_v8 = vadd.f32 %v6860_v28, %v6859_v21 }
 0x4f4   :  { %2918 = vmatpush.bf16.msra.mxu2 %v6831_v14  ;;  %2931 = vmatpush.bf16.msra.mxu3 %v6832_v5 }
 0x4f5   :  { %2906 = vmatpush.bf16.msrb.mxu1 %v6833_v1  ;;  %2893 = vmatpush.bf16.msrb.mxu0 %v6834_v59 }
 0x4f8   :  { %2919 = vmatpush.bf16.msra.mxu2 %v6835_v35  ;;  %2932 = vmatpush.bf16.msra.mxu3 %v6836_v29 }
 0x4f9   :  { %2907 = vmatpush.bf16.msrb.mxu1 %v6837_v40  ;;  %2894 = vmatpush.bf16.msrb.mxu0 %v6838_v24 }
 0x4fc   :  { %2920 = vmatpush.bf16.msra.mxu2 %v6839_v3  ;;  %2933 = vmatpush.bf16.msra.mxu3 %v6840_v10 }
 0x4fd   :  { %2908 = vmatpush.bf16.msrb.mxu1 %v6841_v7  ;;  %2895 = vmatpush.bf16.msrb.mxu0 %v6842_v30 }
 0x500   :  { %2921 = vmatpush.bf16.msra.mxu2 %v6843_v61  ;;  %2934 = vmatpush.bf16.msra.mxu3 %v6844_v37 }
 0x501   :  { %2909 = vmatpush.bf16.msrb.mxu1 %v6845_v31  ;;  %2896 = vmatpush.bf16.msrb.mxu0 %v6846_v27 }
 0x504   :  { %2922 = vmatpush.bf16.msra.mxu2 %v6847_v18  ;;  %2935 = vmatpush.bf16.msra.mxu3 %v6848_v48 }
 0x505   :  { %2910 = vmatpush.bf16.msrb.mxu1 %v6849_v53  ;;  %2897 = vmatpush.bf16.msrb.mxu0 %v6850_v22 }
 0x508   :  { %2923 = vmatpush.bf16.msra.mxu2 %v6851_v9  ;;  %2936 = vmatpush.bf16.msra.mxu3 %v6852_v54  ;;  %v6861_v54 = vld [vmem:[#allocation101_spill] sm:$0xff] }
 0x544   :  { %v2508_v55 = vpop.f32.mrf.mxu0  ;;  %v2521_v32 = vpop.f32.mrf.mxu1 }
 0x545   :  { %v2551_v43 = vadd.f32 %v2508_v55, %v6853_v19  ;;  %v2552_v11 = vadd.f32 %v2521_v32, %v6854_v38  ;;  %v6862_v55 = vld [vmem:[#allocation105_spill] sm:$0xff] }
 0x546   :  { %v403_v32 = vadd.f32 %v6862_v55, %v6861_v54 }
 0x547   :  { %v3687_v49 = vmul.f32 -1.442695, %v2551_v43  ;;  %v3688_v56 = vmul.f32 -1.442695, %v2552_v11 }
 0x549   :  { %4088 = vpow2.f32 %v3687_v49 }
 0x54a   :  { %4090 = vpow2.f32 %v3688_v56 }
 0x54b   :  { %v2534_v13 = vpop.f32.mrf.mxu2  ;;  %v2547_v33 = vpop.f32.mrf.mxu3 }
 0x54c   :  { %v2554_v20 = vadd.f32 %v2547_v33, %v6855_v57  ;;  %v2510_v46 = vpop.f32.mrf.mxu0  ;;  %v2523_v44 = vpop.f32.mrf.mxu1  ;;  %v2553_v17 = vadd.f32 %v2534_v13, %v6856_v60 }
 0x54e   :  { %v3689_v42 = vmul.f32 -1.442695, %v2554_v20 }
 0x54f   :  { %v4089_v51 = vpop.eup %4088 }
 0x550   :  { %v4091_v12 = vpop.eup %4090  ;;  %v2558_v52 = vadd.f32 1.0, %v4089_v51  ;;  %4092 = vpow2.f32 %v3689_v42 }
 0x551   :  { %v2577_v0 = vadd.f32 1.0, %v4091_v12 }
 0x552   :  { %4094 = vrcp.f32 %v2558_v52  ;;  %v2568_v3 = vand.u32 2147483647, %v2558_v52  ;;  %v2570_v10 = vand.u32 2147483648, %v2558_v52  ;;  %vm2564_vm9 = vweird.f32 %v2558_v52 }
 0x553   :  { %4096 = vrcp.f32 %v2577_v0  ;;  %v2536_v41 = vpop.f32.mrf.mxu2  ;;  %v2549_v23 = vpop.f32.mrf.mxu3  ;;  %v2589_v24 = vand.u32 2147483648, %v2577_v0  ;;  %v2587_v31 = vand.u32 2147483647, %v2577_v0  ;;  %vm2583_vm7 = vweird.f32 %v2577_v0 }
 0x554   :  { %v2571_v48 = vor.u32 1.1754944e-38, %v2570_v10  ;;  %vm2569_vm0 = vcmp.eq.f32.partialorder %v2568_v3, 8.507059e+37 }
 0x555   :  { %v2590_v19 = vor.u32 1.1754944e-38, %v2589_v24  ;;  %vm2588_vm4 = vcmp.eq.f32.partialorder %v2587_v31, 8.507059e+37  ;;  %v3854_v31 = vld [vmem:[%s6316_s6 + $0x38] sm:$0xff] }
 0x556   :  { %v4093_v26 = vpop.eup %4092 }
 0x557   :  { %v6090_v36 = vadd.f32 1.0, %v4093_v26 }
 0x558   :  { %v4095_v45 = vpop.eup %4094 }
 0x559   :  { %v4097_v50 = vpop.eup %4096  ;;  %v2560_v58 = vmul.f32 %v4095_v45, %v2558_v52  ;;  %4098 = vrcp.f32 %v6090_v36  ;;  %vm2565_vm5 = vweird.f32 %v4095_v45 }
 0x55a   :  { %v2579_v14 = vmul.f32 %v4097_v50, %v2577_v0  ;;  %4100 = vtanh.f32 %v2553_v17  ;;  %vm2584_vm6 = vweird.f32 %v4097_v50  ;;  %vm2566_vm12 = vmor %vm2564_vm9, %vm2565_vm5  ;;  %v2609_v17 = vand.u32 2147483648, %v6090_v36 }
 0x55b   :  { %v2639_v5 = vpop.f32.mrf.mxu0  ;;  %v2652_v1 = vpop.f32.mrf.mxu1  ;;  %v2561_v59 = vsub.f32 1.0, %v2560_v58  ;;  %vm2585_vm13 = vmor %vm2583_vm7, %vm2584_vm6  ;;  %vm2603_vm6 = vweird.f32 %v6090_v36  ;;  %v6864_v58 = vld [vmem:[#allocation100_spill] sm:$0xff] }
 0x55c   :  { %v2682_v35 = vadd.f32 %v2639_v5, %v316_v2  ;;  %v2683_v29 = vadd.f32 %v2652_v1, %v345_v8  ;;  %v2580_v40 = vsub.f32 1.0, %v2579_v14  ;;  %v2610_v28 = vor.u32 1.1754944e-38, %v2609_v17  ;;  %v6865_v14 = vld [vmem:[#allocation104_spill] sm:$0xff]  ;;  %v3850_v17 = vld [vmem:[%s6316_s6 + $0x18] sm:$0xff] }
 0x55d   :  { %v2562_v7 = vmul.f32 %v4095_v45, %v2561_v59  ;;  %v374_v5 = vadd.f32 %v6865_v14, %v6864_v58  ;;  %v3847_v58 = vld [vmem:[%s6316_s6] sm:$0xff]  ;;  %v6868_v14 = vld [vmem:[#allocation8_spill] sm:$0xff] }
 0x55e   :  { %v3690_v30 = vmul.f32 -1.442695, %v2682_v35  ;;  %v3691_v61 = vmul.f32 -1.442695, %v2683_v29  ;;  %v2581_v37 = vmul.f32 %v4097_v50, %v2580_v40 }
 0x55f   :  { %v4099_v27 = vpop.eup %4098  ;;  %v2563_v18 = vadd.f32 %v4095_v45, %v2562_v7 }
 0x560   :  { %4102 = vpow2.f32 %v3690_v30  ;;  %v2582_v53 = vadd.f32 %v4097_v50, %v2581_v37  ;;  %v2599_v22 = vmul.f32 %v4099_v27, %v6090_v36  ;;  %v4101_v9 = vpop.eup %4100  ;;  %vm2604_vm5 = vweird.f32 %v4099_v27 }
 0x561   :  { %4104 = vpow2.f32 %v3691_v61  ;;  %v2567_v43 = vsel %vm2566_vm12, %v4095_v45, %v2563_v18  ;;  %v2607_v45 = vand.u32 2147483647, %v6090_v36  ;;  %vm2605_vm7 = vmor %vm2603_vm6, %vm2604_vm5 }
 0x562   :  { %v2665_v38 = vpop.f32.mrf.mxu2  ;;  %v2678_v11 = vpop.f32.mrf.mxu3  ;;  %v2572_v49 = vsel %vm2569_vm0, %v2571_v48, %v2567_v43  ;;  %v2586_v56 = vsel %vm2585_vm13, %v4097_v50, %v2582_v53  ;;  %v2600_v13 = vsub.f32 1.0, %v2599_v22 }
 0x563   :  { %v2641_v33 = vpop.f32.mrf.mxu0  ;;  %v2654_v57 = vpop.f32.mrf.mxu1  ;;  %v2591_v20 = vsel %vm2588_vm4, %v2590_v19, %v2586_v56  ;;  %v2614_v46 = vmul.f32 %v4101_v9, %v2572_v49  ;;  %v2685_v44 = vadd.f32 %v2678_v11, %v403_v32  ;;  %vm2608_vm9 = vcmp.eq.f32.partialorder %v2607_v45, 8.507059e+37  ;;  %v3853_v19 = vld [vmem:[%s6316_s6 + $0x30] sm:$0xff] }
 0x564   :  { %v2613_v42 = vmul.f32 %v2591_v20, %v5981_v62  ;;  %v2601_v51 = vmul.f32 %v4099_v27, %v2600_v13  ;;  %v2684_v29 = vadd.f32 %v2665_v38, %v374_v5 }
 0x565   :  { %v3692_v52 = vmul.f32 -1.442695, %v2685_v44  ;;  %v3852_v44 = vld [vmem:[%s6316_s6 + $0x28] sm:$0xff] }
 0x566   :  { %v4103_v12 = vpop.eup %4102  ;;  %v2615_v41 = vadd.f32 %v2614_v46, %v2613_v42  ;;  %v2602_v26 = vadd.f32 %v4099_v27, %v2601_v51 }
 0x567   :  { %v4105_v0 = vpop.eup %4104  ;;  %v6101_v23 = vadd.f32 1.0, %v4103_v12  ;;  %4106 = vpow2.f32 %v3692_v52  ;;  %v3851_v52 = vld [vmem:[%s6316_s6 + $0x20] sm:$0xff] }
 0x568   :  { %v6103_v60 = vadd.f32 1.0, %v4105_v0  ;;  %4108 = vtanh.f32 %v2615_v41  ;;  %v2606_v63 = vsel %vm2605_vm7, %v4099_v27, %v2602_v26  ;;  %v6113_v21 = vsel %vm1410_vm14, %v2615_v41, %v5981_v62 }
 0x569   :  { %4110 = vrcp.f32 %v6101_v23  ;;  %v2611_v59 = vsel %vm2608_vm9, %v2610_v28, %v2606_v63  ;;  %v2701_v61 = vand.u32 2147483648, %v6101_v23  ;;  %v2699_v48 = vand.u32 2147483647, %v6101_v23  ;;  %v3849_v28 = vld [vmem:[%s6316_s6 + $0x10] sm:$0xff] }
 0x56a   :  { %v2667_v50 = vpop.f32.mrf.mxu2  ;;  %v2680_v25 = vpop.f32.mrf.mxu3  ;;  %4112 = vrcp.f32 %v6103_v60  ;;  %v2720_v27 = vand.u32 2147483648, %v6103_v60  ;;  %v2718_v22 = vand.u32 2147483647, %v6103_v60  ;;  %vm2695_vm0 = vweird.f32 %v6101_v23 }
 0x56b   :  { %vm2714_vm4 = vweird.f32 %v6103_v60  ;;  %v2702_v54 = vor.u32 1.1754944e-38, %v2701_v61  ;;  %vm2700_vm7 = vcmp.eq.f32.partialorder %v2699_v48, 8.507059e+37  ;;  %v6882_v61 = vld [vmem:[#allocation76_spill] sm:$0xff] }
 0x56c   :  { %v2721_v43 = vor.u32 1.1754944e-38, %v2720_v27  ;;  %vm2719_vm9 = vcmp.eq.f32.partialorder %v2718_v22, 8.507059e+37  ;;  %v6884_v27 = vld [vmem:[#allocation77_spill] sm:$0xff] }
 0x56d   :  { %v4107_v8 = vpop.eup %4106 }
 0x56e   :  { %v4109_v36 = vpop.eup %4108  ;;  %v6117_v1 = vadd.f32 1.0, %v4107_v8  ;;  %v3848_v8 = vld [vmem:[%s6316_s6 + $0x8] sm:$0xff] }
 0x56f   :  { %v4111_v35 = vpop.eup %4110  ;;  %v6119_v40 = vmul.f32 %v4109_v36, %v2611_v59  ;;  %v6872_v59 = vld [vmem:[#allocation12_spill] sm:$0xff]  ;;  %v6890_v36 = vld [vmem:[#allocation55_spill] sm:$0xff] }
 0x570   :  { %v4113_v24 = vpop.eup %4112  ;;  %v2691_v3 = vmul.f32 %v4111_v35, %v6101_v23  ;;  %4114 = vrcp.f32 %v6117_v1  ;;  %vm2696_vm12 = vweird.f32 %v4111_v35  ;;  %v2740_v12 = vand.u32 2147483648, %v6117_v1 }
 0x571   :  { %v2710_v62 = vmul.f32 %v4113_v24, %v6103_v60  ;;  %v2619_v7 = vsel %vm1410_vm14, %v6119_v40, %v5994_v6  ;;  %4116 = vtanh.f32 %v2684_v29  ;;  %vm2715_vm13 = vweird.f32 %v4113_v24  ;;  %vm2697_vm5 = vmor %vm2695_vm0, %vm2696_vm12 }
 0x572   :  { %v2692_v10 = vsub.f32 1.0, %v2691_v3  ;;  %v2760_v37 = vpack.c.bf16 %v2619_v7, %v2619_v7  ;;  %vm2716_vm6 = vmor %vm2714_vm4, %vm2715_vm13  ;;  %vm2734_vm13 = vweird.f32 %v6117_v1  ;;  %v2738_v23 = vand.u32 2147483647, %v6117_v1 }
 0x573   :  { %v2711_v30 = vsub.f32 1.0, %v2710_v62  ;;  %v2741_v60 = vor.u32 1.1754944e-38, %v2740_v12  ;;  %v6877_v62 = vld [vmem:[#allocation82_spill] sm:$0xff] }
 0x574   :  { %v2693_v18 = vmul.f32 %v4111_v35, %v2692_v10  ;;  %2769 = vmatmul.bf16.vlgmr.msra.gmra.mxu0 %v2760_v37  ;;  %2782 = vmatmul.bf16.vlgmr.msra.gmra.mxu1 %v2760_v37  ;;  %vm2739_vm4 = vcmp.eq.f32.partialorder %v2738_v23, 8.507059e+37  ;;  %v3882_v10 = vpack.c.bf16 %v5986_v16, %v6877_v62  ;;  %v6887_v12 = vld [vmem:[#allocation86_spill] sm:$0xff] }
 0x575   :  { %v2712_v53 = vmul.f32 %v4113_v24, %v2711_v30  ;;  %2795 = vmatmul.bf16.vlgmr.msrb.gmra.mxu2 %v2760_v37  ;;  %2808 = vmatmul.bf16.vlgmr.msrb.gmra.mxu3 %v2760_v37  ;;  %v215_v37 = vadd.f32 %v6882_v61, %v6881_v15 }
 0x576   :  { %v4115_v6 = vpop.eup %4114  ;;  %v2694_v9 = vadd.f32 %v4111_v35, %v2693_v18  ;;  %3192 = vmatpush.bf16.msra.mxu1 %v3854_v31  ;;  %v6883_v31 = vld [vmem:[#allocation38_spill] sm:$0xff] }
 0x577   :  { %v2713_v55 = vadd.f32 %v4113_v24, %v2712_v53  ;;  %v2730_v32 = vmul.f32 %v4115_v6, %v6117_v1  ;;  %v4117_v11 = vpop.eup %4116  ;;  %vm2735_vm12 = vweird.f32 %v4115_v6  ;;  %v244_v18 = vadd.f32 %v6884_v27, %v6883_v31  ;;  %v3857_v31 = vld [vmem:[%s6317_s7 + $0x10] sm:$0xff] }
 0x578   :  { %v2698_v38 = vsel %vm2697_vm5, %v4111_v35, %v2694_v9  ;;  %vm2736_vm0 = vmor %vm2734_vm13, %vm2735_vm12  ;;  %v6873_v35 = vld [vmem:[#allocation43_spill] sm:$0xff] }
 0x579   :  { %v2703_v49 = vsel %vm2700_vm7, %v2702_v54, %v2698_v38  ;;  %v2717_v56 = vsel %vm2716_vm6, %v4113_v24, %v2713_v55  ;;  %v2731_v13 = vsub.f32 1.0, %v2730_v32  ;;  %vm6181_vm5 = vmpackc.low %vm1272_vm1, %vm840_vm15  ;;  %v3879_v29 = vpack.c.bf16 %v6873_v35, %v6872_v59  ;;  %v6886_v54 = vld [vmem:[#allocation99_spill] sm:$0xff]  ;;  %v3862_v32 = vld [vmem:[%s6317_s7 + $0x38] sm:$0xff] }
 0x57a   :  { %v2722_v33 = vsel %vm2719_vm9, %v2721_v43, %v2717_v56  ;;  %v2745_v57 = vmul.f32 %v4117_v11, %v2703_v49  ;;  %3193 = vmatpush.bf16.msra.mxu1 %v3853_v19  ;;  %vm6193_vm6 = vmpackc.low %vm1824_vm8, %vm1548_vm2  ;;  %v302_v55 = vadd.f32 %v6886_v54, %v6885_v47  ;;  %3115 = vmatpush.bf16.msra.mxu0 %v3862_v32 }
 0x57b   :  { %v2744_v20 = vmul.f32 %v2722_v33, %v6018_v34  ;;  %v2732_v46 = vmul.f32 %v4115_v6, %v2731_v13  ;;  %vm6205_vm15 = vmpackc.low %vm1686_vm3, %vm1962_vm10  ;;  %v3861_v13 = vld [vmem:[%s6317_s7 + $0x30] sm:$0xff] }
 0x57d   :  { %v2746_v42 = vadd.f32 %v2745_v57, %v2744_v20  ;;  %v2733_v51 = vadd.f32 %v4115_v6, %v2732_v46 }
 0x57e   :  { %3194 = vmatpush.bf16.msra.mxu1 %v3852_v44  ;;  %3116 = vmatpush.bf16.msra.mxu0 %v3861_v13  ;;  %v3860_v44 = vld [vmem:[%s6317_s7 + $0x28] sm:$0xff] }
 0x57f   :  { %4118 = vtanh.f32 %v2746_v42  ;;  %v6153_v41 = vsel %vm1272_vm1, %v2746_v42, %v6018_v34  ;;  %v2737_v26 = vsel %vm2736_vm0, %v4115_v6, %v2733_v51  ;;  %v6891_v13 = vld [vmem:[#allocation103_spill] sm:$0xff] }
 0x580   :  { %v2742_v50 = vsel %vm2739_vm4, %v2741_v60, %v2737_v26  ;;  %v3859_v26 = vld [vmem:[%s6317_s7 + $0x20] sm:$0xff] }
 0x582   :  { %3195 = vmatpush.bf16.msra.mxu1 %v3851_v52  ;;  %3117 = vmatpush.bf16.msra.mxu0 %v3860_v44  ;;  %v6888_v52 = vld [vmem:[#allocation98_spill] sm:$0xff] }
 0x583   :  { %v273_v0 = vadd.f32 %v6888_v52, %v6887_v12 }
 0x585   :  { %v4119_v45 = vpop.eup %4118 }
 0x586   :  { %v6160_v25 = vmul.f32 %v4119_v45, %v2742_v50  ;;  %3196 = vmatpush.bf16.msra.mxu1 %v3850_v17  ;;  %3118 = vmatpush.bf16.msra.mxu0 %v3859_v26 }
 0x588   :  { %v2750_v34 = vsel %vm1272_vm1, %v6160_v25, %v6036_v39  ;;  %v6867_v39 = vld [vmem:[#allocation118_spill] sm:$0xff] }
 0x589   :  { %v2889_v63 = vpack.c.bf16 %v2750_v34, %v2750_v34  ;;  %v3876_v5 = vpack.c.bf16 %v6868_v14, %v6867_v39  ;;  %v6889_v14 = vld [vmem:[#allocation54_spill] sm:$0xff] }
 0x58a   :  { %3197 = vmatpush.bf16.msra.mxu1 %v3849_v28 }
 0x58b   :  { %2898 = vmatmul.bf16.vlgmr.msrb.gmra.mxu0 %v2889_v63  ;;  %2911 = vmatmul.bf16.vlgmr.msrb.gmra.mxu1 %v2889_v63 }
 0x58c   :  { %2924 = vmatmul.bf16.vlgmr.msra.gmra.mxu2 %v2889_v63  ;;  %2937 = vmatmul.bf16.vlgmr.msra.gmra.mxu3 %v2889_v63 }
 0x58e   :  { %3198 = vmatpush.bf16.msra.mxu1 %v3848_v8 }
 0x592   :  { %3199 = vmatpush.bf16.msra.mxu1 %v3847_v58  ;;  %v3858_v58 = vld [vmem:[%s6317_s7 + $0x18] sm:$0xff] }
 0x593   :  { %3119 = vmatpush.bf16.msra.mxu0 %v3858_v58 }
 0x597   :  { %3120 = vmatpush.bf16.msra.mxu0 %v3857_v31 }
 0x59b   :  { %3877 = vmatmul.msk.bf16.vlgmr.msra.gmra.mxu1 %vm6181_vm5, %v3876_v5 }
 0x5ab   :  { %3880 = vmatmul.msk.bf16.gmra.mxu1 %vm6193_vm6, %v3879_v29 }
 0x5bb   :  { %3883 = vmatmul.msk.bf16.gmra.mxu1 %vm6205_vm15, %v3882_v10 }
 0x5f1   :  { %v2770_v48 = vpop.f32.mrf.mxu0  ;;  %v2783_v53 = vpop.f32.mrf.mxu1 }
 0x5f2   :  { %v2813_v16 = vadd.f32 %v2770_v48, %v215_v37  ;;  %v2814_v22 = vadd.f32 %v2783_v53, %v244_v18 }
 0x5f4   :  { %v3693_v6 = vmul.f32 -1.442695, %v2813_v16  ;;  %v3694_v9 = vmul.f32 -1.442695, %v2814_v22  ;;  %v3856_v22 = vld [vmem:[%s6317_s7 + $0x8] sm:$0xff] }
 0x5f5   :  { %3121 = vmatpush.bf16.msra.mxu0 %v3856_v22 }
 0x5f6   :  { %4120 = vpow2.f32 %v3693_v6 }
 0x5f7   :  { %4122 = vpow2.f32 %v3694_v9 }
 0x5f8   :  { %v2796_v19 = vpop.f32.mrf.mxu2  ;;  %v2809_v43 = vpop.f32.mrf.mxu3 }
 0x5f9   :  { %v2816_v38 = vadd.f32 %v2809_v43, %v302_v55  ;;  %v2772_v11 = vpop.f32.mrf.mxu0  ;;  %v2785_v49 = vpop.f32.mrf.mxu1  ;;  %v2815_v60 = vadd.f32 %v2796_v19, %v273_v0 }
 0x5fb   :  { %v3695_v56 = vmul.f32 -1.442695, %v2816_v38 }
 0x5fc   :  { %v4121_v33 = vpop.eup %4120 }
 0x5fd   :  { %v4123_v57 = vpop.eup %4122  ;;  %v2820_v20 = vadd.f32 1.0, %v4121_v33  ;;  %4124 = vpow2.f32 %v3695_v56 }
 0x5fe   :  { %v2839_v46 = vadd.f32 1.0, %v4123_v57 }
 0x5ff   :  { %4126 = vrcp.f32 %v2820_v20  ;;  %v2830_v24 = vand.u32 2147483647, %v2820_v20  ;;  %v2832_v62 = vand.u32 2147483648, %v2820_v20  ;;  %vm2826_vm8 = vweird.f32 %v2820_v20 }
 0x600   :  { %4128 = vrcp.f32 %v2839_v46  ;;  %v2798_v42 = vpop.f32.mrf.mxu2  ;;  %v2811_v51 = vpop.f32.mrf.mxu3  ;;  %v2851_v29 = vand.u32 2147483648, %v2839_v46  ;;  %v2849_v37 = vand.u32 2147483647, %v2839_v46  ;;  %vm2845_vm3 = vweird.f32 %v2839_v46 }
 0x601   :  { %v2833_v48 = vor.u32 1.1754944e-38, %v2832_v62  ;;  %vm2831_vm9 = vcmp.eq.f32.partialorder %v2830_v24, 8.507059e+37 }
 0x602   :  { %v2852_v9 = vor.u32 1.1754944e-38, %v2851_v29  ;;  %vm2850_vm12 = vcmp.eq.f32.partialorder %v2849_v37, 8.507059e+37 }
 0x603   :  { %v4125_v23 = vpop.eup %4124 }
 0x604   :  { %v6231_v17 = vadd.f32 1.0, %v4125_v23 }
 0x605   :  { %v4127_v45 = vpop.eup %4126 }
 0x606   :  { %v4129_v50 = vpop.eup %4128  ;;  %v2822_v34 = vmul.f32 %v4127_v45, %v2820_v20  ;;  %4130 = vrcp.f32 %v6231_v17  ;;  %vm2827_vm1 = vweird.f32 %v4127_v45  ;;  %v2871_v26 = vand.u32 2147483648, %v6231_v17 }
 0x607   :  { %v2841_v63 = vmul.f32 %v4129_v50, %v2839_v46  ;;  %4132 = vtanh.f32 %v2815_v60  ;;  %vm2846_vm2 = vweird.f32 %v4129_v50  ;;  %vm2828_vm10 = vmor %vm2826_vm8, %vm2827_vm1  ;;  %v3855_v46 = vld [vmem:[%s6317_s7] sm:$0xff]  ;;  %vm2865_vm0 = vweird.f32 %v6231_v17 }
 0x608   :  { %v2899_v28 = vpop.f32.mrf.mxu0  ;;  %v2912_v8 = vpop.f32.mrf.mxu1  ;;  %v2823_v39 = vsub.f32 1.0, %v2822_v34  ;;  %vm2847_vm7 = vmor %vm2845_vm3, %vm2846_vm2  ;;  %3122 = vmatpush.bf16.msra.mxu0 %v3855_v46  ;;  %v2872_v34 = vor.u32 1.1754944e-38, %v2871_v26  ;;  %v6900_v26 = vld [vmem:[#allocation6_spill] sm:$0xff] }
 0x609   :  { %v2942_v5 = vadd.f32 %v2899_v28, %v6889_v14  ;;  %v2943_v59 = vadd.f32 %v2912_v8, %v6890_v36  ;;  %v2842_v35 = vsub.f32 1.0, %v2841_v63  ;;  %v6892_v14 = vld [vmem:[#allocation102_spill] sm:$0xff]  ;;  %vm6261_vm2 = vmpackc.low %vm1135_vm11, %vm1410_vm14 }
 0x60a   :  { %v2824_v10 = vmul.f32 %v4127_v45, %v2823_v39 }
 0x60b   :  { %v3696_v7 = vmul.f32 -1.442695, %v2942_v5  ;;  %v3697_v15 = vmul.f32 -1.442695, %v2943_v59  ;;  %v2843_v61 = vmul.f32 %v4129_v50, %v2842_v35 }
 0x60c   :  { %v4131_v27 = vpop.eup %4130  ;;  %v2825_v18 = vadd.f32 %v4127_v45, %v2824_v10 }
 0x60d   :  { %4134 = vpow2.f32 %v3696_v7  ;;  %v2844_v53 = vadd.f32 %v4129_v50, %v2843_v61  ;;  %v2861_v16 = vmul.f32 %v4131_v27, %v6231_v17  ;;  %v4133_v6 = vpop.eup %4132  ;;  %vm2866_vm13 = vweird.f32 %v4131_v27 }
 0x60e   :  { %4136 = vpow2.f32 %v3697_v15  ;;  %v2829_v47 = vsel %vm2828_vm10, %v4127_v45, %v2825_v18  ;;  %v2869_v45 = vand.u32 2147483647, %v6231_v17  ;;  %vm2867_vm4 = vmor %vm2865_vm0, %vm2866_vm13 }
 0x60f   :  { %v2925_v54 = vpop.f32.mrf.mxu2  ;;  %v2938_v55 = vpop.f32.mrf.mxu3  ;;  %v2834_v32 = vsel %vm2831_vm9, %v2833_v48, %v2829_v47  ;;  %v2848_v19 = vsel %vm2847_vm7, %v4129_v50, %v2844_v53  ;;  %v2862_v43 = vsub.f32 1.0, %v2861_v16 }
 0x610   :  { %v2901_v38 = vpop.f32.mrf.mxu0  ;;  %v2914_v11 = vpop.f32.mrf.mxu1  ;;  %v2853_v49 = vsel %vm2850_vm12, %v2852_v9, %v2848_v19  ;;  %v2876_v56 = vmul.f32 %v4133_v6, %v2834_v32  ;;  %v2945_v33 = vadd.f32 %v2938_v55, %v6891_v13  ;;  %vm2870_vm1 = vcmp.eq.f32.partialorder %v2869_v45, 8.507059e+37 }
 0x611   :  { %v2875_v57 = vmul.f32 %v2853_v49, %v6113_v21  ;;  %v2863_v20 = vmul.f32 %v4131_v27, %v2862_v43  ;;  %v2944_v5 = vadd.f32 %v2925_v54, %v6892_v14 }
 0x612   :  { %v3698_v42 = vmul.f32 -1.442695, %v2945_v33 }
 0x613   :  { %v4135_v44 = vpop.eup %4134  ;;  %v2877_v12 = vadd.f32 %v2876_v56, %v2875_v57  ;;  %v2864_v23 = vadd.f32 %v4131_v27, %v2863_v20 }
 0x614   :  { %v4137_v51 = vpop.eup %4136  ;;  %v2949_v52 = vadd.f32 1.0, %v4135_v44  ;;  %4138 = vpow2.f32 %v3698_v42 }
 0x615   :  { %v2968_v0 = vadd.f32 1.0, %v4137_v51  ;;  %4140 = vtanh.f32 %v2877_v12  ;;  %v2868_v50 = vsel %vm2867_vm4, %v4131_v27, %v2864_v23  ;;  %v6897_v12 = vld [vmem:[#allocation83_spill] sm:$0xff]  ;;  %v6899_v23 = vld [vmem:[#allocation10_spill] sm:$0xff] }
 0x616   :  { %4142 = vrcp.f32 %v2949_v52  ;;  %v2873_v58 = vsel %vm2870_vm1, %v2872_v34, %v2868_v50  ;;  %v2961_v10 = vand.u32 2147483648, %v2949_v52  ;;  %v2959_v31 = vand.u32 2147483647, %v2949_v52 }
 0x617   :  { %v2927_v21 = vpop.f32.mrf.mxu2  ;;  %v2940_v60 = vpop.f32.mrf.mxu3  ;;  %4144 = vrcp.f32 %v2968_v0  ;;  %v2980_v61 = vand.u32 2147483648, %v2968_v0  ;;  %vm2955_vm10 = vweird.f32 %v2949_v52  ;;  %vm2974_vm7 = vweird.f32 %v2968_v0 }
 0x618   :  { %v2962_v2 = vor.u32 1.1754944e-38, %v2961_v10  ;;  %vm2960_vm14 = vcmp.eq.f32.partialorder %v2959_v31, 8.507059e+37  ;;  %v3873_v21 = vpack.c.bf16 %v6900_v26, %v6899_v23 }
 0x619   :  { %v2981_v22 = vor.u32 1.1754944e-38, %v2980_v61 }
 0x61a   :  { %v4139_v63 = vpop.eup %4138 }
 0x61b   :  { %v4141_v28 = vpop.eup %4140  ;;  %v2988_v8 = vadd.f32 1.0, %v4139_v63 }
 0x61c   :  { %v4143_v39 = vpop.eup %4142  ;;  %v2879_v36 = vmul.f32 %v4141_v28, %v2873_v58 }
 0x61d   :  { %v4145_v59 = vpop.eup %4144  ;;  %v2951_v35 = vmul.f32 %v4143_v39, %v2949_v52  ;;  %4146 = vrcp.f32 %v2988_v8  ;;  %vm2956_vm3 = vweird.f32 %v4143_v39  ;;  %v3000_v56 = vand.u32 2147483648, %v2988_v8  ;;  %v6898_v52 = vld [vmem:[#allocation14_spill] sm:$0xff] }
 0x61e   :  { %v2970_v29 = vmul.f32 %v4145_v59, %v2968_v0  ;;  %v3885_v17 = vpack.c.bf16 %v2879_v36, %v6119_v40  ;;  %4148 = vtanh.f32 %v2944_v5  ;;  %vm2975_vm8 = vweird.f32 %v4145_v59  ;;  %vm2957_vm9 = vmor %vm2955_vm10, %vm2956_vm3 }
 0x61f   :  { %v2952_v24 = vsub.f32 1.0, %v2951_v35  ;;  %v2978_v40 = vand.u32 2147483647, %v2968_v0  ;;  %vm2976_vm11 = vmor %vm2974_vm7, %vm2975_vm8  ;;  %vm2994_vm0 = vweird.f32 %v2988_v8  ;;  %v2998_v13 = vand.u32 2147483647, %v2988_v8 }
 0x620   :  { %v2971_v62 = vsub.f32 1.0, %v2970_v29  ;;  %3886 = vmatmul.msk.bf16.gmra.mxu1 %vm6261_vm2, %v3885_v17  ;;  %v3001_v57 = vor.u32 1.1754944e-38, %v3000_v56  ;;  %v3870_v0 = vpack.c.bf16 %v6898_v52, %v6897_v12 }
 0x621   :  { %v2953_v37 = vmul.f32 %v4143_v39, %v2952_v24  ;;  %vm2979_vm12 = vcmp.eq.f32.partialorder %v2978_v40, 8.507059e+37  ;;  %vm2999_vm1 = vcmp.eq.f32.partialorder %v2998_v13, 8.507059e+37 }
 0x622   :  { %v2972_v27 = vmul.f32 %v4145_v59, %v2971_v62 }
 0x623   :  { %v4147_v18 = vpop.eup %4146  ;;  %v2954_v48 = vadd.f32 %v4143_v39, %v2953_v37 }
 0x624   :  { %v2973_v53 = vadd.f32 %v4145_v59, %v2972_v27  ;;  %v2990_v16 = vmul.f32 %v4147_v18, %v2988_v8  ;;  %v4149_v9 = vpop.eup %4148  ;;  %vm2995_vm13 = vweird.f32 %v4147_v18 }
 0x625   :  { %v2958_v6 = vsel %vm2957_vm9, %v4143_v39, %v2954_v48  ;;  %vm2996_vm4 = vmor %vm2994_vm0, %vm2995_vm13 }
 0x626   :  { %v2963_v47 = vsel %vm2960_vm14, %v2962_v2, %v2958_v6  ;;  %v2977_v54 = vsel %vm2976_vm11, %v4145_v59, %v2973_v53  ;;  %v2991_v55 = vsub.f32 1.0, %v2990_v16 }
 0x627   :  { %v2982_v32 = vsel %vm2979_vm12, %v2981_v22, %v2977_v54  ;;  %v3005_v19 = vmul.f32 %v4149_v9, %v2963_v47 }
 0x628   :  { %v3004_v43 = vmul.f32 %v2982_v32, %v6153_v41  ;;  %v2992_v38 = vmul.f32 %v4147_v18, %v2991_v55  ;;  %v6896_v41 = vld [vmem:[#allocation84_spill] sm:$0xff] }
 0x629   :  { %v3867_v51 = vpack.c.bf16 %v6896_v41, %v6028_v4  ;;  %v3895_v4 = vld [vmem:[%s6318_s8] ss:$0 sm:$0xff] }
 0x62a   :  { %v3006_v11 = vadd.f32 %v3005_v19, %v3004_v43  ;;  %v2993_v49 = vadd.f32 %v4147_v18, %v2992_v38 }
 0x62c   :  { %4150 = vtanh.f32 %v3006_v11  ;;  %v2997_v33 = vsel %vm2996_vm4, %v4147_v18, %v2993_v49 }
 0x62d   :  { %v3002_v46 = vsel %vm2999_vm1, %v3001_v57, %v2997_v33 }
 0x632   :  { %v4151_v20 = vpop.eup %4150 }
 0x633   :  { %v3008_v44 = vmul.f32 %v4151_v20, %v3002_v46 }
 0x635   :  { %v3864_v42 = vpack.c.bf16 %v6160_v25, %v3008_v44  ;;  %v3201_v25 = vpop.f32.mrf.mxu1 }
 0x637   :  { %3865 = vmatmul.msk.bf16.vlgmr.msra.gmra.mxu0 %vm6181_vm5, %v3864_v42 }
 0x63d   :  { %v3203_v1 = vpop.f32.mrf.mxu1 }
 0x645   :  { %v3206_v30 = vpop.f32.mrf.mxu1 }
 0x647   :  { %3868 = vmatmul.msk.bf16.gmra.mxu0 %vm6193_vm6, %v3867_v51 }
 0x64d   :  { %v3208_v58 = vpop.f32.mrf.mxu1 }
 0x655   :  { %v3211_v59 = vpop.f32.mrf.mxu1 }
 0x657   :  { %3871 = vmatmul.msk.bf16.gmra.mxu0 %vm6205_vm15, %v3870_v0 }
 0x65d   :  { %v3213_v17 = vpop.f32.mrf.mxu1 }
 0x667   :  { %3874 = vmatmul.msk.bf16.gmra.mxu0 %vm6261_vm2, %v3873_v21 }
 0x69d   :  { %v3216_v15 = vpop.f32.mrf.mxu1 }
 0x6a5   :  { %v3218_v27 = vpop.f32.mrf.mxu1 }
 0x6b4   :  { %v3124_v3 = vpop.f32.mrf.mxu0 }
 0x6b5   :  { %v3202_v60 = vadd.f32 %v3201_v25, %v3124_v3 }
 0x6b7   :  { %v3225_v45 = vadd.f32 %v3895_v4, %v3202_v60 }
 0x6b9   :  { %3233 = vst [vmem:[%s6319_s9] sm:$0xff] %v3225_v45 }
 0x6bc   :  { %v3126_v50 = vpop.f32.mrf.mxu0 }
 0x6bd   :  { %v3204_v34 = vadd.f32 %v3203_v1, %v3126_v50 }
 0x6bf   :  { %v3226_v63 = vadd.f32 %v3895_v4, %v3204_v34 }
 0x6c1   :  { %3234 = vst [vmem:[%s6319_s9 + $0x8] sm:$0xff] %v3226_v63 }
 0x6c4   :  { %v3129_v28 = vpop.f32.mrf.mxu0 }
 0x6c5   :  { %v3207_v8 = vadd.f32 %v3206_v30, %v3129_v28 }
 0x6c7   :  { %v3227_v39 = vadd.f32 %v3895_v4, %v3207_v8 }
 0x6c9   :  { %3235 = vst [vmem:[%s6319_s9 + $0x10] sm:$0xff] %v3227_v39 }
 0x6cc   :  { %v3131_v14 = vpop.f32.mrf.mxu0 }
 0x6cd   :  { %v3209_v5 = vadd.f32 %v3208_v58, %v3131_v14 }
 0x6cf   :  { %v3228_v36 = vadd.f32 %v3895_v4, %v3209_v5 }
 0x6d1   :  { %3236 = vst [vmem:[%s6319_s9 + $0x18] sm:$0xff] %v3228_v36 }
 0x6d4   :  { %v3134_v35 = vpop.f32.mrf.mxu0 }
 0x6d5   :  { %v3212_v29 = vadd.f32 %v3211_v59, %v3134_v35 }
 0x6d7   :  { %v3229_v24 = vadd.f32 %v3895_v4, %v3212_v29 }
 0x6d9   :  { %3237 = vst [vmem:[%s6319_s9 + $0x20] sm:$0xff] %v3229_v24 }
 0x6dc   :  { %v3136_v62 = vpop.f32.mrf.mxu0 }
 0x6dd   :  { %v3214_v10 = vadd.f32 %v3213_v17, %v3136_v62 }
 0x6df   :  { %v3230_v7 = vadd.f32 %v3895_v4, %v3214_v10 }
 0x6e1   :  { %3238 = vst [vmem:[%s6319_s9 + $0x28] sm:$0xff] %v3230_v7 }
 0x6e4   :  { %v3139_v61 = vpop.f32.mrf.mxu0 }
 0x6e5   :  { %v3217_v37 = vadd.f32 %v3216_v15, %v3139_v61 }
 0x6e7   :  { %v3231_v31 = vadd.f32 %v3895_v4, %v3217_v37 }
 0x6e9   :  { %3239 = vst [vmem:[%s6319_s9 + $0x30] sm:$0xff] %v3231_v31 }
 0x6ec   :  { %v3141_v40 = vpop.f32.mrf.mxu0 }
 0x6ed   :  { %v3219_v18 = vadd.f32 %v3218_v27, %v3141_v40 }
 0x6ef   :  { %v3232_v48 = vadd.f32 %v3895_v4, %v3219_v18 }
 0x6f1   :  { %3240 = vst [vmem:[%s6319_s9 + $0x38] sm:$0xff] %v3232_v48 }

</bundles_post_ra>
